<compile_context>
chip_gen: v6e
topology: v6e:2x2x1
jax: 0.10.0
libtpu: 0.0.40
codegen_flags: <defaults>
</compile_context>

<pallas_src>
import functools
import math

import numpy as np
import jax
import jax.numpy as jnp
from jax import lax
from jax.experimental import pallas as pl
from jax.experimental.pallas import tpu as pltpu
from jax.scipy.linalg import block_diag

HIDDEN = 32
N_MT_HEADS = 2            # MTBlock num_attn_head (number of Head modules)
N_ATTN_SUBHEADS = 2       # h inside MultiHeadedAttention
D_K = HIDDEN // N_ATTN_SUBHEADS
DEPTH = 3                 # MPNEncoder depth -> DEPTH-1 message passing steps
N_BLOCKS = 2              # number of edge blocks in the stack
BOND_FDIM = 40            # raw f_bonds feature dim (!= HIDDEN so W_i path runs)
ATOM_FDIM = 24            # raw f_atoms feature dim (unused by edge blocks)
LN_EPS = 1e-5

N_STREAMS = 3 * N_MT_HEADS      # q/k/v per MT head -> 6 fused MPN streams
WIDE = N_STREAMS * HIDDEN       # 192 : lane width of the fused MPN state
SH = N_MT_HEADS * HIDDEN        # 64  : lane width of the packed attention slabs
PREC = jax.lax.Precision.HIGHEST


# ------------------------------- fused kernel --------------------------------

def edge_blocks_kernel(fb_ref, m_ref, rep6_ref, rexp_ref,
                       wi_ref, bi_ref, lng_ref, lnb_ref,
                       whf_ref, wh_ref, bh_ref,
                       wq_ref, bq_ref, wk_ref, bk_ref, wv_ref, bv_ref,
                       wfold_ref, bfold_ref,
                       out_ref, *, use_bf16):
    """Entire edge-block stack (N_BLOCKS MTBlocks) in a single VMEM-resident kernel.

    Per-block params are stacked on a leading axis and indexed statically; block /
    message-passing / key-position loops are fully unrolled (N_BLOCKS=2, DEPTH-1=2)."""
    mxu_dtype = jnp.bfloat16 if use_bf16 else jnp.float32

    def mm(a, b):
        return jnp.dot(a.astype(mxu_dtype), b.astype(mxu_dtype),
                       preferred_element_type=jnp.float32)

    f = fb_ref[...]            # (NB, BOND_FDIM) raw bond features
    M = m_ref[...]             # (NB, NB) dense message operator (small-integer, exact)
    Rep6 = rep6_ref[...]       # (32, 192) 0/1 stream-replication matrix
    Rexp = rexp_ref[...]       # (64, 64)  per-(position, subhead) sum + re-broadcast matrix
    scale = jnp.float32(1.0 / math.sqrt(D_K))

    for blk in range(N_BLOCKS):                      # unrolled
        # ---- MTBlock input projection (only when feature dim != hidden) ----
        if blk == 0:
            h = jnp.maximum(mm(f, wi_ref[blk]) + bi_ref[blk], 0.0)
            mu = jnp.mean(h, axis=-1, keepdims=True)
            var = jnp.mean((h - mu) ** 2, axis=-1, keepdims=True)
            fb = (h - mu) * lax.rsqrt(var + LN_EPS) * lng_ref[blk] + lnb_ref[blk]
        else:
            fb = f                                   # already hidden-sized

        # 6-stream residual via an exact 0/1 replication matmul (MXU slot, no concats)
        f_in_w = mm(fb, Rep6)                        # (NB, 192)

        # ---- MP step 0: all 6 streams start identical, so aggregate narrow and fold the
        #      replication into W_h (6x fewer FLOPs on the only O(NB^2) matmul) ----
        agg0 = mm(M, fb)                                             # (NB, 32)
        msg = jnp.maximum(f_in_w + mm(agg0, whf_ref[blk]) + bh_ref[blk], 0.0)

        # ---- remaining MP steps: streams have diverged, stay 192-lane wide ----
        for _ in range(DEPTH - 2):                                   # unrolled
            agg = mm(M, msg)                                         # (NB, 192)
            msg = jnp.maximum(f_in_w + mm(agg, wh_ref[blk]) + bh_ref[blk], 0.0)

        # ---- MultiHeadedAttention over the MT-head axis, 64-lane packed -----
        # Selection of the q/k/v streams AND the key/value position replication are folded
        # into the host-packed (192,64) weights: no msg slicing, every matmul has K=192.
        qp = mm(msg, wq_ref[blk]) + bq_ref[blk]                      # (NB, 64) [q(s=0)|q(s=1)]
        kp_rep = [mm(msg, wk_ref[blk * N_MT_HEADS + t]) + bk_ref[blk]
                  for t in range(N_MT_HEADS)]                        # each (NB, 64) = [k_t|k_t]
        vp_rep = [mm(msg, wv_ref[blk * N_MT_HEADS + t]) + bv_ref[blk]
                  for t in range(N_MT_HEADS)]                        # each (NB, 64) = [v_t|v_t]

        # scores summed over d_k and re-broadcast across those lanes in one matmul,
        # so softmax / context stay 64-lane dense (no (NB,1) columns, no concats).
        se = [mm(qp * kp_rep[t], Rexp) * scale for t in range(N_MT_HEADS)]
        mmax = functools.reduce(jnp.maximum, se)
        es = [jnp.exp(s - mmax) for s in se]
        inv = 1.0 / functools.reduce(jnp.add, es)    # single reciprocal, reused for all t
        ctx = functools.reduce(jnp.add, [(e * inv) * v for e, v in zip(es, vp_rep)])

        # attention-output projection folded into the block output projection (host-side)
        f = mm(ctx, wfold_ref[blk]) + bfold_ref[blk]                 # (NB, 32)

    out_ref[...] = f


# ----------------------- host-side packing & constants ------------------------

def _scatter_blocks(wt, placements):
    """Place the (HIDDEN,HIDDEN) matrix `wt` at the given (row_block, col_block) positions of
    a zero (WIDE, SH) matrix — builds the fused selection+replication projection weights."""
    m = jnp.zeros((WIDE, SH), jnp.float32)
    for r, c in placements:
        m = m.at[r * HIDDEN:(r + 1) * HIDDEN, c * HIDDEN:(c + 1) * HIDDEN].set(wt)
    return m


def pack_params(params):
    """Pre-transpose / block-pack every nn.Linear weight so the kernel only issues
    lane-dense K=192 (or K=NB) jnp.dot calls — no in-kernel transposes, slices or concats."""
    def stack(fn):
        return jnp.stack([fn(blk) for blk in params], axis=0)

    def head_whT(blk):      # 6 per-stream MPN W_h^T, stream order q0,q1,k0,k1,v0,v1
        return [blk['heads'][h][w].T for w in ('Wq', 'Wk', 'Wv')
                for h in range(N_MT_HEADS)]

    def bh_wide(blk):       # (1, 192)
        return jnp.concatenate([blk['heads'][h][n] for n in ('bq', 'bk', 'bv')
                                for h in range(N_MT_HEADS)], axis=1)

    def wq_sel(blk):        # (192, 64): q streams projected in place (s -> s)
        return _scatter_blocks(blk['aWq'].T, [(s, s) for s in range(N_MT_HEADS)])

    def wk_rep(blk):        # (N_MT_HEADS, 192, 64): key position t replicated to both s slots
        return jnp.stack([_scatter_blocks(blk['aWk'].T,
                                          [(N_MT_HEADS + t, s) for s in range(N_MT_HEADS)])
                          for t in range(N_MT_HEADS)], axis=0)

    def wv_rep(blk):        # (N_MT_HEADS, 192, 64): value position t replicated to both s slots
        return jnp.stack([_scatter_blocks(blk['aWv'].T,
                                          [(2 * N_MT_HEADS + t, s) for s in range(N_MT_HEADS)])
                          for t in range(N_MT_HEADS)], axis=0)

    def dup_b(blk, name):   # (1, 64)
        return jnp.concatenate([blk[name]] * N_MT_HEADS, axis=1)

    def w_fold(blk):        # (64, 32) = blockdiag(aWo^T, aWo^T) @ W_o^T  (host-side fold)
        woa = block_diag(*([blk['aWo'].T] * N_MT_HEADS))
        return jnp.dot(woa, blk['W_o'].T, precision=PREC)

    def b_fold(blk):        # (1, 32) = [abo|abo] @ W_o^T + b_o
        boa = jnp.concatenate([blk['abo']] * N_MT_HEADS, axis=1)
        return jnp.dot(boa, blk['W_o'].T, precision=PREC) + blk['b_o']

    return {
        'WiT': stack(lambda b: b['W_i'].T), 'bi': stack(lambda b: b['b_i']),
        'ln_g': stack(lambda b: b['ln_g']), 'ln_b': stack(lambda b: b['ln_b']),
        'WhF': stack(lambda b: jnp.concatenate(head_whT(b), axis=1)),     # (2, 32, 192)
        'WhT': stack(lambda b: block_diag(*head_whT(b))),                 # (2, 192, 192)
        'bh': stack(bh_wide),
        'Wq': stack(wq_sel), 'bq': stack(lambda b: dup_b(b, 'abq')),
        'Wk': stack(wk_rep).reshape(N_BLOCKS * N_MT_HEADS, WIDE, SH),
        'bk': stack(lambda b: dup_b(b, 'abk')),
        'Wv': stack(wv_rep).reshape(N_BLOCKS * N_MT_HEADS, WIDE, SH),
        'bv': stack(lambda b: dup_b(b, 'abv')),
        'Wfold': stack(w_fold), 'bfold': stack(b_fold),
    }


def build_message_operator(a2b, b2a, b2revb, n_bonds):
    """Dense (NB, NB) operator s.t. M @ msg == index_select_nd(msg, a2b).sum(1)[b2a] - msg[b2revb].
    Built once per graph on the host (numpy) — not rebuilt inside the jitted forward.
    TODO(synk): at production bond counts this O(NB^2) operator exceeds v7x scoped VMEM around
    NB~2.8k; switch to a scalar-prefetch gather + NB-"parallel" row-tiled grid before scaling."""
    a2b = np.asarray(a2b)
    b2a = np.asarray(b2a)
    b2revb = np.asarray(b2revb)
    n_atoms = a2b.shape[0]
    A = np.zeros((n_atoms, n_bonds), np.float32)
    for a in range(n_atoms):
        for k in a2b[a]:
            A[a, int(k)] += 1.0            # padding zeros deliberately included (matches ref)
    M = A[b2a] - np.eye(n_bonds, dtype=np.float32)[b2revb]
    return jnp.asarray(M)


def prepare_edge_blocks(params, a2b, b2a, b2revb, n_bonds):
    """Host-side, once per (graph, params): packed weights + constant operators."""
    consts = dict(pack_params(params))
    consts['M'] = build_message_operator(a2b, b2a, b2revb, n_bonds)
    consts['Rep6'] = jnp.asarray(
        np.concatenate([np.eye(HIDDEN, dtype=np.float32)] * N_STREAMS, axis=1))   # (32, 192)
    consts['Rexp'] = jnp.asarray(
        np.kron(np.eye(N_MT_HEADS * N_ATTN_SUBHEADS, dtype=np.float32),
                np.ones((D_K, D_K), dtype=np.float32)))                           # (64, 64)
    return consts


# ------------------------------- pallas wrapper --------------------------------

def pallas_edge_blocks(f_bonds, consts, *, use_bf16=False):
    nb = f_bonds.shape[0]
    args = (f_bonds, consts['M'], consts['Rep6'], consts['Rexp'],
            consts['WiT'], consts['bi'], consts['ln_g'], consts['ln_b'],
            consts['WhF'], consts['WhT'], consts['bh'],
            consts['Wq'], consts['bq'], consts['Wk'], consts['bk'],
            consts['Wv'], consts['bv'], consts['Wfold'], consts['bfold'])
    out_shape = jax.ShapeDtypeStruct((nb, HIDDEN), jnp.float32)
    # Whole arrays as single VMEM blocks (total weight/state footprint < 1 MiB here, far under
    # scoped VMEM on v5e/v6e/v7x); one launch for the whole forward.
    in_specs = [pl.BlockSpec(a.shape, lambda i, nd=a.ndim: (0,) * nd) for a in args]
    out_specs = pl.BlockSpec((nb, HIDDEN), lambda i: (0, 0))
    return pl.pallas_call(
        functools.partial(edge_blocks_kernel, use_bf16=use_bf16),
        out_shape=out_shape,
        grid=(1,),
        in_specs=in_specs,
        out_specs=out_specs,
        compiler_params=pltpu.CompilerParams(
            dimension_semantics=("arbitrary",)),
    )(*args)


_jit_run = jax.jit(pallas_edge_blocks, static_argnames=("use_bf16",))


# ------------------------------- module forward -------------------------------

def edge_blocks_forward(params, f_atoms, f_bonds, a2b, b2a, b2revb,
                        a_scope, b_scope, a2a, features_batch=None,
                        *, use_bf16=False, consts=None):
    # a_scope / b_scope / a2a / features_batch / f_atoms are carried in the interface
    # but unused by bond blocks with attach_fea=False — same as the reference model.
    del f_atoms, a_scope, b_scope, a2a, features_batch
    if consts is None:
        consts = prepare_edge_blocks(params, a2b, b2a, b2revb, int(f_bonds.shape[0]))
    return _jit_run(f_bonds, consts, use_bf16=use_bf16)   # bond_output


# ------------------------------ pure-JAX reference -----------------------------

def ref_forward(params, f_atoms, f_bonds, a2b, b2a, b2revb):
    del f_atoms

    def linear(x, w, b):
        return jnp.dot(x, w.T, precision=PREC) + b

    def relu(x):
        return jnp.maximum(x, 0.0)

    def layernorm(x, g, b):
        mu = x.mean(-1, keepdims=True)
        var = ((x - mu) ** 2).mean(-1, keepdims=True)
        return (x - mu) / jnp.sqrt(var + LN_EPS) * g + b

    def mpn(f_in, w, b):
        msg = f_in
        for _ in range(DEPTH - 1):
            nei = jnp.take(msg, a2b, axis=0).sum(axis=1)      # (NA, H)
            new = nei[b2a] - msg[b2revb]                      # (NB, H)
            msg = relu(f_in + linear(new, w, b))
        return msg

    for blk in params:
        if f_bonds.shape[1] != HIDDEN:
            f_bonds = layernorm(relu(linear(f_bonds, blk['W_i'], blk['b_i'])),
                                blk['ln_g'], blk['ln_b'])
        Q = jnp.stack([mpn(f_bonds, h['Wq'], h['bq']) for h in blk['heads']], axis=1)
        K = jnp.stack([mpn(f_bonds, h['Wk'], h['bk']) for h in blk['heads']], axis=1)
        V = jnp.stack([mpn(f_bonds, h['Wv'], h['bv']) for h in blk['heads']], axis=1)
        nb, s_len, _ = Q.shape

        def proj(x, w, b):
            y = jnp.einsum('nsh,oh->nso', x, w, precision=PREC) + b
            return y.reshape(nb, s_len, N_ATTN_SUBHEADS, D_K).transpose(0, 2, 1, 3)

        qp = proj(Q, blk['aWq'], blk['abq'])
        kp = proj(K, blk['aWk'], blk['abk'])
        vp = proj(V, blk['aWv'], blk['abv'])
        sc = jnp.einsum('nhsd,nhtd->nhst', qp, kp, precision=PREC) / (D_K ** 0.5)
        p = jax.nn.softmax(sc, axis=-1)
        x = jnp.einsum('nhst,nhtd->nhsd', p, vp, precision=PREC)
        x = x.transpose(0, 2, 1, 3).reshape(nb, s_len, HIDDEN)
        x = jnp.einsum('nsh,oh->nso', x, blk['aWo'], precision=PREC) + blk['abo']
        x = x.reshape(nb, s_len * HIDDEN)
        f_bonds = linear(x, blk['W_o'], blk['b_o'])
    return f_bonds


# -------------------------------- parameter init --------------------------------

def init_linear(key, out_dim, in_dim):
    kw, kb = jax.random.split(key)
    bound = 1.0 / (in_dim ** 0.5)
    w = jax.random.uniform(kw, (out_dim, in_dim), jnp.float32, -bound, bound)
    b = jax.random.uniform(kb, (1, out_dim), jnp.float32, -bound, bound)
    return w, b


def init_block(key, bond_fdim):
    keys = jax.random.split(key, 1 + 3 * N_MT_HEADS + 5)
    blk = {}
    blk['W_i'], blk['b_i'] = init_linear(keys[0], HIDDEN, bond_fdim)
    blk['ln_g'] = jnp.ones((1, HIDDEN), jnp.float32)
    blk['ln_b'] = jnp.zeros((1, HIDDEN), jnp.float32)
    heads = []
    ki = 1
    for _ in range(N_MT_HEADS):
        hd = {}
        hd['Wq'], hd['bq'] = init_linear(keys[ki], HIDDEN, HIDDEN); ki += 1
        hd['Wk'], hd['bk'] = init_linear(keys[ki], HIDDEN, HIDDEN); ki += 1
        hd['Wv'], hd['bv'] = init_linear(keys[ki], HIDDEN, HIDDEN); ki += 1
        heads.append(hd)
    blk['heads'] = heads
    blk['aWq'], blk['abq'] = init_linear(keys[ki], HIDDEN, HIDDEN); ki += 1
    blk['aWk'], blk['abk'] = init_linear(keys[ki], HIDDEN, HIDDEN); ki += 1
    blk['aWv'], blk['abv'] = init_linear(keys[ki], HIDDEN, HIDDEN); ki += 1
    blk['aWo'], blk['abo'] = init_linear(keys[ki], HIDDEN, HIDDEN); ki += 1
    blk['W_o'], blk['b_o'] = init_linear(keys[ki], HIDDEN, N_MT_HEADS * HIDDEN)
    return blk


# -------------------------------------- main --------------------------------------

if __name__ == "__main__":
    # Small deterministic molecular-graph-like batch: an 8-atom ring.
    # Index 0 of atoms/bonds is the chemprop/GROVER zero-padding entry.
    n_ring = 8
    max_nb = 3
    n_atoms = n_ring + 1
    n_bonds = 2 * n_ring + 1

    a2b_l = [[0] * max_nb for _ in range(n_atoms)]
    a2a_l = [[0] * max_nb for _ in range(n_atoms)]
    b2a_l = [0] * n_bonds
    b2revb_l = [0] * n_bonds
    nb_count = [0] * n_atoms

    def add_incoming(atom, bond, src):
        a2b_l[atom][nb_count[atom]] = bond
        a2a_l[atom][nb_count[atom]] = src
        nb_count[atom] += 1

    for e in range(n_ring):
        u, v = 1 + e, 1 + ((e + 1) % n_ring)
        bf, br = 1 + 2 * e, 2 + 2 * e          # directed bonds u->v and v->u
        b2a_l[bf], b2a_l[br] = u, v
        b2revb_l[bf], b2revb_l[br] = br, bf
        add_incoming(v, bf, u)
        add_incoming(u, br, v)

    a2b = jnp.array(a2b_l, dtype=jnp.int32)
    a2a = jnp.array(a2a_l, dtype=jnp.int32)
    b2a = jnp.array(b2a_l, dtype=jnp.int32)
    b2revb = jnp.array(b2revb_l, dtype=jnp.int32)
    a_scope = jnp.array([[1, n_ring]], dtype=jnp.int32)
    b_scope = jnp.array([[1, 2 * n_ring]], dtype=jnp.int32)

    key = jax.random.PRNGKey(0)
    kfa, kfb, kp = jax.random.split(key, 3)
    f_atoms = jax.random.normal(kfa, (n_atoms, ATOM_FDIM), jnp.float32).at[0].set(0.0)
    f_bonds = jax.random.normal(kfb, (n_bonds, BOND_FDIM), jnp.float32).at[0].set(0.0)
    params = [init_block(k, BOND_FDIM) for k in jax.random.split(kp, N_BLOCKS)]

    # Host-side constants built once per graph/params (hoisted out of the jitted path).
    consts = prepare_edge_blocks(params, a2b, b2a, b2revb, n_bonds)

    # --- exact (f32-MXU) path: the correctness gate, kept at the tight 1e-3 tolerance ---
    bond_out = edge_blocks_forward(params, f_atoms, f_bonds, a2b, b2a, b2revb,
                                   a_scope, b_scope, a2a, None, consts=consts)
    bond_out = jax.block_until_ready(bond_out)

    ref = ref_forward(params, f_atoms, f_bonds, a2b, b2a, b2revb)
    if not jnp.allclose(bond_out, ref, rtol=1e-3, atol=1e-3):
        max_err = float(jnp.max(jnp.abs(bond_out - ref)))
        raise AssertionError(
            f"Pallas kernel output does not match JAX reference (max abs err {max_err:.3e})")

    # --- bf16-MXU-operand variant (review item: ~2-3x MXU throughput on v6e/v7x) ---
    # Operand rounding across ~20 chained matmul stages cannot meet 1e-3; this is a sanity
    # bound only — the f32 path above is the correctness gate.
    bond_out_bf16 = edge_blocks_forward(params, f_atoms, f_bonds, a2b, b2a, b2revb,
                                        a_scope, b_scope, a2a, None,
                                        consts=consts, use_bf16=True)
    bond_out_bf16 = jax.block_until_ready(bond_out_bf16)
    if not jnp.allclose(bond_out_bf16, ref, rtol=1e-1, atol=1e-1):
        max_err = float(jnp.max(jnp.abs(bond_out_bf16 - ref)))
        raise AssertionError(
            f"bf16-MXU Pallas variant diverged from JAX reference (max abs err {max_err:.3e})")

    print("KERNEL_OK")
</pallas_src>

<mosaic_0001>
module attributes {stable_mosaic.version = 11 : i64} {
  func.func @edge_blocks_kernel(%arg0: i32, %arg1: memref<17x40xf32, #tpu.memory_space<vmem>>, %arg2: memref<17x17xf32, #tpu.memory_space<vmem>>, %arg3: memref<32x192xf32, #tpu.memory_space<vmem>>, %arg4: memref<64x64xf32, #tpu.memory_space<vmem>>, %arg5: memref<2x40x32xf32, #tpu.memory_space<vmem>>, %arg6: memref<2x1x32xf32, #tpu.memory_space<vmem>>, %arg7: memref<2x1x32xf32, #tpu.memory_space<vmem>>, %arg8: memref<2x1x32xf32, #tpu.memory_space<vmem>>, %arg9: memref<2x32x192xf32, #tpu.memory_space<vmem>>, %arg10: memref<2x192x192xf32, #tpu.memory_space<vmem>>, %arg11: memref<2x1x192xf32, #tpu.memory_space<vmem>>, %arg12: memref<2x192x64xf32, #tpu.memory_space<vmem>>, %arg13: memref<2x1x64xf32, #tpu.memory_space<vmem>>, %arg14: memref<4x192x64xf32, #tpu.memory_space<vmem>>, %arg15: memref<2x1x64xf32, #tpu.memory_space<vmem>>, %arg16: memref<4x192x64xf32, #tpu.memory_space<vmem>>, %arg17: memref<2x1x64xf32, #tpu.memory_space<vmem>>, %arg18: memref<2x64x32xf32, #tpu.memory_space<vmem>>, %arg19: memref<2x1x32xf32, #tpu.memory_space<vmem>>, %arg20: memref<17x32xf32, #tpu.memory_space<vmem>>) attributes {dimension_semantics = [#tpu.dimension_semantics<arbitrary>], iteration_bounds = array<i64: 1>, scalar_prefetch = 0 : i64, scratch_operands = 0 : i64, tpu.core_type = #tpu.core_type<tc>, window_params = [{pipeline_mode = #tpu.pipeline_mode<synchronous>, transform_indices = @transform_0, window_bounds = array<i64: 17, 40>}, {pipeline_mode = #tpu.pipeline_mode<synchronous>, transform_indices = @transform_1, window_bounds = array<i64: 17, 17>}, {pipeline_mode = #tpu.pipeline_mode<synchronous>, transform_indices = @transform_2, window_bounds = array<i64: 32, 192>}, {pipeline_mode = #tpu.pipeline_mode<synchronous>, transform_indices = @transform_3, window_bounds = array<i64: 64, 64>}, {pipeline_mode = #tpu.pipeline_mode<synchronous>, transform_indices = @transform_4, window_bounds = array<i64: 2, 40, 32>}, {pipeline_mode = #tpu.pipeline_mode<synchronous>, transform_indices = @transform_5, window_bounds = array<i64: 2, 1, 32>}, {pipeline_mode = #tpu.pipeline_mode<synchronous>, transform_indices = @transform_6, window_bounds = array<i64: 2, 1, 32>}, {pipeline_mode = #tpu.pipeline_mode<synchronous>, transform_indices = @transform_7, window_bounds = array<i64: 2, 1, 32>}, {pipeline_mode = #tpu.pipeline_mode<synchronous>, transform_indices = @transform_8, window_bounds = array<i64: 2, 32, 192>}, {pipeline_mode = #tpu.pipeline_mode<synchronous>, transform_indices = @transform_9, window_bounds = array<i64: 2, 192, 192>}, {pipeline_mode = #tpu.pipeline_mode<synchronous>, transform_indices = @transform_10, window_bounds = array<i64: 2, 1, 192>}, {pipeline_mode = #tpu.pipeline_mode<synchronous>, transform_indices = @transform_11, window_bounds = array<i64: 2, 192, 64>}, {pipeline_mode = #tpu.pipeline_mode<synchronous>, transform_indices = @transform_12, window_bounds = array<i64: 2, 1, 64>}, {pipeline_mode = #tpu.pipeline_mode<synchronous>, transform_indices = @transform_13, window_bounds = array<i64: 4, 192, 64>}, {pipeline_mode = #tpu.pipeline_mode<synchronous>, transform_indices = @transform_14, window_bounds = array<i64: 2, 1, 64>}, {pipeline_mode = #tpu.pipeline_mode<synchronous>, transform_indices = @transform_15, window_bounds = array<i64: 4, 192, 64>}, {pipeline_mode = #tpu.pipeline_mode<synchronous>, transform_indices = @transform_16, window_bounds = array<i64: 2, 1, 64>}, {pipeline_mode = #tpu.pipeline_mode<synchronous>, transform_indices = @transform_17, window_bounds = array<i64: 2, 64, 32>}, {pipeline_mode = #tpu.pipeline_mode<synchronous>, transform_indices = @transform_18, window_bounds = array<i64: 2, 1, 32>}, {pipeline_mode = #tpu.pipeline_mode<synchronous>, transform_indices = @transform_19, window_bounds = array<i64: 17, 32>}]} {
    %c0 = arith.constant 0 : index
    %c0_0 = arith.constant 0 : index
    %0 = vector.load %arg1[%c0, %c0_0] : memref<17x40xf32, #tpu.memory_space<vmem>>, vector<17x40xf32>
    %c0_1 = arith.constant 0 : index
    %c0_2 = arith.constant 0 : index
    %1 = vector.load %arg2[%c0_1, %c0_2] : memref<17x17xf32, #tpu.memory_space<vmem>>, vector<17x17xf32>
    %c0_3 = arith.constant 0 : index
    %c0_4 = arith.constant 0 : index
    %2 = vector.load %arg3[%c0_3, %c0_4] : memref<32x192xf32, #tpu.memory_space<vmem>>, vector<32x192xf32>
    %c0_5 = arith.constant 0 : index
    %c0_6 = arith.constant 0 : index
    %3 = vector.load %arg4[%c0_5, %c0_6] : memref<64x64xf32, #tpu.memory_space<vmem>>, vector<64x64xf32>
    %c0_7 = arith.constant 0 : index
    %c0_8 = arith.constant 0 : index
    %c0_9 = arith.constant 0 : index
    %4 = vector.load %arg5[%c0_7, %c0_8, %c0_9] : memref<2x40x32xf32, #tpu.memory_space<vmem>>, vector<1x40x32xf32>
    %5 = vector.shape_cast %4 : vector<1x40x32xf32> to vector<40x32xf32>
    %cst = arith.constant dense<0.000000e+00> : vector<17x32xf32>
    %6 = tpu.matmul %0, %5, %cst {dimension_numbers = #tpu.dot_dimension_numbers<[1], [0], [0], [1], [0, 0, 1, 1], [], []>} : vector<17x40xf32>, vector<40x32xf32>, vector<17x32xf32> -> vector<17x32xf32>
    %c0_10 = arith.constant 0 : index
    %c0_11 = arith.constant 0 : index
    %c0_12 = arith.constant 0 : index
    %7 = vector.load %arg6[%c0_10, %c0_11, %c0_12] : memref<2x1x32xf32, #tpu.memory_space<vmem>>, vector<1x1x32xf32>
    %8 = vector.shape_cast %7 : vector<1x1x32xf32> to vector<1x32xf32>
    %9 = vector.broadcast %8 : vector<1x32xf32> to vector<17x32xf32>
    %10 = arith.addf %6, %9 : vector<17x32xf32>
    %cst_13 = arith.constant 0.000000e+00 : f32
    %11 = vector.broadcast %cst_13 : f32 to vector<17x32xf32>
    %12 = arith.maximumf %10, %11 : vector<17x32xf32>
    %cst_14 = arith.constant dense<0.000000e+00> : vector<17xf32>
    %13 = vector.multi_reduction <add>, %12, %cst_14 [1] : vector<17x32xf32> to vector<17xf32>
    %14 = vector.shape_cast %13 : vector<17xf32> to vector<17x1xf32>
    %cst_15 = arith.constant 3.200000e+01 : f32
    %15 = vector.broadcast %cst_15 : f32 to vector<17x1xf32>
    %16 = arith.divf %14, %15 : vector<17x1xf32>
    %17 = vector.broadcast %16 : vector<17x1xf32> to vector<17x32xf32>
    %18 = arith.subf %12, %17 : vector<17x32xf32>
    %19 = arith.mulf %18, %18 : vector<17x32xf32>
    %cst_16 = arith.constant dense<0.000000e+00> : vector<17xf32>
    %20 = vector.multi_reduction <add>, %19, %cst_16 [1] : vector<17x32xf32> to vector<17xf32>
    %21 = vector.shape_cast %20 : vector<17xf32> to vector<17x1xf32>
    %cst_17 = arith.constant 3.200000e+01 : f32
    %22 = vector.broadcast %cst_17 : f32 to vector<17x1xf32>
    %23 = arith.divf %21, %22 : vector<17x1xf32>
    %24 = vector.broadcast %16 : vector<17x1xf32> to vector<17x32xf32>
    %25 = arith.subf %12, %24 : vector<17x32xf32>
    %cst_18 = arith.constant 9.99999974E-6 : f32
    %26 = vector.broadcast %cst_18 : f32 to vector<17x1xf32>
    %27 = arith.addf %23, %26 : vector<17x1xf32>
    %28 = math.rsqrt %27 : vector<17x1xf32>
    %29 = vector.broadcast %28 : vector<17x1xf32> to vector<17x32xf32>
    %30 = arith.mulf %25, %29 : vector<17x32xf32>
    %c0_19 = arith.constant 0 : index
    %c0_20 = arith.constant 0 : index
    %c0_21 = arith.constant 0 : index
    %31 = vector.load %arg7[%c0_19, %c0_20, %c0_21] : memref<2x1x32xf32, #tpu.memory_space<vmem>>, vector<1x1x32xf32>
    %32 = vector.shape_cast %31 : vector<1x1x32xf32> to vector<1x32xf32>
    %33 = vector.broadcast %32 : vector<1x32xf32> to vector<17x32xf32>
    %34 = arith.mulf %30, %33 : vector<17x32xf32>
    %c0_22 = arith.constant 0 : index
    %c0_23 = arith.constant 0 : index
    %c0_24 = arith.constant 0 : index
    %35 = vector.load %arg8[%c0_22, %c0_23, %c0_24] : memref<2x1x32xf32, #tpu.memory_space<vmem>>, vector<1x1x32xf32>
    %36 = vector.shape_cast %35 : vector<1x1x32xf32> to vector<1x32xf32>
    %37 = vector.broadcast %36 : vector<1x32xf32> to vector<17x32xf32>
    %38 = arith.addf %34, %37 : vector<17x32xf32>
    %cst_25 = arith.constant dense<0.000000e+00> : vector<17x192xf32>
    %39 = tpu.matmul %38, %2, %cst_25 {dimension_numbers = #tpu.dot_dimension_numbers<[1], [0], [0], [1], [0, 0, 1, 1], [], []>} : vector<17x32xf32>, vector<32x192xf32>, vector<17x192xf32> -> vector<17x192xf32>
    %cst_26 = arith.constant dense<0.000000e+00> : vector<17x32xf32>
    %40 = tpu.matmul %1, %38, %cst_26 {dimension_numbers = #tpu.dot_dimension_numbers<[1], [0], [0], [1], [0, 0, 1, 1], [], []>} : vector<17x17xf32>, vector<17x32xf32>, vector<17x32xf32> -> vector<17x32xf32>
    %c0_27 = arith.constant 0 : index
    %c0_28 = arith.constant 0 : index
    %c0_29 = arith.constant 0 : index
    %41 = vector.load %arg9[%c0_27, %c0_28, %c0_29] : memref<2x32x192xf32, #tpu.memory_space<vmem>>, vector<1x32x192xf32>
    %42 = vector.shape_cast %41 : vector<1x32x192xf32> to vector<32x192xf32>
    %cst_30 = arith.constant dense<0.000000e+00> : vector<17x192xf32>
    %43 = tpu.matmul %40, %42, %cst_30 {dimension_numbers = #tpu.dot_dimension_numbers<[1], [0], [0], [1], [0, 0, 1, 1], [], []>} : vector<17x32xf32>, vector<32x192xf32>, vector<17x192xf32> -> vector<17x192xf32>
    %44 = arith.addf %39, %43 : vector<17x192xf32>
    %c0_31 = arith.constant 0 : index
    %c0_32 = arith.constant 0 : index
    %c0_33 = arith.constant 0 : index
    %45 = vector.load %arg11[%c0_31, %c0_32, %c0_33] : memref<2x1x192xf32, #tpu.memory_space<vmem>>, vector<1x1x192xf32>
    %46 = vector.shape_cast %45 : vector<1x1x192xf32> to vector<1x192xf32>
    %47 = vector.broadcast %46 : vector<1x192xf32> to vector<17x192xf32>
    %48 = arith.addf %44, %47 : vector<17x192xf32>
    %cst_34 = arith.constant 0.000000e+00 : f32
    %49 = vector.broadcast %cst_34 : f32 to vector<17x192xf32>
    %50 = arith.maximumf %48, %49 : vector<17x192xf32>
    %cst_35 = arith.constant dense<0.000000e+00> : vector<17x192xf32>
    %51 = tpu.matmul %1, %50, %cst_35 {dimension_numbers = #tpu.dot_dimension_numbers<[1], [0], [0], [1], [0, 0, 1, 1], [], []>} : vector<17x17xf32>, vector<17x192xf32>, vector<17x192xf32> -> vector<17x192xf32>
    %c0_36 = arith.constant 0 : index
    %c0_37 = arith.constant 0 : index
    %c0_38 = arith.constant 0 : index
    %52 = vector.load %arg10[%c0_36, %c0_37, %c0_38] : memref<2x192x192xf32, #tpu.memory_space<vmem>>, vector<1x192x192xf32>
    %53 = vector.shape_cast %52 : vector<1x192x192xf32> to vector<192x192xf32>
    %cst_39 = arith.constant dense<0.000000e+00> : vector<17x192xf32>
    %54 = tpu.matmul %51, %53, %cst_39 {dimension_numbers = #tpu.dot_dimension_numbers<[1], [0], [0], [1], [0, 0, 1, 1], [], []>} : vector<17x192xf32>, vector<192x192xf32>, vector<17x192xf32> -> vector<17x192xf32>
    %55 = arith.addf %39, %54 : vector<17x192xf32>
    %c0_40 = arith.constant 0 : index
    %c0_41 = arith.constant 0 : index
    %c0_42 = arith.constant 0 : index
    %56 = vector.load %arg11[%c0_40, %c0_41, %c0_42] : memref<2x1x192xf32, #tpu.memory_space<vmem>>, vector<1x1x192xf32>
    %57 = vector.shape_cast %56 : vector<1x1x192xf32> to vector<1x192xf32>
    %58 = vector.broadcast %57 : vector<1x192xf32> to vector<17x192xf32>
    %59 = arith.addf %55, %58 : vector<17x192xf32>
    %cst_43 = arith.constant 0.000000e+00 : f32
    %60 = vector.broadcast %cst_43 : f32 to vector<17x192xf32>
    %61 = arith.maximumf %59, %60 : vector<17x192xf32>
    %c0_44 = arith.constant 0 : index
    %c0_45 = arith.constant 0 : index
    %c0_46 = arith.constant 0 : index
    %62 = vector.load %arg12[%c0_44, %c0_45, %c0_46] : memref<2x192x64xf32, #tpu.memory_space<vmem>>, vector<1x192x64xf32>
    %63 = vector.shape_cast %62 : vector<1x192x64xf32> to vector<192x64xf32>
    %cst_47 = arith.constant dense<0.000000e+00> : vector<17x64xf32>
    %64 = tpu.matmul %61, %63, %cst_47 {dimension_numbers = #tpu.dot_dimension_numbers<[1], [0], [0], [1], [0, 0, 1, 1], [], []>} : vector<17x192xf32>, vector<192x64xf32>, vector<17x64xf32> -> vector<17x64xf32>
    %c0_48 = arith.constant 0 : index
    %c0_49 = arith.constant 0 : index
    %c0_50 = arith.constant 0 : index
    %65 = vector.load %arg13[%c0_48, %c0_49, %c0_50] : memref<2x1x64xf32, #tpu.memory_space<vmem>>, vector<1x1x64xf32>
    %66 = vector.shape_cast %65 : vector<1x1x64xf32> to vector<1x64xf32>
    %67 = vector.broadcast %66 : vector<1x64xf32> to vector<17x64xf32>
    %68 = arith.addf %64, %67 : vector<17x64xf32>
    %c0_51 = arith.constant 0 : index
    %c0_52 = arith.constant 0 : index
    %c0_53 = arith.constant 0 : index
    %69 = vector.load %arg14[%c0_51, %c0_52, %c0_53] : memref<4x192x64xf32, #tpu.memory_space<vmem>>, vector<1x192x64xf32>
    %70 = vector.shape_cast %69 : vector<1x192x64xf32> to vector<192x64xf32>
    %cst_54 = arith.constant dense<0.000000e+00> : vector<17x64xf32>
    %71 = tpu.matmul %61, %70, %cst_54 {dimension_numbers = #tpu.dot_dimension_numbers<[1], [0], [0], [1], [0, 0, 1, 1], [], []>} : vector<17x192xf32>, vector<192x64xf32>, vector<17x64xf32> -> vector<17x64xf32>
    %c0_55 = arith.constant 0 : index
    %c0_56 = arith.constant 0 : index
    %c0_57 = arith.constant 0 : index
    %72 = vector.load %arg15[%c0_55, %c0_56, %c0_57] : memref<2x1x64xf32, #tpu.memory_space<vmem>>, vector<1x1x64xf32>
    %73 = vector.shape_cast %72 : vector<1x1x64xf32> to vector<1x64xf32>
    %74 = vector.broadcast %73 : vector<1x64xf32> to vector<17x64xf32>
    %75 = arith.addf %71, %74 : vector<17x64xf32>
    %c1 = arith.constant 1 : index
    %c0_58 = arith.constant 0 : index
    %c0_59 = arith.constant 0 : index
    %76 = vector.load %arg14[%c1, %c0_58, %c0_59] : memref<4x192x64xf32, #tpu.memory_space<vmem>>, vector<1x192x64xf32>
    %77 = vector.shape_cast %76 : vector<1x192x64xf32> to vector<192x64xf32>
    %cst_60 = arith.constant dense<0.000000e+00> : vector<17x64xf32>
    %78 = tpu.matmul %61, %77, %cst_60 {dimension_numbers = #tpu.dot_dimension_numbers<[1], [0], [0], [1], [0, 0, 1, 1], [], []>} : vector<17x192xf32>, vector<192x64xf32>, vector<17x64xf32> -> vector<17x64xf32>
    %c0_61 = arith.constant 0 : index
    %c0_62 = arith.constant 0 : index
    %c0_63 = arith.constant 0 : index
    %79 = vector.load %arg15[%c0_61, %c0_62, %c0_63] : memref<2x1x64xf32, #tpu.memory_space<vmem>>, vector<1x1x64xf32>
    %80 = vector.shape_cast %79 : vector<1x1x64xf32> to vector<1x64xf32>
    %81 = vector.broadcast %80 : vector<1x64xf32> to vector<17x64xf32>
    %82 = arith.addf %78, %81 : vector<17x64xf32>
    %c0_64 = arith.constant 0 : index
    %c0_65 = arith.constant 0 : index
    %c0_66 = arith.constant 0 : index
    %83 = vector.load %arg16[%c0_64, %c0_65, %c0_66] : memref<4x192x64xf32, #tpu.memory_space<vmem>>, vector<1x192x64xf32>
    %84 = vector.shape_cast %83 : vector<1x192x64xf32> to vector<192x64xf32>
    %cst_67 = arith.constant dense<0.000000e+00> : vector<17x64xf32>
    %85 = tpu.matmul %61, %84, %cst_67 {dimension_numbers = #tpu.dot_dimension_numbers<[1], [0], [0], [1], [0, 0, 1, 1], [], []>} : vector<17x192xf32>, vector<192x64xf32>, vector<17x64xf32> -> vector<17x64xf32>
    %c0_68 = arith.constant 0 : index
    %c0_69 = arith.constant 0 : index
    %c0_70 = arith.constant 0 : index
    %86 = vector.load %arg17[%c0_68, %c0_69, %c0_70] : memref<2x1x64xf32, #tpu.memory_space<vmem>>, vector<1x1x64xf32>
    %87 = vector.shape_cast %86 : vector<1x1x64xf32> to vector<1x64xf32>
    %88 = vector.broadcast %87 : vector<1x64xf32> to vector<17x64xf32>
    %89 = arith.addf %85, %88 : vector<17x64xf32>
    %c1_71 = arith.constant 1 : index
    %c0_72 = arith.constant 0 : index
    %c0_73 = arith.constant 0 : index
    %90 = vector.load %arg16[%c1_71, %c0_72, %c0_73] : memref<4x192x64xf32, #tpu.memory_space<vmem>>, vector<1x192x64xf32>
    %91 = vector.shape_cast %90 : vector<1x192x64xf32> to vector<192x64xf32>
    %cst_74 = arith.constant dense<0.000000e+00> : vector<17x64xf32>
    %92 = tpu.matmul %61, %91, %cst_74 {dimension_numbers = #tpu.dot_dimension_numbers<[1], [0], [0], [1], [0, 0, 1, 1], [], []>} : vector<17x192xf32>, vector<192x64xf32>, vector<17x64xf32> -> vector<17x64xf32>
    %c0_75 = arith.constant 0 : index
    %c0_76 = arith.constant 0 : index
    %c0_77 = arith.constant 0 : index
    %93 = vector.load %arg17[%c0_75, %c0_76, %c0_77] : memref<2x1x64xf32, #tpu.memory_space<vmem>>, vector<1x1x64xf32>
    %94 = vector.shape_cast %93 : vector<1x1x64xf32> to vector<1x64xf32>
    %95 = vector.broadcast %94 : vector<1x64xf32> to vector<17x64xf32>
    %96 = arith.addf %92, %95 : vector<17x64xf32>
    %97 = arith.mulf %68, %75 : vector<17x64xf32>
    %cst_78 = arith.constant dense<0.000000e+00> : vector<17x64xf32>
    %98 = tpu.matmul %97, %3, %cst_78 {dimension_numbers = #tpu.dot_dimension_numbers<[1], [0], [0], [1], [0, 0, 1, 1], [], []>} : vector<17x64xf32>, vector<64x64xf32>, vector<17x64xf32> -> vector<17x64xf32>
    %cst_79 = arith.constant 2.500000e-01 : f32
    %99 = vector.broadcast %cst_79 : f32 to vector<17x64xf32>
    %100 = arith.mulf %98, %99 : vector<17x64xf32>
    %101 = arith.mulf %68, %82 : vector<17x64xf32>
    %cst_80 = arith.constant dense<0.000000e+00> : vector<17x64xf32>
    %102 = tpu.matmul %101, %3, %cst_80 {dimension_numbers = #tpu.dot_dimension_numbers<[1], [0], [0], [1], [0, 0, 1, 1], [], []>} : vector<17x64xf32>, vector<64x64xf32>, vector<17x64xf32> -> vector<17x64xf32>
    %cst_81 = arith.constant 2.500000e-01 : f32
    %103 = vector.broadcast %cst_81 : f32 to vector<17x64xf32>
    %104 = arith.mulf %102, %103 : vector<17x64xf32>
    %105 = arith.maximumf %100, %104 : vector<17x64xf32>
    %106 = arith.subf %100, %105 : vector<17x64xf32>
    %107 = math.exp %106 : vector<17x64xf32>
    %108 = arith.subf %104, %105 : vector<17x64xf32>
    %109 = math.exp %108 : vector<17x64xf32>
    %110 = arith.addf %107, %109 : vector<17x64xf32>
    %cst_82 = arith.constant 1.000000e+00 : f32
    %111 = vector.broadcast %cst_82 : f32 to vector<17x64xf32>
    %112 = arith.divf %111, %110 : vector<17x64xf32>
    %113 = arith.mulf %107, %112 : vector<17x64xf32>
    %114 = arith.mulf %113, %89 : vector<17x64xf32>
    %115 = arith.mulf %109, %112 : vector<17x64xf32>
    %116 = arith.mulf %115, %96 : vector<17x64xf32>
    %117 = arith.addf %114, %116 : vector<17x64xf32>
    %c0_83 = arith.constant 0 : index
    %c0_84 = arith.constant 0 : index
    %c0_85 = arith.constant 0 : index
    %118 = vector.load %arg18[%c0_83, %c0_84, %c0_85] : memref<2x64x32xf32, #tpu.memory_space<vmem>>, vector<1x64x32xf32>
    %119 = vector.shape_cast %118 : vector<1x64x32xf32> to vector<64x32xf32>
    %cst_86 = arith.constant dense<0.000000e+00> : vector<17x32xf32>
    %120 = tpu.matmul %117, %119, %cst_86 {dimension_numbers = #tpu.dot_dimension_numbers<[1], [0], [0], [1], [0, 0, 1, 1], [], []>} : vector<17x64xf32>, vector<64x32xf32>, vector<17x32xf32> -> vector<17x32xf32>
    %c0_87 = arith.constant 0 : index
    %c0_88 = arith.constant 0 : index
    %c0_89 = arith.constant 0 : index
    %121 = vector.load %arg19[%c0_87, %c0_88, %c0_89] : memref<2x1x32xf32, #tpu.memory_space<vmem>>, vector<1x1x32xf32>
    %122 = vector.shape_cast %121 : vector<1x1x32xf32> to vector<1x32xf32>
    %123 = vector.broadcast %122 : vector<1x32xf32> to vector<17x32xf32>
    %124 = arith.addf %120, %123 : vector<17x32xf32>
    %cst_90 = arith.constant dense<0.000000e+00> : vector<17x192xf32>
    %125 = tpu.matmul %124, %2, %cst_90 {dimension_numbers = #tpu.dot_dimension_numbers<[1], [0], [0], [1], [0, 0, 1, 1], [], []>} : vector<17x32xf32>, vector<32x192xf32>, vector<17x192xf32> -> vector<17x192xf32>
    %cst_91 = arith.constant dense<0.000000e+00> : vector<17x32xf32>
    %126 = tpu.matmul %1, %124, %cst_91 {dimension_numbers = #tpu.dot_dimension_numbers<[1], [0], [0], [1], [0, 0, 1, 1], [], []>} : vector<17x17xf32>, vector<17x32xf32>, vector<17x32xf32> -> vector<17x32xf32>
    %c1_92 = arith.constant 1 : index
    %c0_93 = arith.constant 0 : index
    %c0_94 = arith.constant 0 : index
    %127 = vector.load %arg9[%c1_92, %c0_93, %c0_94] : memref<2x32x192xf32, #tpu.memory_space<vmem>>, vector<1x32x192xf32>
    %128 = vector.shape_cast %127 : vector<1x32x192xf32> to vector<32x192xf32>
    %cst_95 = arith.constant dense<0.000000e+00> : vector<17x192xf32>
    %129 = tpu.matmul %126, %128, %cst_95 {dimension_numbers = #tpu.dot_dimension_numbers<[1], [0], [0], [1], [0, 0, 1, 1], [], []>} : vector<17x32xf32>, vector<32x192xf32>, vector<17x192xf32> -> vector<17x192xf32>
    %130 = arith.addf %125, %129 : vector<17x192xf32>
    %c1_96 = arith.constant 1 : index
    %c0_97 = arith.constant 0 : index
    %c0_98 = arith.constant 0 : index
    %131 = vector.load %arg11[%c1_96, %c0_97, %c0_98] : memref<2x1x192xf32, #tpu.memory_space<vmem>>, vector<1x1x192xf32>
    %132 = vector.shape_cast %131 : vector<1x1x192xf32> to vector<1x192xf32>
    %133 = vector.broadcast %132 : vector<1x192xf32> to vector<17x192xf32>
    %134 = arith.addf %130, %133 : vector<17x192xf32>
    %cst_99 = arith.constant 0.000000e+00 : f32
    %135 = vector.broadcast %cst_99 : f32 to vector<17x192xf32>
    %136 = arith.maximumf %134, %135 : vector<17x192xf32>
    %cst_100 = arith.constant dense<0.000000e+00> : vector<17x192xf32>
    %137 = tpu.matmul %1, %136, %cst_100 {dimension_numbers = #tpu.dot_dimension_numbers<[1], [0], [0], [1], [0, 0, 1, 1], [], []>} : vector<17x17xf32>, vector<17x192xf32>, vector<17x192xf32> -> vector<17x192xf32>
    %c1_101 = arith.constant 1 : index
    %c0_102 = arith.constant 0 : index
    %c0_103 = arith.constant 0 : index
    %138 = vector.load %arg10[%c1_101, %c0_102, %c0_103] : memref<2x192x192xf32, #tpu.memory_space<vmem>>, vector<1x192x192xf32>
    %139 = vector.shape_cast %138 : vector<1x192x192xf32> to vector<192x192xf32>
    %cst_104 = arith.constant dense<0.000000e+00> : vector<17x192xf32>
    %140 = tpu.matmul %137, %139, %cst_104 {dimension_numbers = #tpu.dot_dimension_numbers<[1], [0], [0], [1], [0, 0, 1, 1], [], []>} : vector<17x192xf32>, vector<192x192xf32>, vector<17x192xf32> -> vector<17x192xf32>
    %141 = arith.addf %125, %140 : vector<17x192xf32>
    %c1_105 = arith.constant 1 : index
    %c0_106 = arith.constant 0 : index
    %c0_107 = arith.constant 0 : index
    %142 = vector.load %arg11[%c1_105, %c0_106, %c0_107] : memref<2x1x192xf32, #tpu.memory_space<vmem>>, vector<1x1x192xf32>
    %143 = vector.shape_cast %142 : vector<1x1x192xf32> to vector<1x192xf32>
    %144 = vector.broadcast %143 : vector<1x192xf32> to vector<17x192xf32>
    %145 = arith.addf %141, %144 : vector<17x192xf32>
    %cst_108 = arith.constant 0.000000e+00 : f32
    %146 = vector.broadcast %cst_108 : f32 to vector<17x192xf32>
    %147 = arith.maximumf %145, %146 : vector<17x192xf32>
    %c1_109 = arith.constant 1 : index
    %c0_110 = arith.constant 0 : index
    %c0_111 = arith.constant 0 : index
    %148 = vector.load %arg12[%c1_109, %c0_110, %c0_111] : memref<2x192x64xf32, #tpu.memory_space<vmem>>, vector<1x192x64xf32>
    %149 = vector.shape_cast %148 : vector<1x192x64xf32> to vector<192x64xf32>
    %cst_112 = arith.constant dense<0.000000e+00> : vector<17x64xf32>
    %150 = tpu.matmul %147, %149, %cst_112 {dimension_numbers = #tpu.dot_dimension_numbers<[1], [0], [0], [1], [0, 0, 1, 1], [], []>} : vector<17x192xf32>, vector<192x64xf32>, vector<17x64xf32> -> vector<17x64xf32>
    %c1_113 = arith.constant 1 : index
    %c0_114 = arith.constant 0 : index
    %c0_115 = arith.constant 0 : index
    %151 = vector.load %arg13[%c1_113, %c0_114, %c0_115] : memref<2x1x64xf32, #tpu.memory_space<vmem>>, vector<1x1x64xf32>
    %152 = vector.shape_cast %151 : vector<1x1x64xf32> to vector<1x64xf32>
    %153 = vector.broadcast %152 : vector<1x64xf32> to vector<17x64xf32>
    %154 = arith.addf %150, %153 : vector<17x64xf32>
    %c2 = arith.constant 2 : index
    %c0_116 = arith.constant 0 : index
    %c0_117 = arith.constant 0 : index
    %155 = vector.load %arg14[%c2, %c0_116, %c0_117] : memref<4x192x64xf32, #tpu.memory_space<vmem>>, vector<1x192x64xf32>
    %156 = vector.shape_cast %155 : vector<1x192x64xf32> to vector<192x64xf32>
    %cst_118 = arith.constant dense<0.000000e+00> : vector<17x64xf32>
    %157 = tpu.matmul %147, %156, %cst_118 {dimension_numbers = #tpu.dot_dimension_numbers<[1], [0], [0], [1], [0, 0, 1, 1], [], []>} : vector<17x192xf32>, vector<192x64xf32>, vector<17x64xf32> -> vector<17x64xf32>
    %c1_119 = arith.constant 1 : index
    %c0_120 = arith.constant 0 : index
    %c0_121 = arith.constant 0 : index
    %158 = vector.load %arg15[%c1_119, %c0_120, %c0_121] : memref<2x1x64xf32, #tpu.memory_space<vmem>>, vector<1x1x64xf32>
    %159 = vector.shape_cast %158 : vector<1x1x64xf32> to vector<1x64xf32>
    %160 = vector.broadcast %159 : vector<1x64xf32> to vector<17x64xf32>
    %161 = arith.addf %157, %160 : vector<17x64xf32>
    %c3 = arith.constant 3 : index
    %c0_122 = arith.constant 0 : index
    %c0_123 = arith.constant 0 : index
    %162 = vector.load %arg14[%c3, %c0_122, %c0_123] : memref<4x192x64xf32, #tpu.memory_space<vmem>>, vector<1x192x64xf32>
    %163 = vector.shape_cast %162 : vector<1x192x64xf32> to vector<192x64xf32>
    %cst_124 = arith.constant dense<0.000000e+00> : vector<17x64xf32>
    %164 = tpu.matmul %147, %163, %cst_124 {dimension_numbers = #tpu.dot_dimension_numbers<[1], [0], [0], [1], [0, 0, 1, 1], [], []>} : vector<17x192xf32>, vector<192x64xf32>, vector<17x64xf32> -> vector<17x64xf32>
    %c1_125 = arith.constant 1 : index
    %c0_126 = arith.constant 0 : index
    %c0_127 = arith.constant 0 : index
    %165 = vector.load %arg15[%c1_125, %c0_126, %c0_127] : memref<2x1x64xf32, #tpu.memory_space<vmem>>, vector<1x1x64xf32>
    %166 = vector.shape_cast %165 : vector<1x1x64xf32> to vector<1x64xf32>
    %167 = vector.broadcast %166 : vector<1x64xf32> to vector<17x64xf32>
    %168 = arith.addf %164, %167 : vector<17x64xf32>
    %c2_128 = arith.constant 2 : index
    %c0_129 = arith.constant 0 : index
    %c0_130 = arith.constant 0 : index
    %169 = vector.load %arg16[%c2_128, %c0_129, %c0_130] : memref<4x192x64xf32, #tpu.memory_space<vmem>>, vector<1x192x64xf32>
    %170 = vector.shape_cast %169 : vector<1x192x64xf32> to vector<192x64xf32>
    %cst_131 = arith.constant dense<0.000000e+00> : vector<17x64xf32>
    %171 = tpu.matmul %147, %170, %cst_131 {dimension_numbers = #tpu.dot_dimension_numbers<[1], [0], [0], [1], [0, 0, 1, 1], [], []>} : vector<17x192xf32>, vector<192x64xf32>, vector<17x64xf32> -> vector<17x64xf32>
    %c1_132 = arith.constant 1 : index
    %c0_133 = arith.constant 0 : index
    %c0_134 = arith.constant 0 : index
    %172 = vector.load %arg17[%c1_132, %c0_133, %c0_134] : memref<2x1x64xf32, #tpu.memory_space<vmem>>, vector<1x1x64xf32>
    %173 = vector.shape_cast %172 : vector<1x1x64xf32> to vector<1x64xf32>
    %174 = vector.broadcast %173 : vector<1x64xf32> to vector<17x64xf32>
    %175 = arith.addf %171, %174 : vector<17x64xf32>
    %c3_135 = arith.constant 3 : index
    %c0_136 = arith.constant 0 : index
    %c0_137 = arith.constant 0 : index
    %176 = vector.load %arg16[%c3_135, %c0_136, %c0_137] : memref<4x192x64xf32, #tpu.memory_space<vmem>>, vector<1x192x64xf32>
    %177 = vector.shape_cast %176 : vector<1x192x64xf32> to vector<192x64xf32>
    %cst_138 = arith.constant dense<0.000000e+00> : vector<17x64xf32>
    %178 = tpu.matmul %147, %177, %cst_138 {dimension_numbers = #tpu.dot_dimension_numbers<[1], [0], [0], [1], [0, 0, 1, 1], [], []>} : vector<17x192xf32>, vector<192x64xf32>, vector<17x64xf32> -> vector<17x64xf32>
    %c1_139 = arith.constant 1 : index
    %c0_140 = arith.constant 0 : index
    %c0_141 = arith.constant 0 : index
    %179 = vector.load %arg17[%c1_139, %c0_140, %c0_141] : memref<2x1x64xf32, #tpu.memory_space<vmem>>, vector<1x1x64xf32>
    %180 = vector.shape_cast %179 : vector<1x1x64xf32> to vector<1x64xf32>
    %181 = vector.broadcast %180 : vector<1x64xf32> to vector<17x64xf32>
    %182 = arith.addf %178, %181 : vector<17x64xf32>
    %183 = arith.mulf %154, %161 : vector<17x64xf32>
    %cst_142 = arith.constant dense<0.000000e+00> : vector<17x64xf32>
    %184 = tpu.matmul %183, %3, %cst_142 {dimension_numbers = #tpu.dot_dimension_numbers<[1], [0], [0], [1], [0, 0, 1, 1], [], []>} : vector<17x64xf32>, vector<64x64xf32>, vector<17x64xf32> -> vector<17x64xf32>
    %cst_143 = arith.constant 2.500000e-01 : f32
    %185 = vector.broadcast %cst_143 : f32 to vector<17x64xf32>
    %186 = arith.mulf %184, %185 : vector<17x64xf32>
    %187 = arith.mulf %154, %168 : vector<17x64xf32>
    %cst_144 = arith.constant dense<0.000000e+00> : vector<17x64xf32>
    %188 = tpu.matmul %187, %3, %cst_144 {dimension_numbers = #tpu.dot_dimension_numbers<[1], [0], [0], [1], [0, 0, 1, 1], [], []>} : vector<17x64xf32>, vector<64x64xf32>, vector<17x64xf32> -> vector<17x64xf32>
    %cst_145 = arith.constant 2.500000e-01 : f32
    %189 = vector.broadcast %cst_145 : f32 to vector<17x64xf32>
    %190 = arith.mulf %188, %189 : vector<17x64xf32>
    %191 = arith.maximumf %186, %190 : vector<17x64xf32>
    %192 = arith.subf %186, %191 : vector<17x64xf32>
    %193 = math.exp %192 : vector<17x64xf32>
    %194 = arith.subf %190, %191 : vector<17x64xf32>
    %195 = math.exp %194 : vector<17x64xf32>
    %196 = arith.addf %193, %195 : vector<17x64xf32>
    %cst_146 = arith.constant 1.000000e+00 : f32
    %197 = vector.broadcast %cst_146 : f32 to vector<17x64xf32>
    %198 = arith.divf %197, %196 : vector<17x64xf32>
    %199 = arith.mulf %193, %198 : vector<17x64xf32>
    %200 = arith.mulf %199, %175 : vector<17x64xf32>
    %201 = arith.mulf %195, %198 : vector<17x64xf32>
    %202 = arith.mulf %201, %182 : vector<17x64xf32>
    %203 = arith.addf %200, %202 : vector<17x64xf32>
    %c1_147 = arith.constant 1 : index
    %c0_148 = arith.constant 0 : index
    %c0_149 = arith.constant 0 : index
    %204 = vector.load %arg18[%c1_147, %c0_148, %c0_149] : memref<2x64x32xf32, #tpu.memory_space<vmem>>, vector<1x64x32xf32>
    %205 = vector.shape_cast %204 : vector<1x64x32xf32> to vector<64x32xf32>
    %cst_150 = arith.constant dense<0.000000e+00> : vector<17x32xf32>
    %206 = tpu.matmul %203, %205, %cst_150 {dimension_numbers = #tpu.dot_dimension_numbers<[1], [0], [0], [1], [0, 0, 1, 1], [], []>} : vector<17x64xf32>, vector<64x32xf32>, vector<17x32xf32> -> vector<17x32xf32>
    %c1_151 = arith.constant 1 : index
    %c0_152 = arith.constant 0 : index
    %c0_153 = arith.constant 0 : index
    %207 = vector.load %arg19[%c1_151, %c0_152, %c0_153] : memref<2x1x32xf32, #tpu.memory_space<vmem>>, vector<1x1x32xf32>
    %208 = vector.shape_cast %207 : vector<1x1x32xf32> to vector<1x32xf32>
    %209 = vector.broadcast %208 : vector<1x32xf32> to vector<17x32xf32>
    %210 = arith.addf %206, %209 : vector<17x32xf32>
    %c0_154 = arith.constant 0 : index
    %c0_155 = arith.constant 0 : index
    %211 = vector.load %arg20[%c0_154, %c0_155] : memref<17x32xf32, #tpu.memory_space<vmem>>, vector<17x32xf32>
    tpu.vector_store %arg20[%c0_154, %c0_155], %210 {strides = array<i32>} : memref<17x32xf32, #tpu.memory_space<vmem>>, vector<17x32xf32>,
    return
  }
  func.func @transform_0(%arg0: i32) -> (i32, i32) {
    %c0_i32 = arith.constant 0 : i32
    %c0_i32_0 = arith.constant 0 : i32
    %c0_i32_1 = arith.constant 0 : i32
    return %c0_i32, %c0_i32_0 : i32, i32
  }
  func.func @transform_1(%arg0: i32) -> (i32, i32) {
    %c0_i32 = arith.constant 0 : i32
    %c0_i32_0 = arith.constant 0 : i32
    %c0_i32_1 = arith.constant 0 : i32
    return %c0_i32, %c0_i32_0 : i32, i32
  }
  func.func @transform_2(%arg0: i32) -> (i32, i32) {
    %c0_i32 = arith.constant 0 : i32
    %c0_i32_0 = arith.constant 0 : i32
    %c0_i32_1 = arith.constant 0 : i32
    return %c0_i32, %c0_i32_0 : i32, i32
  }
  func.func @transform_3(%arg0: i32) -> (i32, i32) {
    %c0_i32 = arith.constant 0 : i32
    %c0_i32_0 = arith.constant 0 : i32
    %c0_i32_1 = arith.constant 0 : i32
    return %c0_i32, %c0_i32_0 : i32, i32
  }
  func.func @transform_4(%arg0: i32) -> (i32, i32, i32) {
    %c0_i32 = arith.constant 0 : i32
    %c0_i32_0 = arith.constant 0 : i32
    %c0_i32_1 = arith.constant 0 : i32
    %c0_i32_2 = arith.constant 0 : i32
    return %c0_i32, %c0_i32_0, %c0_i32_1 : i32, i32, i32
  }
  func.func @transform_5(%arg0: i32) -> (i32, i32, i32) {
    %c0_i32 = arith.constant 0 : i32
    %c0_i32_0 = arith.constant 0 : i32
    %c0_i32_1 = arith.constant 0 : i32
    %c0_i32_2 = arith.constant 0 : i32
    return %c0_i32, %c0_i32_0, %c0_i32_1 : i32, i32, i32
  }
  func.func @transform_6(%arg0: i32) -> (i32, i32, i32) {
    %c0_i32 = arith.constant 0 : i32
    %c0_i32_0 = arith.constant 0 : i32
    %c0_i32_1 = arith.constant 0 : i32
    %c0_i32_2 = arith.constant 0 : i32
    return %c0_i32, %c0_i32_0, %c0_i32_1 : i32, i32, i32
  }
  func.func @transform_7(%arg0: i32) -> (i32, i32, i32) {
    %c0_i32 = arith.constant 0 : i32
    %c0_i32_0 = arith.constant 0 : i32
    %c0_i32_1 = arith.constant 0 : i32
    %c0_i32_2 = arith.constant 0 : i32
    return %c0_i32, %c0_i32_0, %c0_i32_1 : i32, i32, i32
  }
  func.func @transform_8(%arg0: i32) -> (i32, i32, i32) {
    %c0_i32 = arith.constant 0 : i32
    %c0_i32_0 = arith.constant 0 : i32
    %c0_i32_1 = arith.constant 0 : i32
    %c0_i32_2 = arith.constant 0 : i32
    return %c0_i32, %c0_i32_0, %c0_i32_1 : i32, i32, i32
  }
  func.func @transform_9(%arg0: i32) -> (i32, i32, i32) {
    %c0_i32 = arith.constant 0 : i32
    %c0_i32_0 = arith.constant 0 : i32
    %c0_i32_1 = arith.constant 0 : i32
    %c0_i32_2 = arith.constant 0 : i32
    return %c0_i32, %c0_i32_0, %c0_i32_1 : i32, i32, i32
  }
  func.func @transform_10(%arg0: i32) -> (i32, i32, i32) {
    %c0_i32 = arith.constant 0 : i32
    %c0_i32_0 = arith.constant 0 : i32
    %c0_i32_1 = arith.constant 0 : i32
    %c0_i32_2 = arith.constant 0 : i32
    return %c0_i32, %c0_i32_0, %c0_i32_1 : i32, i32, i32
  }
  func.func @transform_11(%arg0: i32) -> (i32, i32, i32) {
    %c0_i32 = arith.constant 0 : i32
    %c0_i32_0 = arith.constant 0 : i32
    %c0_i32_1 = arith.constant 0 : i32
    %c0_i32_2 = arith.constant 0 : i32
    return %c0_i32, %c0_i32_0, %c0_i32_1 : i32, i32, i32
  }
  func.func @transform_12(%arg0: i32) -> (i32, i32, i32) {
    %c0_i32 = arith.constant 0 : i32
    %c0_i32_0 = arith.constant 0 : i32
    %c0_i32_1 = arith.constant 0 : i32
    %c0_i32_2 = arith.constant 0 : i32
    return %c0_i32, %c0_i32_0, %c0_i32_1 : i32, i32, i32
  }
  func.func @transform_13(%arg0: i32) -> (i32, i32, i32) {
    %c0_i32 = arith.constant 0 : i32
    %c0_i32_0 = arith.constant 0 : i32
    %c0_i32_1 = arith.constant 0 : i32
    %c0_i32_2 = arith.constant 0 : i32
    return %c0_i32, %c0_i32_0, %c0_i32_1 : i32, i32, i32
  }
  func.func @transform_14(%arg0: i32) -> (i32, i32, i32) {
    %c0_i32 = arith.constant 0 : i32
    %c0_i32_0 = arith.constant 0 : i32
    %c0_i32_1 = arith.constant 0 : i32
    %c0_i32_2 = arith.constant 0 : i32
    return %c0_i32, %c0_i32_0, %c0_i32_1 : i32, i32, i32
  }
  func.func @transform_15(%arg0: i32) -> (i32, i32, i32) {
    %c0_i32 = arith.constant 0 : i32
    %c0_i32_0 = arith.constant 0 : i32
    %c0_i32_1 = arith.constant 0 : i32
    %c0_i32_2 = arith.constant 0 : i32
    return %c0_i32, %c0_i32_0, %c0_i32_1 : i32, i32, i32
  }
  func.func @transform_16(%arg0: i32) -> (i32, i32, i32) {
    %c0_i32 = arith.constant 0 : i32
    %c0_i32_0 = arith.constant 0 : i32
    %c0_i32_1 = arith.constant 0 : i32
    %c0_i32_2 = arith.constant 0 : i32
    return %c0_i32, %c0_i32_0, %c0_i32_1 : i32, i32, i32
  }
  func.func @transform_17(%arg0: i32) -> (i32, i32, i32) {
    %c0_i32 = arith.constant 0 : i32
    %c0_i32_0 = arith.constant 0 : i32
    %c0_i32_1 = arith.constant 0 : i32
    %c0_i32_2 = arith.constant 0 : i32
    return %c0_i32, %c0_i32_0, %c0_i32_1 : i32, i32, i32
  }
  func.func @transform_18(%arg0: i32) -> (i32, i32, i32) {
    %c0_i32 = arith.constant 0 : i32
    %c0_i32_0 = arith.constant 0 : i32
    %c0_i32_1 = arith.constant 0 : i32
    %c0_i32_2 = arith.constant 0 : i32
    return %c0_i32, %c0_i32_0, %c0_i32_1 : i32, i32, i32
  }
  func.func @transform_19(%arg0: i32) -> (i32, i32) {
    %c0_i32 = arith.constant 0 : i32
    %c0_i32_0 = arith.constant 0 : i32
    %c0_i32_1 = arith.constant 0 : i32
    return %c0_i32, %c0_i32_0 : i32, i32
  }
}

</mosaic_0001>

<bundles_post_ra>
// kernel: pallas_edge_blocks.1
= control target key start
LH: loop header
LB: loop body
LE: loop exit
PB: predicated region body
PF: predicated region fallthrough
CT: control target
= control target key end

     0   :  { %s6075_s0 = inlined_call_operand.vmem [shape: f32[17,40], index: 0, kind: input, shape index: {}]   ;;  %s6076_s1 = inlined_call_operand.vmem [shape: f32[17,17], index: 1, kind: input, shape index: {}]   ;;  %s6077_s2 = inlined_call_operand.vmem [shape: f32[32,192], index: 2, kind: input, shape index: {}]   ;;  %s6078_s3 = inlined_call_operand.vmem [shape: f32[64,64], index: 3, kind: input, shape index: {}]   ;;  %s6079_s4 = inlined_call_operand.vmem [shape: f32[2,40,32], index: 4, kind: input, shape index: {}]   ;;  %s6080_s5 = inlined_call_operand.vmem [shape: f32[2,1,32], index: 5, kind: input, shape index: {}]   ;;  %s6081_s6 = inlined_call_operand.vmem [shape: f32[2,1,32], index: 6, kind: input, shape index: {}]   ;;  %s6082_s7 = inlined_call_operand.vmem [shape: f32[2,1,32], index: 7, kind: input, shape index: {}]   ;;  %s6083_s8 = inlined_call_operand.vmem [shape: f32[2,32,192], index: 8, kind: input, shape index: {}]   ;;  %s6084_s9 = inlined_call_operand.vmem [shape: f32[2,192,192], index: 9, kind: input, shape index: {}]   ;;  %s6085_s10 = inlined_call_operand.vmem [shape: f32[2,1,192], index: 10, kind: input, shape index: {}]   ;;  %s6086_s11 = inlined_call_operand.vmem [shape: f32[2,192,64], index: 11, kind: input, shape index: {}]   ;;  %s6087_s12 = inlined_call_operand.vmem [shape: f32[2,1,64], index: 12, kind: input, shape index: {}]   ;;  %s6088_s13 = inlined_call_operand.vmem [shape: f32[4,192,64], index: 13, kind: input, shape index: {}]   ;;  %s6089_s14 = inlined_call_operand.vmem [shape: f32[2,1,64], index: 14, kind: input, shape index: {}]   ;;  %s6090_s15 = inlined_call_operand.vmem [shape: f32[4,192,64], index: 15, kind: input, shape index: {}]   ;;  %s6091_s16 = inlined_call_operand.vmem [shape: f32[2,1,64], index: 16, kind: input, shape index: {}]   ;;  %s6092_s17 = inlined_call_operand.vmem [shape: f32[2,64,32], index: 17, kind: input, shape index: {}]   ;;  %s6093_s18 = inlined_call_operand.vmem [shape: f32[2,1,32], index: 18, kind: input, shape index: {}]   ;;  %s6094_s19 = inlined_call_operand.hbm [shape: f32[17,32], index: 19, kind: output, shape index: {}]  }
   0x1   :  { %6099 = sst [smem:[#allocation5_spill]] %s6075_s0 }
   0x2   :  { %6100 = sst [smem:[#allocation6_spill]] %s6076_s1 }
   0x3   :  { %6101 = sst [smem:[#allocation7_spill]] %s6077_s2 }
   0x4   :  { %6102 = sst [smem:[#allocation8_spill]] %s6078_s3 }
   0x5   :  { %v89_v0 = vld [vmem:[%s6079_s4 + $0x20] sm:$0xff]  ;;  %v3894_v1 = vmov 0.0   ;;  %v88_v2 = vld [vmem:[%s6079_s4 + $0x18] sm:$0xff]  ;;  %vm3895_vm0 = vmmov 0   ;;  %v87_v3 = vld [vmem:[%s6079_s4 + $0x10] sm:$0xff] }
   0x6   :  { %3599 = vmatprep.subr.mxu0 %v3894_v1  ;;  %3609 = vmatprep.mubr.msk.f32.mxu0 %vm3895_vm0, %v3894_v1 }
   0x7   :  { %3600 = vmatpush3.msra.mxu0 %v89_v0  ;;  %325 = vmatprep.mubr.f32.mxu1 %v3894_v1 }
   0x8   :  { %3601 = vmatprep.subr.mxu0 %v3894_v1 }
   0x9   :  { %24 = vsyncpa [#allocation3], 0  ;;  %3602 = vmatpush3.msra.mxu0 %v88_v2  ;;  %v86_v4 = vld [vmem:[%s6079_s4 + $0x8] sm:$0xff]  ;;  %v85_v5 = vld [vmem:[%s6079_s4] sm:$0xff]  ;;  %s6103_s27 = sld [smem:[#allocation5_spill]]  ;;  %vm97_vm1 = vcmask 326656  }
   0xa   :  { %3603 = vmatprep.subr.mxu0 %v3894_v1  ;;  %v3178_v9 = vld [vmem:[%s6080_s5] ss:$0 sm:$0xff]  ;;  %vm190_vm2 = vcmask 261120   ;;  %vm197_vm3 = vcmask 253952   ;;  %s6104_s1 = sld [smem:[#allocation7_spill]]  ;;  %vm354_vm4 = vcmask 1040384  }
   0xb   :  { %3604 = vmatpush3.msra.mxu0 %v87_v3  ;;  %v3182_v58 = vld [vmem:[%s6081_s6] ss:$0 sm:$0xff]  ;;  %s6105_s23 = sld [smem:[#allocation6_spill]]  ;;  %vm344_vm5 = vcmask 138240   ;;  %vm704_vm6 = vcmask 523264   ;;  %s3896_s29 = smov [#allocation2]  }
   0xc   :  { %3605 = vmatprep.subr.mxu0 %v3894_v1  ;;  %v3183_v60 = vld [vmem:[%s6082_s7] ss:$0 sm:$0xff]  ;;  %s6106_s21 = sld [smem:[#allocation8_spill]]  ;;  %s3167_s4 = sshll.u32 %s3896_s29, 4  ;;  %s3168_s4 = int_to_ptr.vmem [resolvable:$true] %s3167_s4 }
   0xd   :  { %3606 = vmatpush3.msra.mxu0 %v86_v4  ;;  %s3872_s0 = scalar_lea.vmem %s3168_s4, 384  ;;  %p3877_p1 = scmp.lt.s32.totalorder %s3168_s4, %s3168_s4 }
   0xe   :  { %3607 = vmatprep.subr.mxu0 %v3894_v1  ;;  %p3873_p0 = scmp.ne.s32.totalorder %s3168_s4, %s3872_s0  ;;  %p3878_p2 = scmp.lt.s32.totalorder %s3872_s0, %s3872_s0 }
   0xf   :  { %v63_v6 = vld [vmem:[%s6103_s27] sm:$0xff]  ;;  %3608 = vmatpush3.msra.mxu0 %v85_v5  ;;  %v64_v7 = vld [vmem:[%s6103_s27 + $0x8] sm:$0xff]  ;;  %v65_v8 = vld [vmem:[%s6103_s27 + $0x10] sm:$0x1] }
  0x10   :  { %3610 = vmatmul.mubr.msk.f32.vlgmr.msra.gmra.mxu0 %vm97_vm1, %v63_v6  ;;  %v76_v40 = vld [vmem:[%s6104_s1 + $0x38] sm:$0xff]  ;;  %v75_v41 = vld [vmem:[%s6104_s1 + $0x30] sm:$0xff]  ;;  %v74_v42 = vld [vmem:[%s6104_s1 + $0x28] sm:$0xff]  ;;  %p3879_p3 = por %p3878_p2, %p3877_p1 }
  0x11   :  { %3612 = vmatprep.mubr.msk.f32.mxu0 %vm3895_vm0, %v3894_v1  ;;  %285 = vmatprep.subr.mxu1 %v76_v40  ;;  %v73_v43 = vld [vmem:[%s6104_s1 + $0x20] sm:$0xff]  ;;  %v72_v44 = vld [vmem:[%s6104_s1 + $0x18] sm:$0xff]  ;;  %v71_v45 = vld [vmem:[%s6104_s1 + $0x10] sm:$0xff] }
  0x12   :  { %286 = vmatpush1.msra.mxu1 %v75_v41  ;;  %v70_v46 = vld [vmem:[%s6104_s1 + $0x8] sm:$0xff]  ;;  %v69_v47 = vld [vmem:[%s6104_s1] sm:$0xff]  ;;  %v678_v40 = vld [vmem:[%s6084_s9 + $0xb0] sm:$0xff]  ;;  %p3880_p4 = pnand %p3879_p3, %p3873_p0 }
  0x13   :  { %287 = vmatprep.subr.mxu1 %v74_v42  ;;  %v677_v41 = vld [vmem:[%s6084_s9 + $0xa8] sm:$0xff]  ;;  %v676_v42 = vld [vmem:[%s6084_s9 + $0xa0] sm:$0xff] }
  0x14   :  { %3613 = vmatmul.mubr.msk.f32.gmra.mxu0 %vm97_vm1, %v64_v7  ;;  %288 = vmatpush1.msra.mxu1 %v73_v43  ;;  %v675_v43 = vld [vmem:[%s6084_s9 + $0x98] sm:$0xff] }
  0x15   :  { %3615 = vmatprep.mubr.msk.f32.mxu0 %vm3895_vm0, %v3894_v1  ;;  %289 = vmatprep.subr.mxu1 %v72_v44  ;;  %v674_v44 = vld [vmem:[%s6084_s9 + $0x90] sm:$0xff] }
  0x16   :  { %290 = vmatpush1.msra.mxu1 %v71_v45  ;;  %v673_v45 = vld [vmem:[%s6084_s9 + $0x88] sm:$0xff] }
  0x17   :  { %291 = vmatprep.subr.mxu1 %v70_v46  ;;  %v672_v46 = vld [vmem:[%s6084_s9 + $0x80] sm:$0xff] }
  0x18   :  { %3616 = vmatmul.mubr.msk.f32.gmra.mxu0 %vm97_vm1, %v65_v8  ;;  %292 = vmatpush1.msra.mxu1 %v69_v47  ;;  %v4088_v8 = vld [vmem:[%s6105_s23] sm:$0xff]  ;;  %v671_v47 = vld [vmem:[%s6084_s9 + $0x78] sm:$0xff] }
  0x19   :  { %518 = vmatprep.mubr.f32.mxu0 %v3894_v1  ;;  %3618 = vmatprep.subr.mxu1 %v3894_v1 }
  0xd0   :  { %v173_v10 = vpop.f32.mrf.mxu0 }
  0xd1   :  { %v174_v11 = vadd.f32 %v3178_v9, %v173_v10  ;;  %v4107_v10 = vld [vmem:[%s6105_s23 + $0x10] sm:$0x1] }
  0xd2   :  { %v3611_v12 = vpop.f32.mrf.mxu0 }
  0xd3   :  { %v187_v13 = vmax.f32 %v174_v11, 0.0  ;;  %v444_v11 = vld [vmem:[%s6083_s8 + $0x38] sm:$0xff]  ;;  %v443_v12 = vld [vmem:[%s6083_s8 + $0x30] sm:$0xff] }
  0xd4   :  { %v178_v14 = vpop.f32.mrf.mxu0  ;;  %478 = vmatprep.subr.mxu0 %v444_v11  ;;  %v695_v11 = vld [vmem:[%s6084_s9 + $0x138] sm:$0xff] }
  0xd5   :  { %v179_v15 = vadd.f32 %v3178_v9, %v178_v14  ;;  %v191_v16 = vsel %vm190_vm2, %v187_v13, 0.0  ;;  %479 = vmatpush1.msra.mxu0 %v443_v12  ;;  %v441_v14 = vld [vmem:[%s6083_s8 + $0x20] sm:$0xff]  ;;  %v694_v12 = vld [vmem:[%s6084_s9 + $0x130] sm:$0xff] }
  0xd6   :  { %192 = vadd.xlane.f32.xlu0 %v191_v16  ;;  %v3614_v17 = vpop.f32.mrf.mxu0  ;;  %v439_v16 = vld [vmem:[%s6083_s8 + $0x10] sm:$0xff] }
  0xd7   :  { %v188_v18 = vmax.f32 %v179_v15, 0.0  ;;  %v440_v15 = vld [vmem:[%s6083_s8 + $0x18] sm:$0xff]  ;;  %v438_v17 = vld [vmem:[%s6083_s8 + $0x8] sm:$0xff] }
  0xd8   :  { %v183_v19 = vpop.f32.mrf.mxu0 }
  0xd9   :  { %v184_v20 = vadd.f32 %v3178_v9, %v183_v19  ;;  %v194_v21 = vsel %vm190_vm2, %v188_v18, 0.0  ;;  %v4098_v9 = vld [vmem:[%s6105_s23 + $0x8] sm:$0xff] }
  0xda   :  { %195 = vadd.xlane.f32.xlu0 %v194_v21  ;;  %v3617_v22 = vpop.f32.mrf.mxu0 }
  0xdb   :  { %v189_v23 = vmax.f32 %v184_v20, 0.0 }
  0xdd   :  { %v198_v24 = vsel %vm197_vm3, %v189_v23, 0.0 }
  0xde   :  { %199 = vadd.xlane.f32.xlu1 %v198_v24 }
 0x15f   :  { %v193_v25 = vpop.xlane.xlu0 %192 }
 0x160   :  { %v202_v26 = vmul.f32 0.03125, %v193_v25 }
 0x162   :  { %v205_v27 = vsub.f32 %v187_v13, %v202_v26  ;;  %v442_v13 = vld [vmem:[%s6083_s8 + $0x28] sm:$0xff] }
 0x163   :  { %v196_v28 = vpop.xlane.xlu0 %195  ;;  %480 = vmatprep.subr.mxu0 %v442_v13  ;;  %v693_v13 = vld [vmem:[%s6084_s9 + $0x128] sm:$0xff] }
 0x164   :  { %v203_v29 = vmul.f32 0.03125, %v196_v28  ;;  %v208_v30 = vmul.f32 %v205_v27, %v205_v27  ;;  %481 = vmatpush1.msra.mxu0 %v441_v14  ;;  %v692_v14 = vld [vmem:[%s6084_s9 + $0x120] sm:$0xff] }
 0x165   :  { %482 = vmatprep.subr.mxu0 %v440_v15  ;;  %v545_v15 = vlaneseq }
 0x166   :  { %v206_v31 = vsub.f32 %v188_v18, %v203_v29  ;;  %v211_v32 = vsel %vm190_vm2, %v208_v30, 0.0  ;;  %483 = vmatpush1.msra.mxu0 %v439_v16  ;;  %v437_v18 = vld [vmem:[%s6083_s8] sm:$0xff] }
 0x167   :  { %212 = vadd.xlane.f32.xlu1 %v211_v32  ;;  %v200_v33 = vpop.xlane.xlu1 %199  ;;  %484 = vmatprep.subr.mxu0 %v438_v17  ;;  %v686_v32 = vld [vmem:[%s6084_s9 + $0xf0] sm:$0xff]  ;;  %v4285_v17 = vshrl.u32 %v545_v15, 7 }
 0x168   :  { %v204_v34 = vmul.f32 0.03125, %v200_v33  ;;  %v209_v35 = vmul.f32 %v206_v31, %v206_v31  ;;  %485 = vmatpush1.msra.mxu0 %v437_v18  ;;  %v685_v33 = vld [vmem:[%s6084_s9 + $0xe8] sm:$0xff] }
 0x16a   :  { %v207_v36 = vsub.f32 %v189_v23, %v204_v34  ;;  %v214_v37 = vsel %vm190_vm2, %v209_v35, 0.0  ;;  %v684_v34 = vld [vmem:[%s6084_s9 + $0xe0] sm:$0xff]  ;;  %v683_v35 = vld [vmem:[%s6084_s9 + $0xd8] sm:$0xff] }
 0x16b   :  { %215 = vadd.xlane.f32.xlu0 %v214_v37  ;;  %v681_v37 = vld [vmem:[%s6084_s9 + $0xc8] sm:$0xff] }
 0x16c   :  { %v210_v38 = vmul.f32 %v207_v36, %v207_v36 }
 0x16e   :  { %v217_v39 = vsel %vm197_vm3, %v210_v38, 0.0  ;;  %v680_v38 = vld [vmem:[%s6084_s9 + $0xc0] sm:$0xff] }
 0x16f   :  { %218 = vadd.xlane.f32.xlu1 %v217_v39  ;;  %v679_v39 = vld [vmem:[%s6084_s9 + $0xb8] sm:$0xff] }
 0x1f0   :  { %v213_v48 = vpop.xlane.xlu1 %212 }
 0x1f1   :  { %v220_v49 = vmul.f32 0.03125, %v213_v48  ;;  %v670_v48 = vld [vmem:[%s6084_s9 + $0x70] sm:$0xff] }
 0x1f3   :  { %v223_v50 = vadd.f32 1e-05, %v220_v49  ;;  %v669_v49 = vld [vmem:[%s6084_s9 + $0x68] sm:$0xff] }
 0x1f4   :  { %v216_v51 = vpop.xlane.xlu0 %215 }
 0x1f5   :  { %3811 = vrsqrt.f32 %v223_v50  ;;  %v221_v52 = vmul.f32 0.03125, %v216_v51  ;;  %v668_v50 = vld [vmem:[%s6084_s9 + $0x60] sm:$0xff]  ;;  %v667_v51 = vld [vmem:[%s6084_s9 + $0x58] sm:$0xff] }
 0x1f7   :  { %v224_v53 = vadd.f32 1e-05, %v221_v52  ;;  %v666_v52 = vld [vmem:[%s6084_s9 + $0x50] sm:$0xff] }
 0x1f8   :  { %v219_v54 = vpop.xlane.xlu1 %218 }
 0x1f9   :  { %3813 = vrsqrt.f32 %v224_v53  ;;  %v222_v55 = vmul.f32 0.03125, %v219_v54  ;;  %v665_v53 = vld [vmem:[%s6084_s9 + $0x48] sm:$0xff]  ;;  %v664_v54 = vld [vmem:[%s6084_s9 + $0x40] sm:$0xff] }
 0x1fb   :  { %v225_v56 = vadd.f32 1e-05, %v222_v55  ;;  %v663_v55 = vld [vmem:[%s6084_s9 + $0x38] sm:$0xff] }
 0x1fd   :  { %3815 = vrsqrt.f32 %v225_v56  ;;  %v662_v56 = vld [vmem:[%s6084_s9 + $0x30] sm:$0xff] }
 0x202   :  { %v3812_v57 = vpop.eup %3811 }
 0x203   :  { %v229_v59 = vmul.f32 %v3812_v57, %v205_v27  ;;  %v661_v57 = vld [vmem:[%s6084_s9 + $0x28] sm:$0xff] }
 0x205   :  { %v239_v61 = vmul.f32 %v3182_v58, %v229_v59  ;;  %v659_v59 = vld [vmem:[%s6084_s9 + $0x18] sm:$0xff] }
 0x206   :  { %v3814_v62 = vpop.eup %3813 }
 0x207   :  { %v249_v63 = vadd.f32 %v3183_v60, %v239_v61  ;;  %v230_v0 = vmul.f32 %v3814_v62, %v206_v31  ;;  %v687_v31 = vld [vmem:[%s6084_s9 + $0xf8] sm:$0xff]  ;;  %v657_v61 = vld [vmem:[%s6084_s9 + $0x8] sm:$0xff]  ;;  %v656_v62 = vld [vmem:[%s6084_s9] sm:$0xff] }
 0x208   :  { %714 = vmatprep.subr.mxu0 %v687_v31 }
 0x209   :  { %3184 = vmatmul.mubr.msk.f32.vlgmr.msra.gmra.mxu1 %vm190_vm2, %v249_v63  ;;  %v240_v2 = vmul.f32 %v3182_v58, %v230_v0  ;;  %v702_v0 = vld [vmem:[%s6084_s9 + $0x170] sm:$0xff] }
 0x20a   :  { %v3816_v3 = vpop.eup %3815  ;;  %331 = vmatprep.mubr.f32.mxu1 %v3894_v1 }
 0x20b   :  { %v250_v4 = vadd.f32 %v3183_v60, %v240_v2  ;;  %v231_v5 = vmul.f32 %v3816_v3, %v207_v36  ;;  %v682_v36 = vld [vmem:[%s6084_s9 + $0xd0] sm:$0xff]  ;;  %v701_v2 = vld [vmem:[%s6084_s9 + $0x168] sm:$0xff]  ;;  %v700_v3 = vld [vmem:[%s6084_s9 + $0x160] sm:$0xff] }
 0x20d   :  { %3185 = vmatmul.mubr.msk.f32.gmra.mxu1 %vm190_vm2, %v250_v4  ;;  %v241_v6 = vmul.f32 %v3182_v58, %v231_v5  ;;  %v660_v58 = vld [vmem:[%s6084_s9 + $0x20] sm:$0xff]  ;;  %v698_v5 = vld [vmem:[%s6084_s9 + $0x150] sm:$0xff] }
 0x20e   :  { %337 = vmatprep.mubr.f32.mxu1 %v3894_v1 }
 0x20f   :  { %v251_v7 = vadd.f32 %v3183_v60, %v241_v6  ;;  %v658_v60 = vld [vmem:[%s6084_s9 + $0x10] sm:$0xff]  ;;  %v697_v6 = vld [vmem:[%s6084_s9 + $0x148] sm:$0xff] }
 0x211   :  { %3186 = vmatmul.mubr.msk.f32.gmra.mxu1 %vm190_vm2, %v251_v7 }
 0x212   :  { %3619 = vmatpush3.msk.msra.mxu1 %vm354_vm4, %v251_v7  ;;  %3624 = vmatprep.mubr.msk.f32.mxu1 %vm3895_vm0, %v3894_v1  ;;  %v696_v7 = vld [vmem:[%s6084_s9 + $0x140] sm:$0xff] }
 0x213   :  { %3620 = vmatprep.subr.mxu1 %v3894_v1 }
 0x214   :  { %3621 = vmatpush3.msra.mxu1 %v250_v4  ;;  %v699_v4 = vld [vmem:[%s6084_s9 + $0x158] sm:$0xff] }
 0x215   :  { %3622 = vmatprep.subr.mxu1 %v3894_v1 }
 0x216   :  { %3623 = vmatpush3.msra.mxu1 %v249_v63  ;;  %v703_v63 = vld [vmem:[%s6084_s9 + $0x178] sm:$0xff] }
 0x217   :  { %3625 = vmatmul.mubr.msk.f32.vlgmr.msra.gmra.mxu1 %vm344_vm5, %v4088_v8 }
 0x218   :  { %3627 = vmatprep.mubr.msk.f32.mxu1 %vm3895_vm0, %v3894_v1 }
 0x21b   :  { %3628 = vmatmul.mubr.msk.f32.gmra.mxu1 %vm344_vm5, %v4098_v9 }
 0x21c   :  { %3630 = vmatprep.mubr.msk.f32.mxu1 %vm3895_vm0, %v3894_v1 }
 0x21f   :  { %3631 = vmatmul.mubr.msk.f32.gmra.mxu1 %vm344_vm5, %v4107_v10 }
 0x220   :  { %637 = vmatprep.mubr.f32.mxu1 %v3894_v1 }
 0x2c9   :  { %v4136_v19 = vpop.f32.mrf.mxu1 }
 0x2cb   :  { %v4138_v20 = vpop.f32.mrf.mxu1 }
 0x2cd   :  { %v4140_v21 = vpop.f32.mrf.mxu1 }
 0x2cf   :  { %v4142_v22 = vpop.f32.mrf.mxu1 }
 0x2d1   :  { %v4144_v23 = vpop.f32.mrf.mxu1 }
 0x2d3   :  { %v4146_v24 = vpop.f32.mrf.mxu1 }
 0x2d7   :  { %v423_v25 = vpop.f32.mrf.mxu1 }
 0x2d8   :  { %3191 = vmatmul.mubr.msk.f32.vlgmr.msra.gmra.mxu0 %vm190_vm2, %v423_v25 }
 0x2d9   :  { %v3626_v26 = vpop.f32.mrf.mxu1  ;;  %524 = vmatprep.mubr.f32.mxu0 %v3894_v1  ;;  %715 = vmatpush1.msra.mxu0 %v686_v32 }
 0x2da   :  { %716 = vmatprep.subr.mxu0 %v685_v33  ;;  %v547_v26 = vsub.s32 0, %v4285_v17 }
 0x2db   :  { %v428_v27 = vpop.f32.mrf.mxu1  ;;  %717 = vmatpush1.msra.mxu0 %v684_v34 }
 0x2dc   :  { %3192 = vmatmul.mubr.msk.f32.gmra.mxu0 %vm190_vm2, %v428_v27  ;;  %718 = vmatprep.subr.mxu0 %v683_v35 }
 0x2dd   :  { %v3629_v28 = vpop.f32.mrf.mxu1  ;;  %530 = vmatprep.mubr.f32.mxu0 %v3894_v1  ;;  %719 = vmatpush1.msra.mxu0 %v682_v36 }
 0x2de   :  { %720 = vmatprep.subr.mxu0 %v681_v37  ;;  %v543_v28 = vld [vmem:[%s6085_s10] sm:$0x3] }
 0x2df   :  { %v433_v29 = vpop.f32.mrf.mxu1  ;;  %721 = vmatpush1.msra.mxu0 %v680_v38  ;;  %v4296_v33 = vrot.slane %v543_v28, %v547_v26 }
 0x2e0   :  { %3193 = vmatmul.mubr.msk.f32.gmra.mxu0 %vm190_vm2, %v433_v29  ;;  %722 = vmatprep.subr.mxu0 %v679_v39  ;;  %v551_v29 = vsub.s32 1, %v4285_v17 }
 0x2e1   :  { %v3632_v30 = vpop.f32.mrf.mxu1  ;;  %723 = vmatpush1.msra.mxu0 %v678_v40 }
 0x2e2   :  { %724 = vmatprep.subr.mxu0 %v677_v41  ;;  %v4302_v37 = vrot.slane %v543_v28, %v551_v29  ;;  %v947_v28 = vld [vmem:[%s6088_s13 + $0x60] sm:$0xff] }
 0x2e3   :  { %725 = vmatpush1.msra.mxu0 %v676_v42 }
 0x2e4   :  { %726 = vmatprep.subr.mxu0 %v675_v43 }
 0x2e5   :  { %727 = vmatpush1.msra.mxu0 %v674_v44 }
 0x2e6   :  { %728 = vmatprep.subr.mxu0 %v673_v45 }
 0x2e7   :  { %729 = vmatpush1.msra.mxu0 %v672_v46 }
 0x2e8   :  { %730 = vmatprep.subr.mxu0 %v671_v47 }
 0x2e9   :  { %731 = vmatpush1.msra.mxu0 %v670_v48 }
 0x2ea   :  { %732 = vmatprep.subr.mxu0 %v669_v49 }
 0x2eb   :  { %733 = vmatpush1.msra.mxu0 %v668_v50 }
 0x2ec   :  { %734 = vmatprep.subr.mxu0 %v667_v51 }
 0x2ed   :  { %735 = vmatpush1.msra.mxu0 %v666_v52  ;;  %v691_v52 = vld [vmem:[%s6084_s9 + $0x118] sm:$0xff] }
 0x2ee   :  { %736 = vmatprep.subr.mxu0 %v665_v53  ;;  %v689_v53 = vld [vmem:[%s6084_s9 + $0x108] sm:$0xff] }
 0x2ef   :  { %737 = vmatpush1.msra.mxu0 %v664_v54  ;;  %v829_v54 = vld [vmem:[%s6086_s11 + $0x70] sm:$0xff] }
 0x2f0   :  { %738 = vmatprep.subr.mxu0 %v663_v55  ;;  %v828_v55 = vld [vmem:[%s6086_s11 + $0x68] sm:$0xff] }
 0x2f1   :  { %739 = vmatpush1.msra.mxu0 %v662_v56  ;;  %v827_v56 = vld [vmem:[%s6086_s11 + $0x60] sm:$0xff] }
 0x2f2   :  { %740 = vmatprep.subr.mxu0 %v661_v57  ;;  %v826_v57 = vld [vmem:[%s6086_s11 + $0x58] sm:$0xff] }
 0x2f3   :  { %741 = vmatpush1.msra.mxu0 %v660_v58  ;;  %v825_v58 = vld [vmem:[%s6086_s11 + $0x50] sm:$0xff] }
 0x2f4   :  { %742 = vmatprep.subr.mxu0 %v659_v59  ;;  %v824_v59 = vld [vmem:[%s6086_s11 + $0x48] sm:$0xff] }
 0x2f5   :  { %743 = vmatpush1.msra.mxu0 %v658_v60  ;;  %v823_v60 = vld [vmem:[%s6086_s11 + $0x40] sm:$0xff] }
 0x2f6   :  { %744 = vmatprep.subr.mxu0 %v657_v61  ;;  %v822_v61 = vld [vmem:[%s6086_s11 + $0x38] sm:$0xff] }
 0x2f7   :  { %745 = vmatpush1.msra.mxu0 %v656_v62  ;;  %v821_v62 = vld [vmem:[%s6086_s11 + $0x30] sm:$0xff] }
 0x2f8   :  { %762 = vmatprep.subr.mxu0 %v703_v63  ;;  %v820_v63 = vld [vmem:[%s6086_s11 + $0x28] sm:$0xff] }
 0x2f9   :  { %763 = vmatpush2.msra.mxu0 %v702_v0  ;;  %v819_v0 = vld [vmem:[%s6086_s11 + $0x20] sm:$0xff] }
 0x2fa   :  { %764 = vmatprep.subr.mxu0 %v701_v2  ;;  %v818_v2 = vld [vmem:[%s6086_s11 + $0x18] sm:$0xff] }
 0x2fb   :  { %765 = vmatpush2.msra.mxu0 %v700_v3  ;;  %v817_v3 = vld [vmem:[%s6086_s11 + $0x10] sm:$0xff] }
 0x2fc   :  { %766 = vmatprep.subr.mxu0 %v699_v4  ;;  %v816_v4 = vld [vmem:[%s6086_s11 + $0x8] sm:$0xff] }
 0x2fd   :  { %767 = vmatpush2.msra.mxu0 %v698_v5  ;;  %v815_v5 = vld [vmem:[%s6086_s11] sm:$0xff] }
 0x2fe   :  { %768 = vmatprep.subr.mxu0 %v697_v6  ;;  %v838_v6 = vld [vmem:[%s6086_s11 + $0xb8] sm:$0xff] }
 0x2ff   :  { %769 = vmatpush2.msra.mxu0 %v696_v7  ;;  %v837_v7 = vld [vmem:[%s6086_s11 + $0xb0] sm:$0xff] }
 0x300   :  { %770 = vmatprep.subr.mxu0 %v695_v11  ;;  %v836_v11 = vld [vmem:[%s6086_s11 + $0xa8] sm:$0xff] }
 0x301   :  { %771 = vmatpush2.msra.mxu0 %v694_v12 }
 0x302   :  { %772 = vmatprep.subr.mxu0 %v693_v13 }
 0x303   :  { %773 = vmatpush2.msra.mxu0 %v692_v14  ;;  %v950_v14 = vld [vmem:[%s6088_s13 + $0x78] sm:$0xff] }
 0x304   :  { %774 = vmatprep.subr.mxu0 %v691_v52  ;;  %v833_v52 = vld [vmem:[%s6086_s11 + $0x90] sm:$0xff] }
 0x398   :  { %v520_v16 = vpop.f32.mrf.mxu0 }
 0x399   :  { %v537_v39 = vadd.f32 %v520_v16, %v4136_v19  ;;  %v949_v16 = vld [vmem:[%s6088_s13 + $0x70] sm:$0xff] }
 0x39a   :  { %v522_v18 = vpop.f32.mrf.mxu0 }
 0x39b   :  { %v538_v36 = vadd.f32 %v522_v18, %v4138_v20  ;;  %v555_v46 = vadd.f32 %v4296_v33, %v537_v39  ;;  %v940_v39 = vld [vmem:[%s6088_s13 + $0x28] sm:$0xff] }
 0x39c   :  { %v526_v25 = vpop.f32.mrf.mxu0 }
 0x39d   :  { %v539_v34 = vadd.f32 %v526_v25, %v4140_v21  ;;  %v556_v44 = vadd.f32 %v4302_v37, %v538_v36  ;;  %v561_v51 = vmax.f32 %v555_v46, 0.0  ;;  %v948_v25 = vld [vmem:[%s6088_s13 + $0x68] sm:$0xff]  ;;  %v942_v36 = vld [vmem:[%s6088_s13 + $0x38] sm:$0xff]  ;;  %v957_v46 = vld [vmem:[%s6088_s13 + $0xb0] sm:$0xff] }
 0x39e   :  { %v528_v27 = vpop.f32.mrf.mxu0 }
 0x39f   :  { %v540_v31 = vadd.f32 %v528_v27, %v4142_v22  ;;  %v557_v43 = vadd.f32 %v4296_v33, %v539_v34  ;;  %v562_v50 = vmax.f32 %v556_v44, 0.0  ;;  %v944_v34 = vld [vmem:[%s6088_s13 + $0x48] sm:$0xff]  ;;  %v935_v44 = vld [vmem:[%s6088_s13] sm:$0xff] }
 0x3a0   :  { %v532_v30 = vpop.f32.mrf.mxu0 }
 0x3a1   :  { %v541_v32 = vadd.f32 %v532_v30, %v4144_v23  ;;  %v558_v41 = vadd.f32 %v4302_v37, %v540_v31  ;;  %v563_v49 = vmax.f32 %v557_v43, 0.0  ;;  %v946_v31 = vld [vmem:[%s6088_s13 + $0x58] sm:$0xff]  ;;  %v936_v43 = vld [vmem:[%s6088_s13 + $0x8] sm:$0xff] }
 0x3a2   :  { %v534_v35 = vpop.f32.mrf.mxu0 }
 0x3a3   :  { %v542_v38 = vadd.f32 %v534_v35, %v4146_v24  ;;  %v559_v40 = vadd.f32 %v4296_v33, %v541_v32  ;;  %v564_v48 = vmax.f32 %v558_v41, 0.0  ;;  %v945_v32 = vld [vmem:[%s6088_s13 + $0x50] sm:$0xff]  ;;  %v943_v35 = vld [vmem:[%s6088_s13 + $0x40] sm:$0xff]  ;;  %v938_v41 = vld [vmem:[%s6088_s13 + $0x18] sm:$0xff] }
 0x3a5   :  { %v560_v42 = vadd.f32 %v4302_v37, %v542_v38  ;;  %v565_v47 = vmax.f32 %v559_v40, 0.0  ;;  %v941_v38 = vld [vmem:[%s6088_s13 + $0x30] sm:$0xff]  ;;  %v939_v40 = vld [vmem:[%s6088_s13 + $0x20] sm:$0xff] }
 0x3a7   :  { %v566_v45 = vmax.f32 %v560_v42, 0.0  ;;  %v937_v42 = vld [vmem:[%s6088_s13 + $0x10] sm:$0xff] }
 0x3a9   :  { %3194 = vmatprep.subr.msk.mxu1 %vm354_vm4, %v566_v45  ;;  %v958_v45 = vld [vmem:[%s6088_s13 + $0xb8] sm:$0xff] }
 0x3aa   :  { %3195 = vmatpush1.msk.msra.mxu1 %vm354_vm4, %v565_v47  ;;  %v956_v47 = vld [vmem:[%s6088_s13 + $0xa8] sm:$0xff] }
 0x3ab   :  { %601 = vmatprep.subr.mxu1 %v564_v48  ;;  %v835_v48 = vld [vmem:[%s6086_s11 + $0xa0] sm:$0xff] }
 0x3ac   :  { %602 = vmatpush1.msra.mxu1 %v563_v49  ;;  %v955_v49 = vld [vmem:[%s6088_s13 + $0xa0] sm:$0xff] }
 0x3ad   :  { %603 = vmatprep.subr.mxu1 %v562_v50  ;;  %v834_v50 = vld [vmem:[%s6086_s11 + $0x98] sm:$0xff] }
 0x3ae   :  { %604 = vmatpush1.msra.mxu1 %v561_v51  ;;  %v954_v51 = vld [vmem:[%s6088_s13 + $0x98] sm:$0xff] }
 0x3af   :  { %3196 = vmatmul.mubr.msk.f32.vlgmr.msra.gmra.mxu1 %vm344_vm5, %v4088_v8  ;;  %855 = vmatprep.subr.mxu1 %v3894_v1  ;;  %v690_v8 = vld [vmem:[%s6084_s9 + $0x110] sm:$0xff] }
 0x3b0   :  { %643 = vmatprep.mubr.f32.mxu1 %v3894_v1  ;;  %775 = vmatpush2.msra.mxu0 %v690_v8  ;;  %v953_v8 = vld [vmem:[%s6088_s13 + $0x90] sm:$0xff] }
 0x3b1   :  { %776 = vmatprep.subr.mxu0 %v689_v53  ;;  %v832_v53 = vld [vmem:[%s6086_s11 + $0x88] sm:$0xff] }
 0x3b3   :  { %3197 = vmatmul.mubr.msk.f32.gmra.mxu1 %vm344_vm5, %v4098_v9  ;;  %v688_v9 = vld [vmem:[%s6084_s9 + $0x100] sm:$0xff] }
 0x3b4   :  { %649 = vmatprep.mubr.f32.mxu1 %v3894_v1  ;;  %777 = vmatpush2.msra.mxu0 %v688_v9  ;;  %v952_v9 = vld [vmem:[%s6088_s13 + $0x88] sm:$0xff] }
 0x3b5   :  { %966 = vmatprep.subr.mxu0 %v3894_v1 }
 0x3b7   :  { %3198 = vmatmul.mubr.msk.f32.gmra.mxu1 %vm344_vm5, %v4107_v10  ;;  %v830_v10 = vld [vmem:[%s6086_s11 + $0x78] sm:$0xff] }
 0x3b8   :  { %856 = vmatpush1.msra.mxu1 %v830_v10  ;;  %v831_v10 = vld [vmem:[%s6086_s11 + $0x80] sm:$0xff] }
 0x3b9   :  { %857 = vmatprep.subr.mxu1 %v3894_v1 }
 0x3ba   :  { %858 = vmatpush1.msra.mxu1 %v829_v54  ;;  %v951_v54 = vld [vmem:[%s6088_s13 + $0x80] sm:$0xff] }
 0x3bb   :  { %859 = vmatprep.subr.mxu1 %v3894_v1 }
 0x3bc   :  { %860 = vmatpush1.msra.mxu1 %v828_v55 }
 0x3bd   :  { %861 = vmatprep.subr.mxu1 %v3894_v1 }
 0x3be   :  { %862 = vmatpush1.msra.mxu1 %v827_v56 }
 0x3bf   :  { %863 = vmatprep.subr.mxu1 %v3894_v1 }
 0x3c0   :  { %864 = vmatpush1.msra.mxu1 %v826_v57 }
 0x3c1   :  { %865 = vmatprep.subr.mxu1 %v3894_v1 }
 0x3c2   :  { %866 = vmatpush1.msra.mxu1 %v825_v58 }
 0x3c3   :  { %867 = vmatprep.subr.mxu1 %v3894_v1 }
 0x3c4   :  { %868 = vmatpush1.msra.mxu1 %v824_v59 }
 0x3c5   :  { %869 = vmatprep.subr.mxu1 %v3894_v1 }
 0x3c6   :  { %870 = vmatpush1.msra.mxu1 %v823_v60 }
 0x3c7   :  { %871 = vmatprep.subr.mxu1 %v3894_v1 }
 0x3c8   :  { %872 = vmatpush1.msra.mxu1 %v822_v61 }
 0x3c9   :  { %873 = vmatprep.subr.mxu1 %v3894_v1 }
 0x3ca   :  { %874 = vmatpush1.msra.mxu1 %v821_v62 }
 0x3cb   :  { %875 = vmatprep.subr.mxu1 %v3894_v1 }
 0x3cc   :  { %876 = vmatpush1.msra.mxu1 %v820_v63 }
 0x3cd   :  { %877 = vmatprep.subr.mxu1 %v3894_v1 }
 0x3ce   :  { %878 = vmatpush1.msra.mxu1 %v819_v0 }
 0x3cf   :  { %879 = vmatprep.subr.mxu1 %v3894_v1 }
 0x3d0   :  { %880 = vmatpush1.msra.mxu1 %v818_v2 }
 0x3d1   :  { %881 = vmatprep.subr.mxu1 %v3894_v1 }
 0x3d2   :  { %882 = vmatpush1.msra.mxu1 %v817_v3 }
 0x3d3   :  { %883 = vmatprep.subr.mxu1 %v3894_v1 }
 0x3d4   :  { %884 = vmatpush1.msra.mxu1 %v816_v4 }
 0x3d5   :  { %885 = vmatprep.subr.mxu1 %v3894_v1 }
 0x3d6   :  { %886 = vmatpush1.msra.mxu1 %v815_v5 }
 0x3d7   :  { %903 = vmatprep.subr.mxu1 %v3894_v1 }
 0x3d8   :  { %904 = vmatpush2.msra.mxu1 %v838_v6  ;;  %v3224_v6 = vld [vmem:[%s6088_s13 + $0x130] sm:$0xff] }
 0x3d9   :  { %905 = vmatprep.subr.mxu1 %v3894_v1 }
 0x3da   :  { %906 = vmatpush2.msra.mxu1 %v837_v7  ;;  %v1165_v7 = vld [vmem:[%s6090_s15 + $0x70] sm:$0xff] }
 0x3db   :  { %907 = vmatprep.subr.mxu1 %v3894_v1 }
 0x3dc   :  { %908 = vmatpush2.msra.mxu1 %v836_v11 }
 0x3dd   :  { %909 = vmatprep.subr.mxu1 %v3894_v1 }
 0x3de   :  { %910 = vmatpush2.msra.mxu1 %v835_v48  ;;  %v3212_v48 = vld [vmem:[%s6088_s13 + $0xd0] sm:$0xff] }
 0x3df   :  { %911 = vmatprep.subr.mxu1 %v3894_v1 }
 0x3e0   :  { %912 = vmatpush2.msra.mxu1 %v834_v50  ;;  %v3211_v50 = vld [vmem:[%s6088_s13 + $0xc8] sm:$0xff] }
 0x3e1   :  { %913 = vmatprep.subr.mxu1 %v3894_v1 }
 0x3e2   :  { %914 = vmatpush2.msra.mxu1 %v833_v52  ;;  %v3210_v52 = vld [vmem:[%s6088_s13 + $0xc0] sm:$0xff] }
 0x3e3   :  { %915 = vmatprep.subr.mxu1 %v3894_v1 }
 0x3e4   :  { %916 = vmatpush2.msra.mxu1 %v832_v53  ;;  %v3233_v53 = vld [vmem:[%s6088_s13 + $0x178] sm:$0xff] }
 0x3e5   :  { %917 = vmatprep.subr.mxu1 %v3894_v1 }
 0x3e6   :  { %918 = vmatpush2.msra.mxu1 %v831_v10  ;;  %v3232_v10 = vld [vmem:[%s6088_s13 + $0x170] sm:$0xff] }
 0x3e7   :  { %1071 = vmatprep.subr.mxu1 %v3894_v1 }
 0x46f   :  { %v639_v12 = vpop.f32.mrf.mxu1 }
 0x471   :  { %v641_v13 = vpop.f32.mrf.mxu1 }
 0x472   :  { %3199 = vmatprep.mubr.msk.f32.mxu0 %vm704_vm6, %v641_v13 }
 0x473   :  { %v645_v15 = vpop.f32.mrf.mxu1  ;;  %779 = vmatmul.mubr.f32.vlgmr.msra.gmra.mxu0 %v639_v12 }
 0x474   :  { %967 = vmatpush1.msra.mxu0 %v950_v14 }
 0x475   :  { %v647_v18 = vpop.f32.mrf.mxu1  ;;  %968 = vmatprep.subr.mxu0 %v3894_v1 }
 0x476   :  { %3200 = vmatprep.mubr.msk.f32.mxu0 %vm704_vm6, %v647_v18  ;;  %969 = vmatpush1.msra.mxu0 %v949_v16  ;;  %v3222_v18 = vld [vmem:[%s6088_s13 + $0x120] sm:$0xff] }
 0x477   :  { %v651_v27 = vpop.f32.mrf.mxu1  ;;  %785 = vmatmul.mubr.f32.gmra.mxu0 %v645_v15  ;;  %970 = vmatprep.subr.mxu0 %v3894_v1 }
 0x478   :  { %971 = vmatpush1.msra.mxu0 %v948_v25  ;;  %v1163_v25 = vld [vmem:[%s6090_s15 + $0x60] sm:$0xff] }
 0x479   :  { %v653_v30 = vpop.f32.mrf.mxu1  ;;  %972 = vmatprep.subr.mxu0 %v3894_v1 }
 0x47a   :  { %3201 = vmatprep.mubr.msk.f32.mxu0 %vm704_vm6, %v653_v30  ;;  %973 = vmatpush1.msra.mxu0 %v947_v28  ;;  %v1162_v28 = vld [vmem:[%s6090_s15 + $0x58] sm:$0xff]  ;;  %v3220_v30 = vld [vmem:[%s6088_s13 + $0x110] sm:$0xff] }
 0x47b   :  { %791 = vmatmul.mubr.f32.gmra.mxu0 %v651_v27  ;;  %974 = vmatprep.subr.mxu0 %v3894_v1  ;;  %v3221_v27 = vld [vmem:[%s6088_s13 + $0x118] sm:$0xff] }
 0x47c   :  { %975 = vmatpush1.msra.mxu0 %v946_v31  ;;  %v1161_v31 = vld [vmem:[%s6090_s15 + $0x50] sm:$0xff] }
 0x47d   :  { %976 = vmatprep.subr.mxu0 %v3894_v1 }
 0x47e   :  { %977 = vmatpush1.msra.mxu0 %v945_v32  ;;  %v3219_v32 = vld [vmem:[%s6088_s13 + $0x108] sm:$0xff] }
 0x47f   :  { %978 = vmatprep.subr.mxu0 %v3894_v1 }
 0x480   :  { %979 = vmatpush1.msra.mxu0 %v944_v34  ;;  %v1160_v34 = vld [vmem:[%s6090_s15 + $0x48] sm:$0xff] }
 0x481   :  { %980 = vmatprep.subr.mxu0 %v3894_v1 }
 0x482   :  { %981 = vmatpush1.msra.mxu0 %v943_v35  ;;  %v3218_v35 = vld [vmem:[%s6088_s13 + $0x100] sm:$0xff] }
 0x483   :  { %982 = vmatprep.subr.mxu0 %v3894_v1 }
 0x484   :  { %983 = vmatpush1.msra.mxu0 %v942_v36  ;;  %v1159_v36 = vld [vmem:[%s6090_s15 + $0x40] sm:$0xff] }
 0x485   :  { %984 = vmatprep.subr.mxu0 %v3894_v1 }
 0x486   :  { %985 = vmatpush1.msra.mxu0 %v941_v38  ;;  %v3217_v38 = vld [vmem:[%s6088_s13 + $0xf8] sm:$0xff] }
 0x487   :  { %986 = vmatprep.subr.mxu0 %v3894_v1 }
 0x488   :  { %987 = vmatpush1.msra.mxu0 %v940_v39  ;;  %v1158_v39 = vld [vmem:[%s6090_s15 + $0x38] sm:$0xff] }
 0x489   :  { %988 = vmatprep.subr.mxu0 %v3894_v1 }
 0x48a   :  { %989 = vmatpush1.msra.mxu0 %v939_v40  ;;  %v3216_v40 = vld [vmem:[%s6088_s13 + $0xf0] sm:$0xff] }
 0x48b   :  { %990 = vmatprep.subr.mxu0 %v3894_v1 }
 0x48c   :  { %991 = vmatpush1.msra.mxu0 %v938_v41  ;;  %v1157_v41 = vld [vmem:[%s6090_s15 + $0x30] sm:$0xff] }
 0x48d   :  { %992 = vmatprep.subr.mxu0 %v3894_v1 }
 0x48e   :  { %993 = vmatpush1.msra.mxu0 %v937_v42  ;;  %v3215_v42 = vld [vmem:[%s6088_s13 + $0xe8] sm:$0xff] }
 0x48f   :  { %994 = vmatprep.subr.mxu0 %v3894_v1 }
 0x490   :  { %995 = vmatpush1.msra.mxu0 %v936_v43  ;;  %v1156_v43 = vld [vmem:[%s6090_s15 + $0x28] sm:$0xff] }
 0x491   :  { %996 = vmatprep.subr.mxu0 %v3894_v1 }
 0x492   :  { %997 = vmatpush1.msra.mxu0 %v935_v44  ;;  %v3214_v44 = vld [vmem:[%s6088_s13 + $0xe0] sm:$0xff] }
 0x493   :  { %1014 = vmatprep.subr.mxu0 %v3894_v1 }
 0x494   :  { %1015 = vmatpush2.msra.mxu0 %v958_v45  ;;  %v1155_v45 = vld [vmem:[%s6090_s15 + $0x20] sm:$0xff] }
 0x495   :  { %1016 = vmatprep.subr.mxu0 %v3894_v1 }
 0x496   :  { %1017 = vmatpush2.msra.mxu0 %v957_v46  ;;  %v3213_v46 = vld [vmem:[%s6088_s13 + $0xd8] sm:$0xff] }
 0x497   :  { %1018 = vmatprep.subr.mxu0 %v3894_v1 }
 0x498   :  { %1019 = vmatpush2.msra.mxu0 %v956_v47  ;;  %v1154_v47 = vld [vmem:[%s6090_s15 + $0x18] sm:$0xff] }
 0x499   :  { %1020 = vmatprep.subr.mxu0 %v3894_v1 }
 0x49a   :  { %1021 = vmatpush2.msra.mxu0 %v955_v49  ;;  %v1153_v49 = vld [vmem:[%s6090_s15 + $0x10] sm:$0xff] }
 0x49b   :  { %1022 = vmatprep.subr.mxu0 %v3894_v1 }
 0x49c   :  { %1023 = vmatpush2.msra.mxu0 %v954_v51  ;;  %v1152_v51 = vld [vmem:[%s6090_s15 + $0x8] sm:$0xff] }
 0x49d   :  { %1024 = vmatprep.subr.mxu0 %v3894_v1 }
 0x49e   :  { %1025 = vmatpush2.msra.mxu0 %v953_v8  ;;  %v1151_v8 = vld [vmem:[%s6090_s15] sm:$0xff] }
 0x49f   :  { %1026 = vmatprep.subr.mxu0 %v3894_v1 }
 0x4a0   :  { %1027 = vmatpush2.msra.mxu0 %v952_v9  ;;  %v1174_v9 = vld [vmem:[%s6090_s15 + $0xb8] sm:$0xff] }
 0x4a1   :  { %1028 = vmatprep.subr.mxu0 %v3894_v1 }
 0x4a2   :  { %1029 = vmatpush2.msra.mxu0 %v951_v54  ;;  %v1173_v54 = vld [vmem:[%s6090_s15 + $0xb0] sm:$0xff] }
 0x4a3   :  { %1182 = vmatprep.subr.mxu0 %v3894_v1 }
 0x533   :  { %v780_v55 = vpop.f32.mrf.mxu0 }
 0x534   :  { %v797_v56 = vadd.f32 %v780_v55, %v4136_v19  ;;  %v3225_v19 = vld [vmem:[%s6088_s13 + $0x138] sm:$0xff]  ;;  %v3231_v55 = vld [vmem:[%s6088_s13 + $0x168] sm:$0xff] }
 0x535   :  { %v782_v57 = vpop.f32.mrf.mxu0 }
 0x536   :  { %v798_v58 = vadd.f32 %v782_v57, %v4138_v20  ;;  %v803_v59 = vadd.f32 %v797_v56, %v4296_v33  ;;  %v1166_v20 = vld [vmem:[%s6090_s15 + $0x78] sm:$0xff]  ;;  %v1172_v56 = vld [vmem:[%s6090_s15 + $0xa8] sm:$0xff]  ;;  %v3230_v57 = vld [vmem:[%s6088_s13 + $0x160] sm:$0xff] }
 0x537   :  { %v786_v60 = vpop.f32.mrf.mxu0 }
 0x538   :  { %v804_v61 = vadd.f32 %v798_v58, %v4302_v37  ;;  %v799_v62 = vadd.f32 %v786_v60, %v4140_v21  ;;  %v4539_v3 = vmax.f32 %v803_v59, 0.0  ;;  %v1171_v58 = vld [vmem:[%s6090_s15 + $0xa0] sm:$0xff]  ;;  %v3229_v59 = vld [vmem:[%s6088_s13 + $0x158] sm:$0xff] }
 0x539   :  { %v788_v63 = vpop.f32.mrf.mxu0  ;;  %v1170_v60 = vld [vmem:[%s6090_s15 + $0x98] sm:$0xff] }
 0x53a   :  { %v4536_v0 = vmax.f32 %v804_v61, 0.0  ;;  %v800_v2 = vadd.f32 %v788_v63, %v4142_v22  ;;  %v805_v21 = vadd.f32 %v799_v62, %v4296_v33  ;;  %v3228_v61 = vld [vmem:[%s6088_s13 + $0x150] sm:$0xff]  ;;  %v3227_v63 = vld [vmem:[%s6088_s13 + $0x148] sm:$0xff] }
 0x53b   :  { %v792_v4 = vpop.f32.mrf.mxu0  ;;  %v1169_v62 = vld [vmem:[%s6090_s15 + $0x90] sm:$0xff] }
 0x53c   :  { %v806_v5 = vadd.f32 %v800_v2, %v4302_v37  ;;  %3203 = vmatprep.mubr.msk.f32.mxu1 %vm704_vm6, %v4536_v0  ;;  %3207 = vmatprep.mubr.msk.f32.mxu0 %vm704_vm6, %v4536_v0  ;;  %v801_v13 = vadd.f32 %v792_v4, %v4144_v23  ;;  %v4568_v15 = vmax.f32 %v805_v21, 0.0  ;;  %v3223_v23 = vld [vmem:[%s6088_s13 + $0x128] sm:$0xff]  ;;  %v3226_v4 = vld [vmem:[%s6088_s13 + $0x140] sm:$0xff] }
 0x53d   :  { %v794_v22 = vpop.f32.mrf.mxu0  ;;  %920 = vmatmul.mubr.f32.vlgmr.msra.gmra.mxu1 %v4539_v3  ;;  %1031 = vmatmul.mubr.f32.vlgmr.msra.gmra.mxu0 %v4539_v3  ;;  %v1168_v2 = vld [vmem:[%s6090_s15 + $0x88] sm:$0xff] }
 0x53e   :  { %v4561_v11 = vmax.f32 %v806_v5, 0.0  ;;  %v802_v12 = vadd.f32 %v794_v22, %v4146_v24  ;;  %1072 = vmatpush1.msra.mxu1 %v3225_v19  ;;  %1183 = vmatpush1.msra.mxu0 %v1166_v20  ;;  %v1164_v24 = vld [vmem:[%s6090_s15 + $0x68] sm:$0xff]  ;;  %v1167_v19 = vld [vmem:[%s6090_s15 + $0x80] sm:$0xff]  ;;  %v3256_v20 = vld [vmem:[%s6090_s15 + $0x138] sm:$0xff] }
 0x53f   :  { %1073 = vmatprep.subr.mxu1 %v3894_v1  ;;  %1184 = vmatprep.subr.mxu0 %v3894_v1  ;;  %v3255_v5 = vld [vmem:[%s6090_s15 + $0x130] sm:$0xff]  ;;  %v3254_v21 = vld [vmem:[%s6090_s15 + $0x128] sm:$0xff]  ;;  %v4789_v22 = vld [vmem:[%s6106_s21 + $0x38] sm:$0xff] }
 0x540   :  { %v808_v14 = vadd.f32 %v802_v12, %v4302_v37  ;;  %1074 = vmatpush1.msra.mxu1 %v3224_v6  ;;  %1185 = vmatpush1.msra.mxu0 %v1165_v7  ;;  %v807_v37 = vadd.f32 %v801_v13, %v4296_v33  ;;  %v3253_v6 = vld [vmem:[%s6090_s15 + $0x120] sm:$0xff]  ;;  %v3252_v7 = vld [vmem:[%s6090_s15 + $0x118] sm:$0xff]  ;;  %v4810_v12 = vld [vmem:[%s6106_s21 + $0x30] sm:$0xff] }
 0x541   :  { %3204 = vmatprep.mubr.msk.f32.mxu1 %vm704_vm6, %v4561_v11  ;;  %3208 = vmatprep.mubr.msk.f32.mxu0 %vm704_vm6, %v4561_v11  ;;  %v3251_v13 = vld [vmem:[%s6090_s15 + $0x110] sm:$0xff] }
 0x542   :  { %1075 = vmatprep.subr.mxu1 %v3894_v1  ;;  %1186 = vmatprep.subr.mxu0 %v3894_v1  ;;  %v4583_v16 = vmax.f32 %v808_v14, 0.0  ;;  %v4595_v33 = vmax.f32 %v807_v37, 0.0  ;;  %v4822_v14 = vld [vmem:[%s6106_s21 + $0x28] sm:$0xff]  ;;  %v4844_v37 = vld [vmem:[%s6106_s21 + $0x18] sm:$0xff] }
 0x543   :  { %925 = vmatmul.mubr.f32.gmra.mxu1 %v4568_v15  ;;  %1036 = vmatmul.mubr.f32.gmra.mxu0 %v4568_v15 }
 0x544   :  { %1076 = vmatpush1.msra.mxu1 %v3223_v23  ;;  %1187 = vmatpush1.msra.mxu0 %v1164_v24  ;;  %v3250_v23 = vld [vmem:[%s6090_s15 + $0x108] sm:$0xff]  ;;  %v3249_v24 = vld [vmem:[%s6090_s15 + $0x100] sm:$0xff] }
 0x545   :  { %1077 = vmatprep.subr.mxu1 %v3894_v1  ;;  %1188 = vmatprep.subr.mxu0 %v3894_v1 }
 0x546   :  { %1078 = vmatpush1.msra.mxu1 %v3222_v18  ;;  %1189 = vmatpush1.msra.mxu0 %v1163_v25  ;;  %v3248_v18 = vld [vmem:[%s6090_s15 + $0xf8] sm:$0xff]  ;;  %v4855_v25 = vld [vmem:[%s6106_s21 + $0x10] sm:$0xff] }
 0x547   :  { %3205 = vmatprep.mubr.msk.f32.mxu1 %vm704_vm6, %v4583_v16  ;;  %3209 = vmatprep.mubr.msk.f32.mxu0 %vm704_vm6, %v4583_v16 }
 0x548   :  { %1079 = vmatprep.subr.mxu1 %v3894_v1  ;;  %1190 = vmatprep.subr.mxu0 %v3894_v1 }
 0x549   :  { %930 = vmatmul.mubr.f32.gmra.mxu1 %v4595_v33  ;;  %1041 = vmatmul.mubr.f32.gmra.mxu0 %v4595_v33 }
 0x54a   :  { %1080 = vmatpush1.msra.mxu1 %v3221_v27  ;;  %1191 = vmatpush1.msra.mxu0 %v1162_v28  ;;  %v3247_v27 = vld [vmem:[%s6090_s15 + $0xf0] sm:$0xff]  ;;  %v4866_v28 = vld [vmem:[%s6106_s21 + $0x8] sm:$0xff] }
 0x54b   :  { %1081 = vmatprep.subr.mxu1 %v3894_v1  ;;  %3234 = vmatprep.mubr.msk.f32.mxu1 %vm704_vm6, %v4536_v0 }
 0x54c   :  { %1192 = vmatprep.subr.mxu0 %v3894_v1  ;;  %3238 = vmatprep.mubr.msk.f32.mxu0 %vm704_vm6, %v4536_v0 }
 0x54d   :  { %1082 = vmatpush1.msra.mxu1 %v3220_v30  ;;  %1193 = vmatpush1.msra.mxu0 %v1161_v31  ;;  %v3246_v30 = vld [vmem:[%s6090_s15 + $0xe8] sm:$0xff]  ;;  %v4877_v31 = vld [vmem:[%s6106_s21] sm:$0xff] }
 0x54e   :  { %1083 = vmatprep.subr.mxu1 %v3894_v1  ;;  %1194 = vmatprep.subr.mxu0 %v3894_v1 }
 0x54f   :  { %1084 = vmatpush1.msra.mxu1 %v3219_v32  ;;  %1195 = vmatpush1.msra.mxu0 %v1160_v34  ;;  %v3245_v32 = vld [vmem:[%s6090_s15 + $0xe0] sm:$0xff]  ;;  %v3244_v34 = vld [vmem:[%s6090_s15 + $0xd8] sm:$0xff] }
 0x550   :  { %1085 = vmatprep.subr.mxu1 %v3894_v1  ;;  %1196 = vmatprep.subr.mxu0 %v3894_v1 }
 0x551   :  { %1086 = vmatpush1.msra.mxu1 %v3218_v35  ;;  %1197 = vmatpush1.msra.mxu0 %v1159_v36  ;;  %v3243_v35 = vld [vmem:[%s6090_s15 + $0xd0] sm:$0xff]  ;;  %v3242_v36 = vld [vmem:[%s6090_s15 + $0xc8] sm:$0xff] }
 0x552   :  { %1087 = vmatprep.subr.mxu1 %v3894_v1  ;;  %1198 = vmatprep.subr.mxu0 %v3894_v1 }
 0x553   :  { %1088 = vmatpush1.msra.mxu1 %v3217_v38  ;;  %1199 = vmatpush1.msra.mxu0 %v1158_v39  ;;  %v3241_v38 = vld [vmem:[%s6090_s15 + $0xc0] sm:$0xff]  ;;  %v3264_v39 = vld [vmem:[%s6090_s15 + $0x178] sm:$0xff] }
 0x554   :  { %1089 = vmatprep.subr.mxu1 %v3894_v1  ;;  %1200 = vmatprep.subr.mxu0 %v3894_v1 }
 0x555   :  { %1090 = vmatpush1.msra.mxu1 %v3216_v40  ;;  %1201 = vmatpush1.msra.mxu0 %v1157_v41  ;;  %v3263_v40 = vld [vmem:[%s6090_s15 + $0x170] sm:$0xff]  ;;  %v3262_v41 = vld [vmem:[%s6090_s15 + $0x168] sm:$0xff] }
 0x556   :  { %1091 = vmatprep.subr.mxu1 %v3894_v1  ;;  %1202 = vmatprep.subr.mxu0 %v3894_v1 }
 0x557   :  { %1092 = vmatpush1.msra.mxu1 %v3215_v42  ;;  %1203 = vmatpush1.msra.mxu0 %v1156_v43  ;;  %v3261_v42 = vld [vmem:[%s6090_s15 + $0x160] sm:$0xff]  ;;  %v3260_v43 = vld [vmem:[%s6090_s15 + $0x158] sm:$0xff] }
 0x558   :  { %1093 = vmatprep.subr.mxu1 %v3894_v1  ;;  %1204 = vmatprep.subr.mxu0 %v3894_v1 }
 0x559   :  { %1094 = vmatpush1.msra.mxu1 %v3214_v44  ;;  %1205 = vmatpush1.msra.mxu0 %v1155_v45  ;;  %v3259_v44 = vld [vmem:[%s6090_s15 + $0x150] sm:$0xff]  ;;  %v3258_v45 = vld [vmem:[%s6090_s15 + $0x148] sm:$0xff] }
 0x55a   :  { %1095 = vmatprep.subr.mxu1 %v3894_v1  ;;  %1206 = vmatprep.subr.mxu0 %v3894_v1 }
 0x55b   :  { %1096 = vmatpush1.msra.mxu1 %v3213_v46  ;;  %1207 = vmatpush1.msra.mxu0 %v1154_v47  ;;  %v3257_v46 = vld [vmem:[%s6090_s15 + $0x140] sm:$0xff] }
 0x55c   :  { %1097 = vmatprep.subr.mxu1 %v3894_v1  ;;  %1208 = vmatprep.subr.mxu0 %v3894_v1 }
 0x55d   :  { %1098 = vmatpush1.msra.mxu1 %v3212_v48  ;;  %1209 = vmatpush1.msra.mxu0 %v1153_v49 }
 0x55e   :  { %1099 = vmatprep.subr.mxu1 %v3894_v1  ;;  %1210 = vmatprep.subr.mxu0 %v3894_v1 }
 0x55f   :  { %1100 = vmatpush1.msra.mxu1 %v3211_v50  ;;  %1211 = vmatpush1.msra.mxu0 %v1152_v51 }
 0x560   :  { %1101 = vmatprep.subr.mxu1 %v3894_v1  ;;  %1212 = vmatprep.subr.mxu0 %v3894_v1 }
 0x561   :  { %1102 = vmatpush1.msra.mxu1 %v3210_v52  ;;  %1213 = vmatpush1.msra.mxu0 %v1151_v8 }
 0x562   :  { %1119 = vmatprep.subr.mxu1 %v3894_v1  ;;  %1230 = vmatprep.subr.mxu0 %v3894_v1 }
 0x563   :  { %1120 = vmatpush2.msra.mxu1 %v3233_v53  ;;  %1231 = vmatpush2.msra.mxu0 %v1174_v9 }
 0x564   :  { %1121 = vmatprep.subr.mxu1 %v3894_v1  ;;  %1232 = vmatprep.subr.mxu0 %v3894_v1 }
 0x565   :  { %1122 = vmatpush2.msra.mxu1 %v3232_v10  ;;  %1233 = vmatpush2.msra.mxu0 %v1173_v54 }
 0x566   :  { %1123 = vmatprep.subr.mxu1 %v3894_v1  ;;  %1234 = vmatprep.subr.mxu0 %v3894_v1 }
 0x567   :  { %1124 = vmatpush2.msra.mxu1 %v3231_v55  ;;  %1235 = vmatpush2.msra.mxu0 %v1172_v56 }
 0x568   :  { %1125 = vmatprep.subr.mxu1 %v3894_v1  ;;  %1236 = vmatprep.subr.mxu0 %v3894_v1 }
 0x569   :  { %1126 = vmatpush2.msra.mxu1 %v3230_v57  ;;  %1237 = vmatpush2.msra.mxu0 %v1171_v58 }
 0x56a   :  { %1127 = vmatprep.subr.mxu1 %v3894_v1  ;;  %1238 = vmatprep.subr.mxu0 %v3894_v1 }
 0x56b   :  { %1128 = vmatpush2.msra.mxu1 %v3229_v59  ;;  %1239 = vmatpush2.msra.mxu0 %v1170_v60 }
 0x56c   :  { %1129 = vmatprep.subr.mxu1 %v3894_v1  ;;  %1240 = vmatprep.subr.mxu0 %v3894_v1 }
 0x56d   :  { %1130 = vmatpush2.msra.mxu1 %v3228_v61  ;;  %1241 = vmatpush2.msra.mxu0 %v1169_v62 }
 0x56e   :  { %1131 = vmatprep.subr.mxu1 %v3894_v1  ;;  %1242 = vmatprep.subr.mxu0 %v3894_v1 }
 0x56f   :  { %1132 = vmatpush2.msra.mxu1 %v3227_v63  ;;  %1243 = vmatpush2.msra.mxu0 %v1168_v2 }
 0x570   :  { %1133 = vmatprep.subr.mxu1 %v3894_v1  ;;  %1244 = vmatprep.subr.mxu0 %v3894_v1 }
 0x571   :  { %1134 = vmatpush2.msra.mxu1 %v3226_v4  ;;  %1245 = vmatpush2.msra.mxu0 %v1167_v19 }
 0x572   :  { %1136 = vmatmul.mubr.f32.vlgmr.msra.gmra.mxu1 %v4539_v3  ;;  %1247 = vmatmul.mubr.f32.vlgmr.msra.gmra.mxu0 %v4539_v3 }
 0x573   :  { %1287 = vmatprep.subr.mxu1 %v3894_v1  ;;  %3235 = vmatprep.mubr.msk.f32.mxu1 %vm704_vm6, %v4561_v11 }
 0x574   :  { %3239 = vmatprep.mubr.msk.f32.mxu0 %vm704_vm6, %v4561_v11  ;;  %1288 = vmatpush1.msra.mxu1 %v3256_v20 }
 0x575   :  { %1289 = vmatprep.subr.mxu1 %v3894_v1  ;;  %3633 = vmatprep.subr.mxu0 %v3894_v1 }
 0x576   :  { %1290 = vmatpush1.msra.mxu1 %v3255_v5  ;;  %1252 = vmatmul.mubr.f32.gmra.mxu0 %v4568_v15 }
 0x577   :  { %1141 = vmatmul.mubr.f32.gmra.mxu1 %v4568_v15  ;;  %1291 = vmatprep.subr.mxu1 %v3894_v1 }
 0x578   :  { %3236 = vmatprep.mubr.msk.f32.mxu1 %vm704_vm6, %v4583_v16  ;;  %3240 = vmatprep.mubr.msk.f32.mxu0 %vm704_vm6, %v4583_v16 }
 0x579   :  { %1292 = vmatpush1.msra.mxu1 %v3254_v21  ;;  %3634 = vmatpush3.msra.mxu0 %v4789_v22 }
 0x57a   :  { %1293 = vmatprep.subr.mxu1 %v3894_v1  ;;  %1257 = vmatmul.mubr.f32.gmra.mxu0 %v4595_v33 }
 0x57b   :  { %1294 = vmatpush1.msra.mxu1 %v3253_v6  ;;  %3635 = vmatprep.subr.mxu0 %v3894_v1 }
 0x57c   :  { %1146 = vmatmul.mubr.f32.gmra.mxu1 %v4595_v33  ;;  %1295 = vmatprep.subr.mxu1 %v3894_v1 }
 0x57d   :  { %1296 = vmatpush1.msra.mxu1 %v3252_v7  ;;  %3265 = vmatprep.mubr.msk.f32.mxu1 %vm704_vm6, %v4536_v0  ;;  %v4833_v0 = vld [vmem:[%s6106_s21 + $0x20] sm:$0xff] }
 0x57e   :  { %1297 = vmatprep.subr.mxu1 %v3894_v1  ;;  %3636 = vmatpush3.msra.mxu0 %v4810_v12 }
 0x57f   :  { %1298 = vmatpush1.msra.mxu1 %v3251_v13  ;;  %3637 = vmatprep.subr.mxu0 %v3894_v1 }
 0x580   :  { %1299 = vmatprep.subr.mxu1 %v3894_v1  ;;  %3638 = vmatpush3.msra.mxu0 %v4822_v14 }
 0x581   :  { %1300 = vmatpush1.msra.mxu1 %v3250_v23  ;;  %3639 = vmatprep.subr.mxu0 %v3894_v1 }
 0x582   :  { %1301 = vmatprep.subr.mxu1 %v3894_v1  ;;  %3640 = vmatpush3.msra.mxu0 %v4833_v0 }
 0x583   :  { %1302 = vmatpush1.msra.mxu1 %v3249_v24  ;;  %3641 = vmatprep.subr.mxu0 %v3894_v1  ;;  %v5008_v24 = vld [vmem:[%s6104_s1 + $0x20] sm:$0xff] }
 0x584   :  { %1303 = vmatprep.subr.mxu1 %v3894_v1  ;;  %3642 = vmatpush3.msra.mxu0 %v4844_v37 }
 0x585   :  { %1304 = vmatpush1.msra.mxu1 %v3248_v18  ;;  %3643 = vmatprep.subr.mxu0 %v3894_v1 }
 0x586   :  { %1305 = vmatprep.subr.mxu1 %v3894_v1  ;;  %3644 = vmatpush3.msra.mxu0 %v4855_v25 }
 0x587   :  { %1306 = vmatpush1.msra.mxu1 %v3247_v27  ;;  %3645 = vmatprep.subr.mxu0 %v3894_v1 }
 0x588   :  { %1307 = vmatprep.subr.mxu1 %v3894_v1  ;;  %3646 = vmatpush3.msra.mxu0 %v4866_v28 }
 0x589   :  { %1308 = vmatpush1.msra.mxu1 %v3246_v30  ;;  %3647 = vmatprep.subr.mxu0 %v3894_v1 }
 0x58a   :  { %1309 = vmatprep.subr.mxu1 %v3894_v1  ;;  %3648 = vmatpush3.msra.mxu0 %v4877_v31 }
 0x58b   :  { %1310 = vmatpush1.msra.mxu1 %v3245_v32  ;;  %3649 = vmatprep.mubr.msk.f32.mxu0 %vm3895_vm0, %v3894_v1 }
 0x58c   :  { %1311 = vmatprep.subr.mxu1 %v3894_v1  ;;  %3683 = vmatprep.subr.mxu0 %v3894_v1 }
 0x58d   :  { %1312 = vmatpush1.msra.mxu1 %v3244_v34  ;;  %v5035_v34 = vld [vmem:[%s6104_s1] sm:$0xff] }
 0x58e   :  { %1313 = vmatprep.subr.mxu1 %v3894_v1 }
 0x58f   :  { %1314 = vmatpush1.msra.mxu1 %v3243_v35 }
 0x590   :  { %1315 = vmatprep.subr.mxu1 %v3894_v1 }
 0x591   :  { %1316 = vmatpush1.msra.mxu1 %v3242_v36 }
 0x592   :  { %1317 = vmatprep.subr.mxu1 %v3894_v1 }
 0x593   :  { %1318 = vmatpush1.msra.mxu1 %v3241_v38 }
 0x594   :  { %1335 = vmatprep.subr.mxu1 %v3894_v1 }
 0x595   :  { %1336 = vmatpush2.msra.mxu1 %v3264_v39 }
 0x596   :  { %1337 = vmatprep.subr.mxu1 %v3894_v1 }
 0x597   :  { %1338 = vmatpush2.msra.mxu1 %v3263_v40 }
 0x598   :  { %1339 = vmatprep.subr.mxu1 %v3894_v1 }
 0x599   :  { %1340 = vmatpush2.msra.mxu1 %v3262_v41 }
 0x59a   :  { %1341 = vmatprep.subr.mxu1 %v3894_v1 }
 0x59b   :  { %1342 = vmatpush2.msra.mxu1 %v3261_v42  ;;  %v1609_v42 = vld [vmem:[%s6092_s17 + $0x38] sm:$0xff] }
 0x59c   :  { %1343 = vmatprep.subr.mxu1 %v3894_v1 }
 0x59d   :  { %1344 = vmatpush2.msra.mxu1 %v3260_v43  ;;  %v1608_v43 = vld [vmem:[%s6092_s17 + $0x30] sm:$0xff] }
 0x59e   :  { %1345 = vmatprep.subr.mxu1 %v3894_v1 }
 0x59f   :  { %1346 = vmatpush2.msra.mxu1 %v3259_v44  ;;  %v1607_v44 = vld [vmem:[%s6092_s17 + $0x28] sm:$0xff] }
 0x5a0   :  { %1347 = vmatprep.subr.mxu1 %v3894_v1 }
 0x5a1   :  { %1348 = vmatpush2.msra.mxu1 %v3258_v45  ;;  %v1606_v45 = vld [vmem:[%s6092_s17 + $0x20] sm:$0xff] }
 0x5a2   :  { %1349 = vmatprep.subr.mxu1 %v3894_v1 }
 0x5a3   :  { %1350 = vmatpush2.msra.mxu1 %v3257_v46  ;;  %v1605_v46 = vld [vmem:[%s6092_s17 + $0x18] sm:$0xff] }
 0x5a4   :  { %1352 = vmatmul.mubr.f32.vlgmr.msra.gmra.mxu1 %v4539_v3  ;;  %3658 = vmatprep.subr.mxu1 %v3894_v1  ;;  %v4966_v3 = vld [vmem:[%s6104_s1 + $0x38] sm:$0xff] }
 0x5a5   :  { %3266 = vmatprep.mubr.msk.f32.mxu1 %vm704_vm6, %v4561_v11  ;;  %3659 = vmatpush3.msra.mxu1 %v4789_v22  ;;  %v3202_v11 = vld [vmem:[%s6087_s12] ss:$0 sm:$0xff] }
 0x5a6   :  { %3660 = vmatprep.subr.mxu1 %v3894_v1 }
 0x5a7   :  { %3661 = vmatpush3.msra.mxu1 %v4810_v12  ;;  %v4994_v12 = vld [vmem:[%s6104_s1 + $0x30] sm:$0xff] }
 0x5a8   :  { %1357 = vmatmul.mubr.f32.gmra.mxu1 %v4568_v15  ;;  %3662 = vmatprep.subr.mxu1 %v3894_v1  ;;  %v3206_v15 = vld [vmem:[%s6089_s14] ss:$0 sm:$0xff] }
 0x5a9   :  { %3267 = vmatprep.mubr.msk.f32.mxu1 %vm704_vm6, %v4583_v16  ;;  %3663 = vmatpush3.msra.mxu1 %v4822_v14  ;;  %v5000_v14 = vld [vmem:[%s6104_s1 + $0x28] sm:$0xff] }
 0x5aa   :  { %3664 = vmatprep.subr.mxu1 %v3894_v1 }
 0x5ab   :  { %3665 = vmatpush3.msra.mxu1 %v4833_v0 }
 0x5ac   :  { %1362 = vmatmul.mubr.f32.gmra.mxu1 %v4595_v33  ;;  %3666 = vmatprep.subr.mxu1 %v3894_v1 }
 0x5ad   :  { %3667 = vmatpush3.msra.mxu1 %v4844_v37  ;;  %3674 = vmatprep.mubr.msk.f32.mxu1 %vm3895_vm0, %v3894_v1  ;;  %v5014_v37 = vld [vmem:[%s6104_s1 + $0x18] sm:$0xff] }
 0x5ae   :  { %3668 = vmatprep.subr.mxu1 %v3894_v1 }
 0x5af   :  { %3669 = vmatpush3.msra.mxu1 %v4855_v25 }
 0x5b0   :  { %3670 = vmatprep.subr.mxu1 %v3894_v1 }
 0x5b1   :  { %3671 = vmatpush3.msra.mxu1 %v4866_v28  ;;  %v5023_v28 = vld [vmem:[%s6104_s1 + $0x10] sm:$0xff] }
 0x5b2   :  { %3672 = vmatprep.subr.mxu1 %v3894_v1 }
 0x5b3   :  { %3673 = vmatpush3.msra.mxu1 %v4877_v31  ;;  %v5029_v31 = vld [vmem:[%s6104_s1 + $0x8] sm:$0xff] }
 0x5b4   :  { %3798 = vmatprep.subr.mxu1 %v4966_v3 }
 0x5fd   :  { %v921_v16 = vpop.f32.mrf.mxu1  ;;  %v1032_v33 = vpop.f32.mrf.mxu0 }
 0x5fe   :  { %v922_v47 = vadd.f32 %v3202_v11, %v921_v16  ;;  %v1033_v48 = vadd.f32 %v3206_v15, %v1032_v33  ;;  %v1602_v16 = vld [vmem:[%s6092_s17] sm:$0xff] }
 0x5ff   :  { %v923_v49 = vpop.f32.mrf.mxu1  ;;  %v1034_v50 = vpop.f32.mrf.mxu0 }
 0x600   :  { %v1367_v51 = vmul.f32 %v1033_v48, %v922_v47 }
 0x602   :  { %3650 = vmatmul.mubr.msk.f32.vlgmr.msra.gmra.mxu0 %vm704_vm6, %v1367_v51 }
 0x603   :  { %v926_v52 = vpop.f32.mrf.mxu1  ;;  %v1037_v8 = vpop.f32.mrf.mxu0  ;;  %3652 = vmatprep.mubr.msk.f32.mxu0 %vm3895_vm0, %v3894_v1  ;;  %3684 = vmatpush3.msra.mxu0 %v1609_v42 }
 0x604   :  { %v927_v53 = vadd.f32 %v3202_v11, %v926_v52  ;;  %v1038_v9 = vadd.f32 %v3206_v15, %v1037_v8  ;;  %3685 = vmatprep.subr.mxu0 %v3894_v1 }
 0x605   :  { %v928_v10 = vpop.f32.mrf.mxu1  ;;  %v1039_v54 = vpop.f32.mrf.mxu0  ;;  %3686 = vmatpush3.msra.mxu0 %v1608_v43 }
 0x606   :  { %v1368_v55 = vmul.f32 %v1038_v9, %v927_v53  ;;  %3687 = vmatprep.subr.mxu0 %v3894_v1 }
 0x607   :  { %3688 = vmatpush3.msra.mxu0 %v1607_v44 }
 0x608   :  { %3653 = vmatmul.mubr.msk.f32.gmra.mxu0 %vm704_vm6, %v1368_v55  ;;  %3689 = vmatprep.subr.mxu0 %v3894_v1 }
 0x609   :  { %v931_v56 = vpop.f32.mrf.mxu1  ;;  %v1042_v57 = vpop.f32.mrf.mxu0  ;;  %3655 = vmatprep.mubr.msk.f32.mxu0 %vm3895_vm0, %v3894_v1  ;;  %3690 = vmatpush3.msra.mxu0 %v1606_v45  ;;  %v3237_v45 = vld [vmem:[%s6091_s16] ss:$0 sm:$0xff] }
 0x60a   :  { %v932_v58 = vadd.f32 %v3202_v11, %v931_v56  ;;  %v1043_v59 = vadd.f32 %v3206_v15, %v1042_v57  ;;  %3691 = vmatprep.subr.mxu0 %v3894_v1  ;;  %v1604_v11 = vld [vmem:[%s6092_s17 + $0x10] sm:$0xff] }
 0x60b   :  { %v933_v60 = vpop.f32.mrf.mxu1  ;;  %v1044_v61 = vpop.f32.mrf.mxu0  ;;  %3692 = vmatpush3.msra.mxu0 %v1605_v46 }
 0x60c   :  { %v1369_v62 = vmul.f32 %v1043_v59, %v932_v58  ;;  %3693 = vmatprep.subr.mxu0 %v3894_v1 }
 0x60d   :  { %3694 = vmatpush3.msra.mxu0 %v1604_v11 }
 0x60e   :  { %3656 = vmatmul.mubr.msk.f32.gmra.mxu0 %vm704_vm6, %v1369_v62  ;;  %3695 = vmatprep.subr.mxu0 %v3894_v1 }
 0x60f   :  { %3699 = vmatprep.mubr.msk.f32.mxu0 %vm3895_vm0, %v3894_v1 }
 0x632   :  { %v1137_v63 = vpop.f32.mrf.mxu1  ;;  %v4984_v2 = vpop.f32.mrf.mxu0 }
 0x633   :  { %v1138_v4 = vadd.f32 %v3206_v15, %v1137_v63  ;;  %v1249_v11 = vadd.f32 %v3237_v45, %v4984_v2 }
 0x634   :  { %v1139_v19 = vpop.f32.mrf.mxu1  ;;  %v1250_v20 = vpop.f32.mrf.mxu0 }
 0x635   :  { %v1462_v5 = vmul.f32 %v1138_v4, %v922_v47 }
 0x636   :  { %v4986_v21 = vpop.f32.mrf.mxu0 }
 0x637   :  { %v1142_v22 = vpop.f32.mrf.mxu1  ;;  %3675 = vmatmul.mubr.msk.f32.vlgmr.msra.gmra.mxu1 %vm704_vm6, %v1462_v5 }
 0x638   :  { %v1143_v6 = vadd.f32 %v3206_v15, %v1142_v22  ;;  %v1255_v7 = vpop.f32.mrf.mxu0  ;;  %3677 = vmatprep.mubr.msk.f32.mxu1 %vm3895_vm0, %v3894_v1  ;;  %3802 = vmatpush1.msra.mxu1 %v4994_v12 }
 0x639   :  { %v1144_v13 = vpop.f32.mrf.mxu1  ;;  %3799 = vmatprep.subr.mxu1 %v5000_v14 }
 0x63a   :  { %v1463_v23 = vmul.f32 %v1143_v6, %v927_v53  ;;  %v5003_v0 = vpop.f32.mrf.mxu0  ;;  %3803 = vmatpush1.msra.mxu1 %v5008_v24 }
 0x63b   :  { %3800 = vmatprep.subr.mxu1 %v5014_v37 }
 0x63c   :  { %v1147_v18 = vpop.f32.mrf.mxu1  ;;  %3678 = vmatmul.mubr.msk.f32.gmra.mxu1 %vm704_vm6, %v1463_v23  ;;  %v1260_v25 = vpop.f32.mrf.mxu0 }
 0x63d   :  { %v1148_v27 = vadd.f32 %v3206_v15, %v1147_v18  ;;  %3680 = vmatprep.mubr.msk.f32.mxu1 %vm3895_vm0, %v3894_v1  ;;  %3804 = vmatpush1.msra.mxu1 %v5023_v28  ;;  %v1603_v15 = vld [vmem:[%s6092_s17 + $0x8] sm:$0xff] }
 0x63e   :  { %v1149_v30 = vpop.f32.mrf.mxu1  ;;  %3801 = vmatprep.subr.mxu1 %v5029_v31  ;;  %3696 = vmatpush3.msra.mxu0 %v1603_v15 }
 0x63f   :  { %v1464_v32 = vmul.f32 %v1148_v27, %v932_v58  ;;  %3805 = vmatpush1.msra.mxu1 %v5035_v34  ;;  %3697 = vmatprep.subr.mxu0 %v3894_v1 }
 0x640   :  { %3698 = vmatpush3.msra.mxu0 %v1602_v16 }
 0x641   :  { %3681 = vmatmul.mubr.msk.f32.gmra.mxu1 %vm704_vm6, %v1464_v32  ;;  %1739 = vmatprep.subr.mxu0 %v4966_v3 }
 0x642   :  { %1785 = vmatprep.mubr.f32.mxu1 %v3894_v1 }
 0x664   :  { %v5040_v35 = vpop.f32.mrf.mxu1 }
 0x665   :  { %v1354_v15 = vadd.f32 %v3237_v45, %v5040_v35 }
 0x666   :  { %v1355_v36 = vpop.f32.mrf.mxu1 }
 0x668   :  { %v5042_v38 = vpop.f32.mrf.mxu1 }
 0x66a   :  { %v1360_v39 = vpop.f32.mrf.mxu1 }
 0x66c   :  { %v5044_v40 = vpop.f32.mrf.mxu1 }
 0x66e   :  { %v1365_v41 = vpop.f32.mrf.mxu1 }
 0x6c2   :  { %v1445_v33 = vpop.f32.mrf.mxu0 }
 0x6c3   :  { %v1459_v8 = vmul.f32 0.25, %v1445_v33 }
 0x6c4   :  { %v3651_v47 = vpop.f32.mrf.mxu0 }
 0x6c8   :  { %v1450_v48 = vpop.f32.mrf.mxu0 }
 0x6c9   :  { %v1460_v57 = vmul.f32 0.25, %v1450_v48 }
 0x6ca   :  { %v3654_v49 = vpop.f32.mrf.mxu0 }
 0x6ce   :  { %v1455_v50 = vpop.f32.mrf.mxu0 }
 0x6cf   :  { %v1461_v19 = vmul.f32 0.25, %v1455_v50 }
 0x6d0   :  { %v3657_v51 = vpop.f32.mrf.mxu0 }
 0x6d1   :  { %v1254_v51 = vadd.f32 %v3237_v45, %v4986_v21  ;;  %v1259_v21 = vadd.f32 %v3237_v45, %v5003_v0  ;;  %v3274_v0 = vld [vmem:[%s6093_s18] ss:$0 sm:$0xff] }
 0x6f7   :  { %v1540_v52 = vpop.f32.mrf.mxu1 }
 0x6f8   :  { %v1554_v53 = vmul.f32 0.25, %v1540_v52  ;;  %v1359_v52 = vadd.f32 %v3237_v45, %v5042_v38  ;;  %v1364_v38 = vadd.f32 %v3237_v45, %v5044_v40  ;;  %v3327_v45 = vld [vmem:[%s6084_s9 + $0x248] sm:$0xff] }
 0x6f9   :  { %v3676_v9 = vpop.f32.mrf.mxu1 }
 0x6fa   :  { %v1557_v10 = vmax.f32 %v1459_v8, %v1554_v53 }
 0x6fc   :  { %v1560_v54 = vsub.f32 %v1459_v8, %v1557_v10  ;;  %v1569_v55 = vsub.f32 %v1554_v53, %v1557_v10  ;;  %v1545_v56 = vpop.f32.mrf.mxu1 }
 0x6fd   :  { %v1555_v58 = vmul.f32 0.25, %v1545_v56 }
 0x6fe   :  { %v1563_v59 = vmul.f32 1.442695, %v1560_v54  ;;  %v1572_v60 = vmul.f32 1.442695, %v1569_v55  ;;  %v3679_v61 = vpop.f32.mrf.mxu1 }
 0x6ff   :  { %v1558_v3 = vmax.f32 %v1460_v57, %v1555_v58  ;;  %v5128_v61 = vld [vmem:[%s6105_s23 + $0x8] sm:$0xff] }
 0x700   :  { %3817 = vpow2.f32 %v1563_v59 }
 0x701   :  { %3819 = vpow2.f32 %v1572_v60  ;;  %v1561_v62 = vsub.f32 %v1460_v57, %v1558_v3  ;;  %v1570_v63 = vsub.f32 %v1555_v58, %v1558_v3  ;;  %v1550_v4 = vpop.f32.mrf.mxu1  ;;  %v5119_v60 = vld [vmem:[%s6105_s23] sm:$0xff]  ;;  %v5137_v3 = vld [vmem:[%s6105_s23 + $0x10] sm:$0x1] }
 0x702   :  { %v1556_v20 = vmul.f32 0.25, %v1550_v4  ;;  %v3290_v4 = vld [vmem:[%s6083_s8 + $0x68] sm:$0xff] }
 0x703   :  { %v1565_v5 = vmul.f32 1.442695, %v1561_v62  ;;  %v1574_v22 = vmul.f32 1.442695, %v1570_v63  ;;  %v3682_v6 = vpop.f32.mrf.mxu1  ;;  %v3292_v62 = vld [vmem:[%s6083_s8 + $0x78] sm:$0xff]  ;;  %v3291_v63 = vld [vmem:[%s6083_s8 + $0x70] sm:$0xff] }
 0x704   :  { %v1559_v7 = vmax.f32 %v1461_v19, %v1556_v20  ;;  %1922 = vmatprep.subr.mxu1 %v3292_v62  ;;  %v3285_v6 = vld [vmem:[%s6083_s8 + $0x40] sm:$0xff]  ;;  %v3340_v62 = vld [vmem:[%s6084_s9 + $0x2b0] sm:$0xff] }
 0x705   :  { %3821 = vpow2.f32 %v1565_v5  ;;  %v3287_v5 = vld [vmem:[%s6083_s8 + $0x50] sm:$0xff] }
 0x706   :  { %3823 = vpow2.f32 %v1574_v22  ;;  %v1562_v13 = vsub.f32 %v1461_v19, %v1559_v7  ;;  %v1571_v23 = vsub.f32 %v1556_v20, %v1559_v7  ;;  %v3289_v19 = vld [vmem:[%s6083_s8 + $0x60] sm:$0xff]  ;;  %v3288_v20 = vld [vmem:[%s6083_s8 + $0x58] sm:$0xff]  ;;  %v3286_v22 = vld [vmem:[%s6083_s8 + $0x48] sm:$0xff] }
 0x708   :  { %v1567_v18 = vmul.f32 1.442695, %v1562_v13  ;;  %v1576_v25 = vmul.f32 1.442695, %v1571_v23 }
 0x70a   :  { %3825 = vpow2.f32 %v1567_v18 }
 0x70b   :  { %3827 = vpow2.f32 %v1576_v25 }
 0x70d   :  { %v3818_v27 = vpop.eup %3817 }
 0x70e   :  { %v3820_v30 = vpop.eup %3819 }
 0x70f   :  { %v1578_v32 = vadd.f32 %v3820_v30, %v3818_v27 }
 0x711   :  { %3829 = vrcp.f32 %v1578_v32 }
 0x712   :  { %v3822_v36 = vpop.eup %3821 }
 0x713   :  { %v3824_v39 = vpop.eup %3823 }
 0x714   :  { %v1579_v41 = vadd.f32 %v3824_v39, %v3822_v36 }
 0x716   :  { %3831 = vrcp.f32 %v1579_v41  ;;  %v3331_v41 = vld [vmem:[%s6084_s9 + $0x268] sm:$0xff] }
 0x717   :  { %v3826_v42 = vpop.eup %3825 }
 0x718   :  { %v3828_v43 = vpop.eup %3827 }
 0x719   :  { %v1580_v44 = vadd.f32 %v3828_v43, %v3826_v42 }
 0x71b   :  { %3833 = vrcp.f32 %v1580_v44  ;;  %v3328_v44 = vld [vmem:[%s6084_s9 + $0x250] sm:$0xff] }
 0x71e   :  { %v3830_v46 = vpop.eup %3829 }
 0x71f   :  { %v1587_v16 = vmul.f32 %v3830_v46, %v3818_v27  ;;  %v1593_v33 = vmul.f32 %v3830_v46, %v3820_v30  ;;  %v3326_v46 = vld [vmem:[%s6084_s9 + $0x240] sm:$0xff] }
 0x721   :  { %v1590_v47 = vmul.f32 %v1587_v16, %v1249_v11  ;;  %v1596_v48 = vmul.f32 %v1593_v33, %v1354_v15  ;;  %v3325_v11 = vld [vmem:[%s6084_s9 + $0x238] sm:$0xff]  ;;  %v3324_v15 = vld [vmem:[%s6084_s9 + $0x230] sm:$0xff]  ;;  %v3323_v16 = vld [vmem:[%s6084_s9 + $0x228] sm:$0xff] }
 0x722   :  { %v3322_v33 = vld [vmem:[%s6084_s9 + $0x220] sm:$0xff] }
 0x723   :  { %v3832_v49 = vpop.eup %3831  ;;  %v1599_v50 = vadd.f32 %v1596_v48, %v1590_v47  ;;  %v3321_v47 = vld [vmem:[%s6084_s9 + $0x218] sm:$0xff]  ;;  %v3320_v48 = vld [vmem:[%s6084_s9 + $0x210] sm:$0xff] }
 0x724   :  { %v1588_v8 = vmul.f32 %v3832_v49, %v3822_v36  ;;  %v1594_v53 = vmul.f32 %v3832_v49, %v3824_v39  ;;  %v3333_v36 = vld [vmem:[%s6084_s9 + $0x278] sm:$0xff]  ;;  %v3332_v39 = vld [vmem:[%s6084_s9 + $0x270] sm:$0xff]  ;;  %v3319_v49 = vld [vmem:[%s6084_s9 + $0x208] sm:$0xff] }
 0x725   :  { %3700 = vmatmul.mubr.msk.f32.vlgmr.msra.gmra.mxu0 %vm704_vm6, %v1599_v50  ;;  %v3318_v50 = vld [vmem:[%s6084_s9 + $0x200] sm:$0xff] }
 0x726   :  { %3702 = vmatprep.mubr.msk.f32.mxu0 %vm3895_vm0, %v3894_v1  ;;  %v1591_v2 = vmul.f32 %v1588_v8, %v1254_v51  ;;  %v1597_v9 = vmul.f32 %v1594_v53, %v1359_v52  ;;  %1740 = vmatpush1.msra.mxu0 %v4994_v12  ;;  %v3317_v51 = vld [vmem:[%s6084_s9 + $0x1f8] sm:$0xff]  ;;  %v3316_v52 = vld [vmem:[%s6084_s9 + $0x1f0] sm:$0xff]  ;;  %v3315_v8 = vld [vmem:[%s6084_s9 + $0x1e8] sm:$0xff] }
 0x727   :  { %1741 = vmatprep.subr.mxu0 %v5000_v14  ;;  %v3314_v53 = vld [vmem:[%s6084_s9 + $0x1e0] sm:$0xff] }
 0x728   :  { %v3834_v35 = vpop.eup %3833  ;;  %v1600_v10 = vadd.f32 %v1597_v9, %v1591_v2  ;;  %1742 = vmatpush1.msra.mxu0 %v5008_v24  ;;  %v3313_v2 = vld [vmem:[%s6084_s9 + $0x1d8] sm:$0xff]  ;;  %v3312_v9 = vld [vmem:[%s6084_s9 + $0x1d0] sm:$0xff] }
 0x729   :  { %v1589_v54 = vmul.f32 %v3834_v35, %v3826_v42  ;;  %v1595_v55 = vmul.f32 %v3834_v35, %v3828_v43  ;;  %1743 = vmatprep.subr.mxu0 %v5014_v37  ;;  %v3330_v42 = vld [vmem:[%s6084_s9 + $0x260] sm:$0xff]  ;;  %v3329_v43 = vld [vmem:[%s6084_s9 + $0x258] sm:$0xff]  ;;  %v3311_v35 = vld [vmem:[%s6084_s9 + $0x1c8] sm:$0xff] }
 0x72a   :  { %3703 = vmatmul.mubr.msk.f32.gmra.mxu0 %vm704_vm6, %v1600_v10  ;;  %v3310_v10 = vld [vmem:[%s6084_s9 + $0x1c0] sm:$0xff] }
 0x72b   :  { %3705 = vmatprep.mubr.msk.f32.mxu0 %vm3895_vm0, %v3894_v1  ;;  %v1592_v12 = vmul.f32 %v1589_v54, %v1259_v21  ;;  %v1598_v56 = vmul.f32 %v1595_v55, %v1364_v38  ;;  %1744 = vmatpush1.msra.mxu0 %v5023_v28  ;;  %v3309_v21 = vld [vmem:[%s6084_s9 + $0x1b8] sm:$0xff]  ;;  %v3308_v38 = vld [vmem:[%s6084_s9 + $0x1b0] sm:$0xff]  ;;  %v3307_v54 = vld [vmem:[%s6084_s9 + $0x1a8] sm:$0xff] }
 0x72c   :  { %1745 = vmatprep.subr.mxu0 %v5029_v31  ;;  %v3306_v55 = vld [vmem:[%s6084_s9 + $0x1a0] sm:$0xff] }
 0x72d   :  { %v1601_v14 = vadd.f32 %v1598_v56, %v1592_v12  ;;  %1746 = vmatpush1.msra.mxu0 %v5035_v34  ;;  %v3305_v12 = vld [vmem:[%s6084_s9 + $0x198] sm:$0xff]  ;;  %v3304_v56 = vld [vmem:[%s6084_s9 + $0x190] sm:$0xff] }
 0x72e   :  { %3708 = vmatprep.subr.mxu0 %v3894_v1 }
 0x72f   :  { %3706 = vmatmul.mubr.msk.f32.gmra.mxu0 %vm704_vm6, %v1601_v14  ;;  %v3303_v14 = vld [vmem:[%s6084_s9 + $0x188] sm:$0xff] }
 0x730   :  { %1779 = vmatprep.mubr.f32.mxu0 %v3894_v1 }
 0x7e5   :  { %v1692_v24 = vpop.f32.mrf.mxu0 }
 0x7e6   :  { %v1693_v37 = vadd.f32 %v3274_v0, %v1692_v24  ;;  %v3349_v24 = vld [vmem:[%s6084_s9 + $0x2f8] sm:$0xff] }
 0x7e7   :  { %v3701_v40 = vpop.f32.mrf.mxu0 }
 0x7e8   :  { %3278 = vmatmul.mubr.msk.f32.vlgmr.msra.gmra.mxu0 %vm190_vm2, %v1693_v37  ;;  %v3347_v40 = vld [vmem:[%s6084_s9 + $0x2e8] sm:$0xff] }
 0x7e9   :  { %3714 = vmatprep.mubr.msk.f32.mxu0 %vm3895_vm0, %v3894_v1 }
 0x7ea   :  { %v1697_v28 = vpop.f32.mrf.mxu0 }
 0x7eb   :  { %v1698_v31 = vadd.f32 %v3274_v0, %v1697_v28  ;;  %v3346_v28 = vld [vmem:[%s6084_s9 + $0x2e0] sm:$0xff] }
 0x7ec   :  { %v3704_v34 = vpop.f32.mrf.mxu0 }
 0x7ed   :  { %3279 = vmatmul.mubr.msk.f32.vlgmr.msra.gmra.mxu1 %vm190_vm2, %v1698_v31  ;;  %v3344_v34 = vld [vmem:[%s6084_s9 + $0x2d0] sm:$0xff] }
 0x7ee   :  { %1791 = vmatprep.mubr.f32.mxu1 %v3894_v1  ;;  %1923 = vmatpush1.msra.mxu1 %v3291_v63  ;;  %v3339_v63 = vld [vmem:[%s6084_s9 + $0x2a8] sm:$0xff] }
 0x7ef   :  { %v1702_v57 = vpop.f32.mrf.mxu0  ;;  %1924 = vmatprep.subr.mxu1 %v3290_v4  ;;  %v3338_v4 = vld [vmem:[%s6084_s9 + $0x2a0] sm:$0xff] }
 0x7f0   :  { %v1703_v58 = vadd.f32 %v3274_v0, %v1702_v57  ;;  %1925 = vmatpush1.msra.mxu1 %v3289_v19  ;;  %v3302_v0 = vld [vmem:[%s6084_s9 + $0x180] sm:$0xff]  ;;  %v3343_v57 = vld [vmem:[%s6084_s9 + $0x2c8] sm:$0xff] }
 0x7f1   :  { %v3707_v59 = vpop.f32.mrf.mxu0  ;;  %1926 = vmatprep.subr.mxu1 %v3288_v20 }
 0x7f2   :  { %3280 = vmatmul.mubr.msk.f32.gmra.mxu1 %vm190_vm2, %v1703_v58  ;;  %3709 = vmatpush3.msk.msra.mxu0 %vm354_vm4, %v1703_v58  ;;  %v3342_v58 = vld [vmem:[%s6084_s9 + $0x2c0] sm:$0xff]  ;;  %v3341_v59 = vld [vmem:[%s6084_s9 + $0x2b8] sm:$0xff] }
 0x7f3   :  { %3710 = vmatprep.subr.mxu0 %v3894_v1  ;;  %1962 = vmatprep.mubr.f32.mxu1 %v3894_v1 }
 0x7f4   :  { %3711 = vmatpush3.msra.mxu0 %v1698_v31  ;;  %1927 = vmatpush1.msra.mxu1 %v3287_v5  ;;  %v3345_v31 = vld [vmem:[%s6084_s9 + $0x2d8] sm:$0xff] }
 0x7f5   :  { %3712 = vmatprep.subr.mxu0 %v3894_v1  ;;  %1928 = vmatprep.subr.mxu1 %v3286_v22 }
 0x7f6   :  { %3713 = vmatpush3.msra.mxu0 %v1693_v37  ;;  %1929 = vmatpush1.msra.mxu1 %v3285_v6  ;;  %v3348_v37 = vld [vmem:[%s6084_s9 + $0x2f0] sm:$0xff] }
 0x7f7   :  { %3715 = vmatmul.mubr.msk.f32.vlgmr.msra.gmra.mxu0 %vm344_vm5, %v5119_v60  ;;  %2159 = vmatprep.subr.mxu1 %v3333_v36 }
 0x7f8   :  { %3717 = vmatprep.mubr.msk.f32.mxu0 %vm3895_vm0, %v3894_v1 }
 0x7fb   :  { %3718 = vmatmul.mubr.msk.f32.gmra.mxu0 %vm344_vm5, %v5128_v61 }
 0x7fc   :  { %3720 = vmatprep.mubr.msk.f32.mxu0 %vm3895_vm0, %v3894_v1 }
 0x7ff   :  { %3721 = vmatmul.mubr.msk.f32.gmra.mxu0 %vm344_vm5, %v5137_v3 }
 0x800   :  { %2082 = vmatprep.mubr.f32.mxu0 %v3894_v1 }
 0x8a8   :  { %v5166_v7 = vpop.f32.mrf.mxu0 }
 0x8aa   :  { %v5168_v13 = vpop.f32.mrf.mxu0 }
 0x8ad   :  { %v5307_v19 = vpop.f32.mrf.mxu1 }
 0x8af   :  { %v5309_v20 = vpop.f32.mrf.mxu1 }
 0x8b2   :  { %v5311_v5 = vpop.f32.mrf.mxu1 }
 0x8b4   :  { %v5313_v22 = vpop.f32.mrf.mxu1 }
 0x8b7   :  { %v1866_v23 = vpop.f32.mrf.mxu0 }
 0x8b8   :  { %3293 = vmatmul.mubr.msk.f32.vlgmr.msra.gmra.mxu1 %vm190_vm2, %v1866_v23 }
 0x8b9   :  { %v3716_v18 = vpop.f32.mrf.mxu0  ;;  %1968 = vmatprep.mubr.f32.mxu1 %v3894_v1  ;;  %2160 = vmatpush1.msra.mxu1 %v3332_v39 }
 0x8ba   :  { %2161 = vmatprep.subr.mxu1 %v3331_v41 }
 0x8bb   :  { %v1871_v25 = vpop.f32.mrf.mxu0  ;;  %2162 = vmatpush1.msra.mxu1 %v3330_v42 }
 0x8bc   :  { %3294 = vmatmul.mubr.msk.f32.gmra.mxu1 %vm190_vm2, %v1871_v25  ;;  %2163 = vmatprep.subr.mxu1 %v3329_v43 }
 0x8bd   :  { %v3719_v27 = vpop.f32.mrf.mxu0  ;;  %1974 = vmatprep.mubr.f32.mxu1 %v3894_v1  ;;  %2164 = vmatpush1.msra.mxu1 %v3328_v44 }
 0x8be   :  { %2165 = vmatprep.subr.mxu1 %v3327_v45  ;;  %v3296_v27 = vld [vmem:[%s6085_s10 + $0x2] sm:$0x3] }
 0x8bf   :  { %v1876_v30 = vpop.f32.mrf.mxu0  ;;  %2166 = vmatpush1.msra.mxu1 %v3326_v46  ;;  %v5322_v39 = vrot.slane %v3296_v27, %v547_v26  ;;  %v5328_v44 = vrot.slane %v3296_v27, %v551_v29  ;;  %v3392_v27 = vld [vmem:[%s6088_s13 + $0x1d0] sm:$0xff] }
 0x8c0   :  { %3295 = vmatmul.mubr.msk.f32.gmra.mxu1 %vm190_vm2, %v1876_v30  ;;  %2167 = vmatprep.subr.mxu1 %v3325_v11 }
 0x8c1   :  { %v3722_v32 = vpop.f32.mrf.mxu0  ;;  %2168 = vmatpush1.msra.mxu1 %v3324_v15 }
 0x8c2   :  { %2169 = vmatprep.subr.mxu1 %v3323_v16 }
 0x8c3   :  { %2170 = vmatpush1.msra.mxu1 %v3322_v33 }
 0x8c4   :  { %2171 = vmatprep.subr.mxu1 %v3321_v47 }
 0x8c5   :  { %2172 = vmatpush1.msra.mxu1 %v3320_v48 }
 0x8c6   :  { %2173 = vmatprep.subr.mxu1 %v3319_v49 }
 0x8c7   :  { %2174 = vmatpush1.msra.mxu1 %v3318_v50 }
 0x8c8   :  { %2175 = vmatprep.subr.mxu1 %v3317_v51 }
 0x8c9   :  { %2176 = vmatpush1.msra.mxu1 %v3316_v52  ;;  %v3337_v52 = vld [vmem:[%s6084_s9 + $0x298] sm:$0xff] }
 0x8ca   :  { %2177 = vmatprep.subr.mxu1 %v3315_v8  ;;  %v3335_v8 = vld [vmem:[%s6084_s9 + $0x288] sm:$0xff] }
 0x8cb   :  { %2178 = vmatpush1.msra.mxu1 %v3314_v53  ;;  %v3367_v53 = vld [vmem:[%s6086_s11 + $0x130] sm:$0xff] }
 0x8cc   :  { %2179 = vmatprep.subr.mxu1 %v3313_v2  ;;  %v3366_v2 = vld [vmem:[%s6086_s11 + $0x128] sm:$0xff] }
 0x8cd   :  { %2180 = vmatpush1.msra.mxu1 %v3312_v9  ;;  %v3365_v9 = vld [vmem:[%s6086_s11 + $0x120] sm:$0xff] }
 0x8ce   :  { %2181 = vmatprep.subr.mxu1 %v3311_v35  ;;  %v3364_v35 = vld [vmem:[%s6086_s11 + $0x118] sm:$0xff] }
 0x8cf   :  { %2182 = vmatpush1.msra.mxu1 %v3310_v10  ;;  %v3363_v10 = vld [vmem:[%s6086_s11 + $0x110] sm:$0xff] }
 0x8d0   :  { %2183 = vmatprep.subr.mxu1 %v3309_v21  ;;  %v3362_v21 = vld [vmem:[%s6086_s11 + $0x108] sm:$0xff] }
 0x8d1   :  { %2184 = vmatpush1.msra.mxu1 %v3308_v38  ;;  %v3361_v38 = vld [vmem:[%s6086_s11 + $0x100] sm:$0xff] }
 0x8d2   :  { %2185 = vmatprep.subr.mxu1 %v3307_v54  ;;  %v3360_v54 = vld [vmem:[%s6086_s11 + $0xf8] sm:$0xff] }
 0x8d3   :  { %2186 = vmatpush1.msra.mxu1 %v3306_v55  ;;  %v3359_v55 = vld [vmem:[%s6086_s11 + $0xf0] sm:$0xff] }
 0x8d4   :  { %2187 = vmatprep.subr.mxu1 %v3305_v12  ;;  %v3358_v12 = vld [vmem:[%s6086_s11 + $0xe8] sm:$0xff] }
 0x8d5   :  { %2188 = vmatpush1.msra.mxu1 %v3304_v56  ;;  %v3357_v56 = vld [vmem:[%s6086_s11 + $0xe0] sm:$0xff] }
 0x8d6   :  { %2189 = vmatprep.subr.mxu1 %v3303_v14  ;;  %v3356_v14 = vld [vmem:[%s6086_s11 + $0xd8] sm:$0xff] }
 0x8d7   :  { %2190 = vmatpush1.msra.mxu1 %v3302_v0  ;;  %v3355_v0 = vld [vmem:[%s6086_s11 + $0xd0] sm:$0xff] }
 0x8d8   :  { %2207 = vmatprep.subr.mxu1 %v3349_v24  ;;  %v3354_v24 = vld [vmem:[%s6086_s11 + $0xc8] sm:$0xff] }
 0x8d9   :  { %2208 = vmatpush2.msra.mxu1 %v3348_v37  ;;  %v3353_v37 = vld [vmem:[%s6086_s11 + $0xc0] sm:$0xff] }
 0x8da   :  { %2209 = vmatprep.subr.mxu1 %v3347_v40  ;;  %v3376_v40 = vld [vmem:[%s6086_s11 + $0x178] sm:$0xff] }
 0x8db   :  { %2210 = vmatpush2.msra.mxu1 %v3346_v28  ;;  %v3375_v28 = vld [vmem:[%s6086_s11 + $0x170] sm:$0xff] }
 0x8dc   :  { %2211 = vmatprep.subr.mxu1 %v3345_v31  ;;  %v3374_v31 = vld [vmem:[%s6086_s11 + $0x168] sm:$0xff] }
 0x8dd   :  { %2212 = vmatpush2.msra.mxu1 %v3344_v34 }
 0x8de   :  { %2213 = vmatprep.subr.mxu1 %v3343_v57 }
 0x8df   :  { %2214 = vmatpush2.msra.mxu1 %v3342_v58  ;;  %v3397_v58 = vld [vmem:[%s6088_s13 + $0x1f8] sm:$0xff] }
 0x8e0   :  { %2215 = vmatprep.subr.mxu1 %v3341_v59 }
 0x8e1   :  { %2216 = vmatpush2.msra.mxu1 %v3340_v62  ;;  %v3396_v62 = vld [vmem:[%s6088_s13 + $0x1f0] sm:$0xff] }
 0x8e2   :  { %2217 = vmatprep.subr.mxu1 %v3339_v63 }
 0x8e3   :  { %2218 = vmatpush2.msra.mxu1 %v3338_v4  ;;  %v3395_v4 = vld [vmem:[%s6088_s13 + $0x1e8] sm:$0xff] }
 0x8e4   :  { %2219 = vmatprep.subr.mxu1 %v3337_v52  ;;  %v3399_v52 = vld [vmem:[%s6088_s13 + $0x208] sm:$0xff] }
 0x978   :  { %v1964_v6 = vpop.f32.mrf.mxu1 }
 0x979   :  { %v1981_v46 = vadd.f32 %v1964_v6, %v5166_v7 }
 0x97a   :  { %v1966_v23 = vpop.f32.mrf.mxu1 }
 0x97b   :  { %v1982_v43 = vadd.f32 %v1966_v23, %v5168_v13  ;;  %v2000_v48 = vadd.f32 %v5322_v39, %v1981_v46  ;;  %v3394_v23 = vld [vmem:[%s6088_s13 + $0x1e0] sm:$0xff]  ;;  %v3384_v46 = vld [vmem:[%s6088_s13 + $0x190] sm:$0xff] }
 0x97c   :  { %v1970_v18 = vpop.f32.mrf.mxu1 }
 0x97d   :  { %v1983_v41 = vadd.f32 %v1970_v18, %v5307_v19  ;;  %v2001_v33 = vadd.f32 %v5328_v44, %v1982_v43  ;;  %v2006_v51 = vmax.f32 %v2000_v48, 0.0  ;;  %v3386_v43 = vld [vmem:[%s6088_s13 + $0x1a0] sm:$0xff] }
 0x97e   :  { %v1972_v25 = vpop.f32.mrf.mxu1  ;;  %v3402_v48 = vld [vmem:[%s6088_s13 + $0x220] sm:$0xff] }
 0x97f   :  { %v1984_v32 = vadd.f32 %v1972_v25, %v5309_v20  ;;  %v2002_v16 = vadd.f32 %v5322_v39, %v1983_v41  ;;  %v2007_v50 = vmax.f32 %v2001_v33, 0.0  ;;  %v3393_v25 = vld [vmem:[%s6088_s13 + $0x1d8] sm:$0xff]  ;;  %v3388_v41 = vld [vmem:[%s6088_s13 + $0x1b0] sm:$0xff]  ;;  %v3403_v33 = vld [vmem:[%s6088_s13 + $0x228] sm:$0xff] }
 0x980   :  { %v1976_v30 = vpop.f32.mrf.mxu1 }
 0x981   :  { %v1985_v36 = vadd.f32 %v1976_v30, %v5311_v5  ;;  %v2003_v15 = vadd.f32 %v5328_v44, %v1984_v32  ;;  %v2008_v49 = vmax.f32 %v2002_v16, 0.0  ;;  %v3391_v30 = vld [vmem:[%s6088_s13 + $0x1c8] sm:$0xff]  ;;  %v3390_v32 = vld [vmem:[%s6088_s13 + $0x1c0] sm:$0xff]  ;;  %v3404_v16 = vld [vmem:[%s6088_s13 + $0x230] sm:$0xff] }
 0x982   :  { %v1978_v42 = vpop.f32.mrf.mxu1 }
 0x983   :  { %v1986_v45 = vadd.f32 %v1978_v42, %v5313_v22  ;;  %v2004_v11 = vadd.f32 %v5322_v39, %v1985_v36  ;;  %v2009_v29 = vmax.f32 %v2003_v15, 0.0  ;;  %v3389_v36 = vld [vmem:[%s6088_s13 + $0x1b8] sm:$0xff]  ;;  %v3387_v42 = vld [vmem:[%s6088_s13 + $0x1a8] sm:$0xff]  ;;  %v3382_v15 = vld [vmem:[%s6088_s13 + $0x180] sm:$0xff] }
 0x985   :  { %v2005_v26 = vadd.f32 %v5328_v44, %v1986_v45  ;;  %v2010_v17 = vmax.f32 %v2004_v11, 0.0  ;;  %v3385_v45 = vld [vmem:[%s6088_s13 + $0x198] sm:$0xff]  ;;  %v3383_v11 = vld [vmem:[%s6088_s13 + $0x188] sm:$0xff] }
 0x987   :  { %v2011_v47 = vmax.f32 %v2005_v26, 0.0  ;;  %v3405_v26 = vld [vmem:[%s6088_s13 + $0x238] sm:$0xff] }
 0x989   :  { %3297 = vmatprep.subr.msk.mxu0 %vm354_vm4, %v2011_v47  ;;  %v3373_v47 = vld [vmem:[%s6086_s11 + $0x160] sm:$0xff] }
 0x98a   :  { %3298 = vmatpush1.msk.msra.mxu0 %vm354_vm4, %v2010_v17  ;;  %v3372_v17 = vld [vmem:[%s6086_s11 + $0x158] sm:$0xff] }
 0x98b   :  { %2046 = vmatprep.subr.mxu0 %v2009_v29  ;;  %v3401_v29 = vld [vmem:[%s6088_s13 + $0x218] sm:$0xff] }
 0x98c   :  { %2047 = vmatpush1.msra.mxu0 %v2008_v49  ;;  %v3371_v49 = vld [vmem:[%s6086_s11 + $0x150] sm:$0xff] }
 0x98d   :  { %2048 = vmatprep.subr.mxu0 %v2007_v50  ;;  %v3400_v50 = vld [vmem:[%s6088_s13 + $0x210] sm:$0xff] }
 0x98e   :  { %2049 = vmatpush1.msra.mxu0 %v2006_v51  ;;  %v3370_v51 = vld [vmem:[%s6086_s11 + $0x148] sm:$0xff] }
 0x98f   :  { %3299 = vmatmul.mubr.msk.f32.vlgmr.msra.gmra.mxu0 %vm344_vm5, %v5119_v60  ;;  %2302 = vmatprep.subr.mxu0 %v3894_v1  ;;  %v3336_v60 = vld [vmem:[%s6084_s9 + $0x290] sm:$0xff] }
 0x990   :  { %2088 = vmatprep.mubr.f32.mxu0 %v3894_v1  ;;  %2220 = vmatpush2.msra.mxu1 %v3336_v60  ;;  %v3369_v60 = vld [vmem:[%s6086_s11 + $0x140] sm:$0xff] }
 0x991   :  { %2221 = vmatprep.subr.mxu1 %v3335_v8  ;;  %v3398_v8 = vld [vmem:[%s6088_s13 + $0x200] sm:$0xff] }
 0x993   :  { %3300 = vmatmul.mubr.msk.f32.gmra.mxu0 %vm344_vm5, %v5128_v61  ;;  %v3334_v61 = vld [vmem:[%s6084_s9 + $0x280] sm:$0xff] }
 0x994   :  { %2094 = vmatprep.mubr.f32.mxu0 %v3894_v1  ;;  %2222 = vmatpush2.msra.mxu1 %v3334_v61 }
 0x995   :  { %2415 = vmatprep.subr.mxu1 %v3894_v1 }
 0x997   :  { %3301 = vmatmul.mubr.msk.f32.gmra.mxu0 %vm344_vm5, %v5137_v3  ;;  %v3368_v3 = vld [vmem:[%s6086_s11 + $0x138] sm:$0xff] }
 0x998   :  { %2303 = vmatpush1.msra.mxu0 %v3368_v3 }
 0x999   :  { %2304 = vmatprep.subr.mxu0 %v3894_v1 }
 0x99a   :  { %2305 = vmatpush1.msra.mxu0 %v3367_v53 }
 0x99b   :  { %2306 = vmatprep.subr.mxu0 %v3894_v1 }
 0x99c   :  { %2307 = vmatpush1.msra.mxu0 %v3366_v2 }
 0x99d   :  { %2308 = vmatprep.subr.mxu0 %v3894_v1 }
 0x99e   :  { %2309 = vmatpush1.msra.mxu0 %v3365_v9 }
 0x99f   :  { %2310 = vmatprep.subr.mxu0 %v3894_v1 }
 0x9a0   :  { %2311 = vmatpush1.msra.mxu0 %v3364_v35 }
 0x9a1   :  { %2312 = vmatprep.subr.mxu0 %v3894_v1 }
 0x9a2   :  { %2313 = vmatpush1.msra.mxu0 %v3363_v10 }
 0x9a3   :  { %2314 = vmatprep.subr.mxu0 %v3894_v1 }
 0x9a4   :  { %2315 = vmatpush1.msra.mxu0 %v3362_v21 }
 0x9a5   :  { %2316 = vmatprep.subr.mxu0 %v3894_v1 }
 0x9a6   :  { %2317 = vmatpush1.msra.mxu0 %v3361_v38 }
 0x9a7   :  { %2318 = vmatprep.subr.mxu0 %v3894_v1 }
 0x9a8   :  { %2319 = vmatpush1.msra.mxu0 %v3360_v54 }
 0x9a9   :  { %2320 = vmatprep.subr.mxu0 %v3894_v1 }
 0x9aa   :  { %2321 = vmatpush1.msra.mxu0 %v3359_v55 }
 0x9ab   :  { %2322 = vmatprep.subr.mxu0 %v3894_v1 }
 0x9ac   :  { %2323 = vmatpush1.msra.mxu0 %v3358_v12 }
 0x9ad   :  { %2324 = vmatprep.subr.mxu0 %v3894_v1 }
 0x9ae   :  { %2325 = vmatpush1.msra.mxu0 %v3357_v56 }
 0x9af   :  { %2326 = vmatprep.subr.mxu0 %v3894_v1 }
 0x9b0   :  { %2327 = vmatpush1.msra.mxu0 %v3356_v14 }
 0x9b1   :  { %2328 = vmatprep.subr.mxu0 %v3894_v1 }
 0x9b2   :  { %2329 = vmatpush1.msra.mxu0 %v3355_v0  ;;  %v3425_v0 = vld [vmem:[%s6088_s13 + $0x2b0] sm:$0xff] }
 0x9b3   :  { %2330 = vmatprep.subr.mxu0 %v3894_v1 }
 0x9b4   :  { %2331 = vmatpush1.msra.mxu0 %v3354_v24  ;;  %v3452_v24 = vld [vmem:[%s6090_s15 + $0x1f0] sm:$0xff] }
 0x9b5   :  { %2332 = vmatprep.subr.mxu0 %v3894_v1 }
 0x9b6   :  { %2333 = vmatpush1.msra.mxu0 %v3353_v37 }
 0x9b7   :  { %2350 = vmatprep.subr.mxu0 %v3894_v1 }
 0x9b8   :  { %2351 = vmatpush2.msra.mxu0 %v3376_v40 }
 0x9b9   :  { %2352 = vmatprep.subr.mxu0 %v3894_v1 }
 0x9ba   :  { %2353 = vmatpush2.msra.mxu0 %v3375_v28 }
 0x9bb   :  { %2354 = vmatprep.subr.mxu0 %v3894_v1 }
 0x9bc   :  { %2355 = vmatpush2.msra.mxu0 %v3374_v31 }
 0x9bd   :  { %2356 = vmatprep.subr.mxu0 %v3894_v1 }
 0x9be   :  { %2357 = vmatpush2.msra.mxu0 %v3373_v47  ;;  %v3439_v47 = vld [vmem:[%s6090_s15 + $0x188] sm:$0xff] }
 0x9bf   :  { %2358 = vmatprep.subr.mxu0 %v3894_v1 }
 0x9c0   :  { %2359 = vmatpush2.msra.mxu0 %v3372_v17  ;;  %v3438_v17 = vld [vmem:[%s6090_s15 + $0x180] sm:$0xff] }
 0x9c1   :  { %2360 = vmatprep.subr.mxu0 %v3894_v1 }
 0x9c2   :  { %2361 = vmatpush2.msra.mxu0 %v3371_v49  ;;  %v3461_v49 = vld [vmem:[%s6090_s15 + $0x238] sm:$0xff] }
 0x9c3   :  { %2362 = vmatprep.subr.mxu0 %v3894_v1 }
 0x9c4   :  { %2363 = vmatpush2.msra.mxu0 %v3370_v51  ;;  %v3460_v51 = vld [vmem:[%s6090_s15 + $0x230] sm:$0xff] }
 0x9c5   :  { %2364 = vmatprep.subr.mxu0 %v3894_v1 }
 0x9c6   :  { %2365 = vmatpush2.msra.mxu0 %v3369_v60  ;;  %v3459_v60 = vld [vmem:[%s6090_s15 + $0x228] sm:$0xff] }
 0x9c7   :  { %2520 = vmatprep.subr.mxu0 %v3894_v1 }
 0xa4f   :  { %v2084_v34 = vpop.f32.mrf.mxu0 }
 0xa51   :  { %v2086_v57 = vpop.f32.mrf.mxu0 }
 0xa52   :  { %3350 = vmatprep.mubr.msk.f32.mxu1 %vm704_vm6, %v2086_v57 }
 0xa53   :  { %v2090_v59 = vpop.f32.mrf.mxu0  ;;  %2224 = vmatmul.mubr.f32.vlgmr.msra.gmra.mxu1 %v2084_v34 }
 0xa54   :  { %2416 = vmatpush1.msra.mxu1 %v3397_v58  ;;  %v3423_v58 = vld [vmem:[%s6088_s13 + $0x2a0] sm:$0xff] }
 0xa55   :  { %v2092_v63 = vpop.f32.mrf.mxu0  ;;  %2417 = vmatprep.subr.mxu1 %v3894_v1 }
 0xa56   :  { %3351 = vmatprep.mubr.msk.f32.mxu1 %vm704_vm6, %v2092_v63  ;;  %2418 = vmatpush1.msra.mxu1 %v3396_v62  ;;  %v3422_v62 = vld [vmem:[%s6088_s13 + $0x298] sm:$0xff] }
 0xa57   :  { %v2096_v6 = vpop.f32.mrf.mxu0  ;;  %2230 = vmatmul.mubr.f32.gmra.mxu1 %v2090_v59  ;;  %2419 = vmatprep.subr.mxu1 %v3894_v1  ;;  %v3450_v59 = vld [vmem:[%s6090_s15 + $0x1e0] sm:$0xff]  ;;  %v3449_v63 = vld [vmem:[%s6090_s15 + $0x1d8] sm:$0xff] }
 0xa58   :  { %2420 = vmatpush1.msra.mxu1 %v3395_v4  ;;  %v3421_v4 = vld [vmem:[%s6088_s13 + $0x290] sm:$0xff] }
 0xa59   :  { %v2098_v18 = vpop.f32.mrf.mxu0  ;;  %2421 = vmatprep.subr.mxu1 %v3894_v1 }
 0xa5a   :  { %3352 = vmatprep.mubr.msk.f32.mxu1 %vm704_vm6, %v2098_v18  ;;  %2422 = vmatpush1.msra.mxu1 %v3394_v23  ;;  %v3420_v23 = vld [vmem:[%s6088_s13 + $0x288] sm:$0xff] }
 0xa5b   :  { %2236 = vmatmul.mubr.f32.gmra.mxu1 %v2096_v6  ;;  %2423 = vmatprep.subr.mxu1 %v3894_v1  ;;  %v3448_v6 = vld [vmem:[%s6090_s15 + $0x1d0] sm:$0xff]  ;;  %v3447_v18 = vld [vmem:[%s6090_s15 + $0x1c8] sm:$0xff] }
 0xa5c   :  { %2424 = vmatpush1.msra.mxu1 %v3393_v25  ;;  %v3419_v25 = vld [vmem:[%s6088_s13 + $0x280] sm:$0xff] }
 0xa5d   :  { %2425 = vmatprep.subr.mxu1 %v3894_v1 }
 0xa5e   :  { %2426 = vmatpush1.msra.mxu1 %v3392_v27  ;;  %v3446_v27 = vld [vmem:[%s6090_s15 + $0x1c0] sm:$0xff] }
 0xa5f   :  { %2427 = vmatprep.subr.mxu1 %v3894_v1 }
 0xa60   :  { %2428 = vmatpush1.msra.mxu1 %v3391_v30  ;;  %v3418_v30 = vld [vmem:[%s6088_s13 + $0x278] sm:$0xff] }
 0xa61   :  { %2429 = vmatprep.subr.mxu1 %v3894_v1 }
 0xa62   :  { %2430 = vmatpush1.msra.mxu1 %v3390_v32  ;;  %v3445_v32 = vld [vmem:[%s6090_s15 + $0x1b8] sm:$0xff] }
 0xa63   :  { %2431 = vmatprep.subr.mxu1 %v3894_v1 }
 0xa64   :  { %2432 = vmatpush1.msra.mxu1 %v3389_v36  ;;  %v3417_v36 = vld [vmem:[%s6088_s13 + $0x270] sm:$0xff] }
 0xa65   :  { %2433 = vmatprep.subr.mxu1 %v3894_v1 }
 0xa66   :  { %2434 = vmatpush1.msra.mxu1 %v3388_v41  ;;  %v3444_v41 = vld [vmem:[%s6090_s15 + $0x1b0] sm:$0xff] }
 0xa67   :  { %2435 = vmatprep.subr.mxu1 %v3894_v1 }
 0xa68   :  { %2436 = vmatpush1.msra.mxu1 %v3387_v42  ;;  %v3416_v42 = vld [vmem:[%s6088_s13 + $0x268] sm:$0xff] }
 0xa69   :  { %2437 = vmatprep.subr.mxu1 %v3894_v1 }
 0xa6a   :  { %2438 = vmatpush1.msra.mxu1 %v3386_v43  ;;  %v3443_v43 = vld [vmem:[%s6090_s15 + $0x1a8] sm:$0xff] }
 0xa6b   :  { %2439 = vmatprep.subr.mxu1 %v3894_v1 }
 0xa6c   :  { %2440 = vmatpush1.msra.mxu1 %v3385_v45  ;;  %v3415_v45 = vld [vmem:[%s6088_s13 + $0x260] sm:$0xff] }
 0xa6d   :  { %2441 = vmatprep.subr.mxu1 %v3894_v1 }
 0xa6e   :  { %2442 = vmatpush1.msra.mxu1 %v3384_v46  ;;  %v3442_v46 = vld [vmem:[%s6090_s15 + $0x1a0] sm:$0xff] }
 0xa6f   :  { %2443 = vmatprep.subr.mxu1 %v3894_v1 }
 0xa70   :  { %2444 = vmatpush1.msra.mxu1 %v3383_v11  ;;  %v3414_v11 = vld [vmem:[%s6088_s13 + $0x258] sm:$0xff] }
 0xa71   :  { %2445 = vmatprep.subr.mxu1 %v3894_v1 }
 0xa72   :  { %2446 = vmatpush1.msra.mxu1 %v3382_v15  ;;  %v3441_v15 = vld [vmem:[%s6090_s15 + $0x198] sm:$0xff] }
 0xa73   :  { %2463 = vmatprep.subr.mxu1 %v3894_v1 }
 0xa74   :  { %2464 = vmatpush2.msra.mxu1 %v3405_v26  ;;  %v3413_v26 = vld [vmem:[%s6088_s13 + $0x250] sm:$0xff] }
 0xa75   :  { %2465 = vmatprep.subr.mxu1 %v3894_v1 }
 0xa76   :  { %2466 = vmatpush2.msra.mxu1 %v3404_v16  ;;  %v3440_v16 = vld [vmem:[%s6090_s15 + $0x190] sm:$0xff] }
 0xa77   :  { %2467 = vmatprep.subr.mxu1 %v3894_v1 }
 0xa78   :  { %2468 = vmatpush2.msra.mxu1 %v3403_v33  ;;  %v3412_v33 = vld [vmem:[%s6088_s13 + $0x248] sm:$0xff] }
 0xa79   :  { %2469 = vmatprep.subr.mxu1 %v3894_v1 }
 0xa7a   :  { %2470 = vmatpush2.msra.mxu1 %v3402_v48  ;;  %v3411_v48 = vld [vmem:[%s6088_s13 + $0x240] sm:$0xff] }
 0xa7b   :  { %2471 = vmatprep.subr.mxu1 %v3894_v1 }
 0xa7c   :  { %2472 = vmatpush2.msra.mxu1 %v3401_v29  ;;  %v3434_v29 = vld [vmem:[%s6088_s13 + $0x2f8] sm:$0xff] }
 0xa7d   :  { %2473 = vmatprep.subr.mxu1 %v3894_v1 }
 0xa7e   :  { %2474 = vmatpush2.msra.mxu1 %v3400_v50  ;;  %v3433_v50 = vld [vmem:[%s6088_s13 + $0x2f0] sm:$0xff] }
 0xa7f   :  { %2475 = vmatprep.subr.mxu1 %v3894_v1 }
 0xa80   :  { %2476 = vmatpush2.msra.mxu1 %v3399_v52  ;;  %v3432_v52 = vld [vmem:[%s6088_s13 + $0x2e8] sm:$0xff] }
 0xa81   :  { %2477 = vmatprep.subr.mxu1 %v3894_v1 }
 0xa82   :  { %2478 = vmatpush2.msra.mxu1 %v3398_v8  ;;  %v3431_v8 = vld [vmem:[%s6088_s13 + $0x2e0] sm:$0xff] }
 0xa83   :  { %2633 = vmatprep.subr.mxu1 %v3894_v1 }
 0xb13   :  { %v2225_v61 = vpop.f32.mrf.mxu1 }
 0xb14   :  { %v2242_v3 = vadd.f32 %v2225_v61, %v5166_v7  ;;  %v3426_v7 = vld [vmem:[%s6088_s13 + $0x2b8] sm:$0xff]  ;;  %v3458_v61 = vld [vmem:[%s6090_s15 + $0x220] sm:$0xff] }
 0xb15   :  { %v2227_v53 = vpop.f32.mrf.mxu1 }
 0xb16   :  { %v2243_v2 = vadd.f32 %v2227_v53, %v5168_v13  ;;  %v2248_v9 = vadd.f32 %v2242_v3, %v5322_v39  ;;  %v3453_v13 = vld [vmem:[%s6090_s15 + $0x1f8] sm:$0xff] }
 0xb17   :  { %v2231_v35 = vpop.f32.mrf.mxu1  ;;  %v3430_v3 = vld [vmem:[%s6088_s13 + $0x2d8] sm:$0xff] }
 0xb18   :  { %v2249_v10 = vadd.f32 %v2243_v2, %v5328_v44  ;;  %v2244_v21 = vadd.f32 %v2231_v35, %v5307_v19  ;;  %v5565_v12 = vmax.f32 %v2248_v9, 0.0  ;;  %v3457_v53 = vld [vmem:[%s6090_s15 + $0x218] sm:$0xff]  ;;  %v3429_v2 = vld [vmem:[%s6088_s13 + $0x2d0] sm:$0xff]  ;;  %v3428_v35 = vld [vmem:[%s6088_s13 + $0x2c8] sm:$0xff] }
 0xb19   :  { %v2233_v38 = vpop.f32.mrf.mxu1  ;;  %v3456_v9 = vld [vmem:[%s6090_s15 + $0x210] sm:$0xff] }
 0xb1a   :  { %v5562_v54 = vmax.f32 %v2249_v10, 0.0  ;;  %v2245_v55 = vadd.f32 %v2233_v38, %v5309_v20  ;;  %v2250_v19 = vadd.f32 %v2244_v21, %v5322_v39  ;;  %v3455_v10 = vld [vmem:[%s6090_s15 + $0x208] sm:$0xff]  ;;  %v3427_v21 = vld [vmem:[%s6088_s13 + $0x2c0] sm:$0xff] }
 0xb1b   :  { %v2237_v56 = vpop.f32.mrf.mxu1  ;;  %v3454_v38 = vld [vmem:[%s6090_s15 + $0x200] sm:$0xff] }
 0xb1c   :  { %v2251_v14 = vadd.f32 %v2245_v55, %v5328_v44  ;;  %3379 = vmatprep.mubr.msk.f32.mxu0 %vm704_vm6, %v5562_v54  ;;  %3408 = vmatprep.mubr.msk.f32.mxu1 %vm704_vm6, %v5562_v54  ;;  %v2246_v28 = vadd.f32 %v2237_v56, %v5311_v5  ;;  %v5594_v34 = vmax.f32 %v2250_v19, 0.0  ;;  %v3424_v5 = vld [vmem:[%s6088_s13 + $0x2a8] sm:$0xff]  ;;  %v3482_v55 = vld [vmem:[%s6090_s15 + $0x2b8] sm:$0xff]  ;;  %v3481_v56 = vld [vmem:[%s6090_s15 + $0x2b0] sm:$0xff] }
 0xb1d   :  { %v2239_v20 = vpop.f32.mrf.mxu1  ;;  %2367 = vmatmul.mubr.f32.vlgmr.msra.gmra.mxu0 %v5565_v12  ;;  %2480 = vmatmul.mubr.f32.vlgmr.msra.gmra.mxu1 %v5565_v12  ;;  %v3478_v19 = vld [vmem:[%s6090_s15 + $0x298] sm:$0xff] }
 0xb1e   :  { %v5587_v37 = vmax.f32 %v2251_v14, 0.0  ;;  %v2247_v40 = vadd.f32 %v2239_v20, %v5313_v22  ;;  %2521 = vmatpush1.msra.mxu0 %v3426_v7  ;;  %2634 = vmatpush1.msra.mxu1 %v3453_v13  ;;  %v3451_v22 = vld [vmem:[%s6090_s15 + $0x1e8] sm:$0xff]  ;;  %v3479_v13 = vld [vmem:[%s6090_s15 + $0x2a0] sm:$0xff]  ;;  %v5824_v14 = vld [vmem:[%s6106_s21 + $0x38] sm:$0xff] }
 0xb1f   :  { %2522 = vmatprep.subr.mxu0 %v3894_v1  ;;  %2635 = vmatprep.subr.mxu1 %v3894_v1  ;;  %v3480_v7 = vld [vmem:[%s6090_s15 + $0x2a8] sm:$0xff]  ;;  %v3477_v20 = vld [vmem:[%s6090_s15 + $0x290] sm:$0xff] }
 0xb20   :  { %v2253_v31 = vadd.f32 %v2247_v40, %v5328_v44  ;;  %2523 = vmatpush1.msra.mxu0 %v3425_v0  ;;  %2636 = vmatpush1.msra.mxu1 %v3452_v24  ;;  %v2252_v44 = vadd.f32 %v2246_v28, %v5322_v39  ;;  %v3476_v0 = vld [vmem:[%s6090_s15 + $0x288] sm:$0xff]  ;;  %v5847_v24 = vld [vmem:[%s6106_s21 + $0x30] sm:$0xff]  ;;  %v3474_v28 = vld [vmem:[%s6090_s15 + $0x278] sm:$0xff] }
 0xb21   :  { %3380 = vmatprep.mubr.msk.f32.mxu0 %vm704_vm6, %v5587_v37  ;;  %3409 = vmatprep.mubr.msk.f32.mxu1 %vm704_vm6, %v5587_v37  ;;  %v5858_v40 = vld [vmem:[%s6106_s21 + $0x28] sm:$0xff] }
 0xb22   :  { %2524 = vmatprep.subr.mxu0 %v3894_v1  ;;  %2637 = vmatprep.subr.mxu1 %v3894_v1  ;;  %v5609_v57 = vmax.f32 %v2253_v31, 0.0  ;;  %v5621_v39 = vmax.f32 %v2252_v44, 0.0  ;;  %v5869_v31 = vld [vmem:[%s6106_s21 + $0x20] sm:$0xff]  ;;  %v3472_v44 = vld [vmem:[%s6090_s15 + $0x268] sm:$0xff] }
 0xb23   :  { %2372 = vmatmul.mubr.f32.gmra.mxu0 %v5594_v34  ;;  %2485 = vmatmul.mubr.f32.gmra.mxu1 %v5594_v34 }
 0xb24   :  { %2525 = vmatpush1.msra.mxu0 %v3424_v5  ;;  %2638 = vmatpush1.msra.mxu1 %v3451_v22  ;;  %v3473_v5 = vld [vmem:[%s6090_s15 + $0x270] sm:$0xff]  ;;  %v5880_v22 = vld [vmem:[%s6106_s21 + $0x18] sm:$0xff] }
 0xb25   :  { %2526 = vmatprep.subr.mxu0 %v3894_v1  ;;  %2639 = vmatprep.subr.mxu1 %v3894_v1 }
 0xb26   :  { %2527 = vmatpush1.msra.mxu0 %v3423_v58  ;;  %2640 = vmatpush1.msra.mxu1 %v3450_v59  ;;  %v5891_v58 = vld [vmem:[%s6106_s21 + $0x10] sm:$0xff]  ;;  %v3471_v59 = vld [vmem:[%s6090_s15 + $0x260] sm:$0xff] }
 0xb27   :  { %3381 = vmatprep.mubr.msk.f32.mxu0 %vm704_vm6, %v5609_v57  ;;  %3410 = vmatprep.mubr.msk.f32.mxu1 %vm704_vm6, %v5609_v57 }
 0xb28   :  { %2528 = vmatprep.subr.mxu0 %v3894_v1  ;;  %2641 = vmatprep.subr.mxu1 %v3894_v1 }
 0xb29   :  { %2377 = vmatmul.mubr.f32.gmra.mxu0 %v5621_v39  ;;  %2490 = vmatmul.mubr.f32.gmra.mxu1 %v5621_v39 }
 0xb2a   :  { %2529 = vmatpush1.msra.mxu0 %v3422_v62  ;;  %2642 = vmatpush1.msra.mxu1 %v3449_v63  ;;  %v5902_v62 = vld [vmem:[%s6106_s21 + $0x8] sm:$0xff]  ;;  %v3470_v63 = vld [vmem:[%s6090_s15 + $0x258] sm:$0xff] }
 0xb2b   :  { %2530 = vmatprep.subr.mxu0 %v3894_v1  ;;  %3435 = vmatprep.mubr.msk.f32.mxu0 %vm704_vm6, %v5562_v54 }
 0xb2c   :  { %2643 = vmatprep.subr.mxu1 %v3894_v1  ;;  %3464 = vmatprep.mubr.msk.f32.mxu1 %vm704_vm6, %v5562_v54 }
 0xb2d   :  { %2531 = vmatpush1.msra.mxu0 %v3421_v4  ;;  %2644 = vmatpush1.msra.mxu1 %v3448_v6  ;;  %v3871_v4 = vld [vmem:[%s6106_s21] sm:$0xff]  ;;  %v3469_v6 = vld [vmem:[%s6090_s15 + $0x250] sm:$0xff] }
 0xb2e   :  { %2532 = vmatprep.subr.mxu0 %v3894_v1  ;;  %2645 = vmatprep.subr.mxu1 %v3894_v1 }
 0xb2f   :  { %2533 = vmatpush1.msra.mxu0 %v3420_v23  ;;  %2646 = vmatpush1.msra.mxu1 %v3447_v18  ;;  %v3468_v23 = vld [vmem:[%s6090_s15 + $0x248] sm:$0xff]  ;;  %v3467_v18 = vld [vmem:[%s6090_s15 + $0x240] sm:$0xff] }
 0xb30   :  { %2534 = vmatprep.subr.mxu0 %v3894_v1  ;;  %2647 = vmatprep.subr.mxu1 %v3894_v1 }
 0xb31   :  { %2535 = vmatpush1.msra.mxu0 %v3419_v25  ;;  %2648 = vmatpush1.msra.mxu1 %v3446_v27  ;;  %v3490_v25 = vld [vmem:[%s6090_s15 + $0x2f8] sm:$0xff]  ;;  %v3489_v27 = vld [vmem:[%s6090_s15 + $0x2f0] sm:$0xff] }
 0xb32   :  { %2536 = vmatprep.subr.mxu0 %v3894_v1  ;;  %2649 = vmatprep.subr.mxu1 %v3894_v1 }
 0xb33   :  { %2537 = vmatpush1.msra.mxu0 %v3418_v30  ;;  %2650 = vmatpush1.msra.mxu1 %v3445_v32  ;;  %v3488_v30 = vld [vmem:[%s6090_s15 + $0x2e8] sm:$0xff]  ;;  %v3487_v32 = vld [vmem:[%s6090_s15 + $0x2e0] sm:$0xff] }
 0xb34   :  { %2538 = vmatprep.subr.mxu0 %v3894_v1  ;;  %2651 = vmatprep.subr.mxu1 %v3894_v1 }
 0xb35   :  { %2539 = vmatpush1.msra.mxu0 %v3417_v36  ;;  %2652 = vmatpush1.msra.mxu1 %v3444_v41  ;;  %v3486_v36 = vld [vmem:[%s6090_s15 + $0x2d8] sm:$0xff]  ;;  %v3485_v41 = vld [vmem:[%s6090_s15 + $0x2d0] sm:$0xff] }
 0xb36   :  { %2540 = vmatprep.subr.mxu0 %v3894_v1  ;;  %2653 = vmatprep.subr.mxu1 %v3894_v1 }
 0xb37   :  { %2541 = vmatpush1.msra.mxu0 %v3416_v42  ;;  %2654 = vmatpush1.msra.mxu1 %v3443_v43  ;;  %v3484_v42 = vld [vmem:[%s6090_s15 + $0x2c8] sm:$0xff]  ;;  %v3483_v43 = vld [vmem:[%s6090_s15 + $0x2c0] sm:$0xff] }
 0xb38   :  { %2542 = vmatprep.subr.mxu0 %v3894_v1  ;;  %2655 = vmatprep.subr.mxu1 %v3894_v1 }
 0xb39   :  { %2543 = vmatpush1.msra.mxu0 %v3415_v45  ;;  %2656 = vmatpush1.msra.mxu1 %v3442_v46 }
 0xb3a   :  { %2544 = vmatprep.subr.mxu0 %v3894_v1  ;;  %2657 = vmatprep.subr.mxu1 %v3894_v1 }
 0xb3b   :  { %2545 = vmatpush1.msra.mxu0 %v3414_v11  ;;  %2658 = vmatpush1.msra.mxu1 %v3441_v15 }
 0xb3c   :  { %2546 = vmatprep.subr.mxu0 %v3894_v1  ;;  %2659 = vmatprep.subr.mxu1 %v3894_v1 }
 0xb3d   :  { %2547 = vmatpush1.msra.mxu0 %v3413_v26  ;;  %2660 = vmatpush1.msra.mxu1 %v3440_v16 }
 0xb3e   :  { %2548 = vmatprep.subr.mxu0 %v3894_v1  ;;  %2661 = vmatprep.subr.mxu1 %v3894_v1 }
 0xb3f   :  { %2549 = vmatpush1.msra.mxu0 %v3412_v33  ;;  %2662 = vmatpush1.msra.mxu1 %v3439_v47 }
 0xb40   :  { %2550 = vmatprep.subr.mxu0 %v3894_v1  ;;  %2663 = vmatprep.subr.mxu1 %v3894_v1 }
 0xb41   :  { %2551 = vmatpush1.msra.mxu0 %v3411_v48  ;;  %2664 = vmatpush1.msra.mxu1 %v3438_v17 }
 0xb42   :  { %2568 = vmatprep.subr.mxu0 %v3894_v1  ;;  %2681 = vmatprep.subr.mxu1 %v3894_v1 }
 0xb43   :  { %2569 = vmatpush2.msra.mxu0 %v3434_v29  ;;  %2682 = vmatpush2.msra.mxu1 %v3461_v49 }
 0xb44   :  { %2570 = vmatprep.subr.mxu0 %v3894_v1  ;;  %2683 = vmatprep.subr.mxu1 %v3894_v1 }
 0xb45   :  { %2571 = vmatpush2.msra.mxu0 %v3433_v50  ;;  %2684 = vmatpush2.msra.mxu1 %v3460_v51 }
 0xb46   :  { %2572 = vmatprep.subr.mxu0 %v3894_v1  ;;  %2685 = vmatprep.subr.mxu1 %v3894_v1 }
 0xb47   :  { %2573 = vmatpush2.msra.mxu0 %v3432_v52  ;;  %2686 = vmatpush2.msra.mxu1 %v3459_v60 }
 0xb48   :  { %2574 = vmatprep.subr.mxu0 %v3894_v1  ;;  %2687 = vmatprep.subr.mxu1 %v3894_v1 }
 0xb49   :  { %2575 = vmatpush2.msra.mxu0 %v3431_v8  ;;  %2688 = vmatpush2.msra.mxu1 %v3458_v61 }
 0xb4a   :  { %2576 = vmatprep.subr.mxu0 %v3894_v1  ;;  %2689 = vmatprep.subr.mxu1 %v3894_v1 }
 0xb4b   :  { %2577 = vmatpush2.msra.mxu0 %v3430_v3  ;;  %2690 = vmatpush2.msra.mxu1 %v3457_v53 }
 0xb4c   :  { %2578 = vmatprep.subr.mxu0 %v3894_v1  ;;  %2691 = vmatprep.subr.mxu1 %v3894_v1 }
 0xb4d   :  { %2579 = vmatpush2.msra.mxu0 %v3429_v2  ;;  %2692 = vmatpush2.msra.mxu1 %v3456_v9 }
 0xb4e   :  { %2580 = vmatprep.subr.mxu0 %v3894_v1  ;;  %2693 = vmatprep.subr.mxu1 %v3894_v1 }
 0xb4f   :  { %2581 = vmatpush2.msra.mxu0 %v3428_v35  ;;  %2694 = vmatpush2.msra.mxu1 %v3455_v10 }
 0xb50   :  { %2582 = vmatprep.subr.mxu0 %v3894_v1  ;;  %2695 = vmatprep.subr.mxu1 %v3894_v1 }
 0xb51   :  { %2583 = vmatpush2.msra.mxu0 %v3427_v21  ;;  %2696 = vmatpush2.msra.mxu1 %v3454_v38 }
 0xb52   :  { %2585 = vmatmul.mubr.f32.vlgmr.msra.gmra.mxu0 %v5565_v12  ;;  %2698 = vmatmul.mubr.f32.vlgmr.msra.gmra.mxu1 %v5565_v12 }
 0xb53   :  { %2738 = vmatprep.subr.mxu0 %v3894_v1  ;;  %3436 = vmatprep.mubr.msk.f32.mxu0 %vm704_vm6, %v5587_v37 }
 0xb54   :  { %3465 = vmatprep.mubr.msk.f32.mxu1 %vm704_vm6, %v5587_v37  ;;  %2739 = vmatpush1.msra.mxu0 %v3482_v55 }
 0xb55   :  { %2740 = vmatprep.subr.mxu0 %v3894_v1  ;;  %3723 = vmatprep.subr.mxu1 %v3894_v1 }
 0xb56   :  { %2741 = vmatpush1.msra.mxu0 %v3481_v56  ;;  %2703 = vmatmul.mubr.f32.gmra.mxu1 %v5594_v34 }
 0xb57   :  { %2590 = vmatmul.mubr.f32.gmra.mxu0 %v5594_v34  ;;  %2742 = vmatprep.subr.mxu0 %v3894_v1 }
 0xb58   :  { %3437 = vmatprep.mubr.msk.f32.mxu0 %vm704_vm6, %v5609_v57  ;;  %3466 = vmatprep.mubr.msk.f32.mxu1 %vm704_vm6, %v5609_v57 }
 0xb59   :  { %2743 = vmatpush1.msra.mxu0 %v3480_v7  ;;  %3724 = vmatpush3.msra.mxu1 %v5824_v14 }
 0xb5a   :  { %2744 = vmatprep.subr.mxu0 %v3894_v1  ;;  %2708 = vmatmul.mubr.f32.gmra.mxu1 %v5621_v39 }
 0xb5b   :  { %2745 = vmatpush1.msra.mxu0 %v3479_v13  ;;  %3725 = vmatprep.subr.mxu1 %v3894_v1 }
 0xb5c   :  { %2595 = vmatmul.mubr.f32.gmra.mxu0 %v5621_v39  ;;  %2746 = vmatprep.subr.mxu0 %v3894_v1 }
 0xb5d   :  { %2747 = vmatpush1.msra.mxu0 %v3478_v19  ;;  %3491 = vmatprep.mubr.msk.f32.mxu0 %vm704_vm6, %v5562_v54  ;;  %v3475_v54 = vld [vmem:[%s6090_s15 + $0x280] sm:$0xff] }
 0xb5e   :  { %2748 = vmatprep.subr.mxu0 %v3894_v1  ;;  %3726 = vmatpush3.msra.mxu1 %v5847_v24 }
 0xb5f   :  { %2749 = vmatpush1.msra.mxu0 %v3477_v20  ;;  %3727 = vmatprep.subr.mxu1 %v3894_v1 }
 0xb60   :  { %2750 = vmatprep.subr.mxu0 %v3894_v1  ;;  %3728 = vmatpush3.msra.mxu1 %v5858_v40 }
 0xb61   :  { %2751 = vmatpush1.msra.mxu0 %v3476_v0  ;;  %3729 = vmatprep.subr.mxu1 %v3894_v1 }
 0xb62   :  { %2752 = vmatprep.subr.mxu0 %v3894_v1  ;;  %3730 = vmatpush3.msra.mxu1 %v5869_v31 }
 0xb63   :  { %2753 = vmatpush1.msra.mxu0 %v3475_v54  ;;  %3731 = vmatprep.subr.mxu1 %v3894_v1 }
 0xb64   :  { %2754 = vmatprep.subr.mxu0 %v3894_v1  ;;  %3732 = vmatpush3.msra.mxu1 %v5880_v22 }
 0xb65   :  { %2755 = vmatpush1.msra.mxu0 %v3474_v28  ;;  %3733 = vmatprep.subr.mxu1 %v3894_v1 }
 0xb66   :  { %2756 = vmatprep.subr.mxu0 %v3894_v1  ;;  %3734 = vmatpush3.msra.mxu1 %v5891_v58 }
 0xb67   :  { %2757 = vmatpush1.msra.mxu0 %v3473_v5  ;;  %3735 = vmatprep.subr.mxu1 %v3894_v1 }
 0xb68   :  { %2758 = vmatprep.subr.mxu0 %v3894_v1  ;;  %3736 = vmatpush3.msra.mxu1 %v5902_v62 }
 0xb69   :  { %2759 = vmatpush1.msra.mxu0 %v3472_v44  ;;  %3737 = vmatprep.subr.mxu1 %v3894_v1 }
 0xb6a   :  { %2760 = vmatprep.subr.mxu0 %v3894_v1  ;;  %3738 = vmatpush3.msra.mxu1 %v3871_v4 }
 0xb6b   :  { %2761 = vmatpush1.msra.mxu0 %v3471_v59  ;;  %3739 = vmatprep.mubr.msk.f32.mxu1 %vm3895_vm0, %v3894_v1  ;;  %v3506_v59 = vld [vmem:[%s6092_s17 + $0x70] sm:$0xff] }
 0xb6c   :  { %2762 = vmatprep.subr.mxu0 %v3894_v1  ;;  %3773 = vmatprep.subr.mxu1 %v3894_v1 }
 0xb6d   :  { %2763 = vmatpush1.msra.mxu0 %v3470_v63  ;;  %v3504_v63 = vld [vmem:[%s6092_s17 + $0x60] sm:$0xff] }
 0xb6e   :  { %2764 = vmatprep.subr.mxu0 %v3894_v1 }
 0xb6f   :  { %2765 = vmatpush1.msra.mxu0 %v3469_v6  ;;  %v3502_v6 = vld [vmem:[%s6092_s17 + $0x50] sm:$0xff] }
 0xb70   :  { %2766 = vmatprep.subr.mxu0 %v3894_v1 }
 0xb71   :  { %2767 = vmatpush1.msra.mxu0 %v3468_v23  ;;  %v3501_v23 = vld [vmem:[%s6092_s17 + $0x48] sm:$0xff] }
 0xb72   :  { %2768 = vmatprep.subr.mxu0 %v3894_v1 }
 0xb73   :  { %2769 = vmatpush1.msra.mxu0 %v3467_v18  ;;  %v3500_v18 = vld [vmem:[%s6092_s17 + $0x40] sm:$0xff] }
 0xb74   :  { %2786 = vmatprep.subr.mxu0 %v3894_v1 }
 0xb75   :  { %2787 = vmatpush2.msra.mxu0 %v3490_v25 }
 0xb76   :  { %2788 = vmatprep.subr.mxu0 %v3894_v1 }
 0xb77   :  { %2789 = vmatpush2.msra.mxu0 %v3489_v27 }
 0xb78   :  { %2790 = vmatprep.subr.mxu0 %v3894_v1 }
 0xb79   :  { %2791 = vmatpush2.msra.mxu0 %v3488_v30 }
 0xb7a   :  { %2792 = vmatprep.subr.mxu0 %v3894_v1 }
 0xb7b   :  { %2793 = vmatpush2.msra.mxu0 %v3487_v32 }
 0xb7c   :  { %2794 = vmatprep.subr.mxu0 %v3894_v1 }
 0xb7d   :  { %2795 = vmatpush2.msra.mxu0 %v3486_v36 }
 0xb7e   :  { %2796 = vmatprep.subr.mxu0 %v3894_v1 }
 0xb7f   :  { %2797 = vmatpush2.msra.mxu0 %v3485_v41 }
 0xb80   :  { %2798 = vmatprep.subr.mxu0 %v3894_v1 }
 0xb81   :  { %2799 = vmatpush2.msra.mxu0 %v3484_v42 }
 0xb82   :  { %2800 = vmatprep.subr.mxu0 %v3894_v1 }
 0xb83   :  { %2801 = vmatpush2.msra.mxu0 %v3483_v43 }
 0xb84   :  { %2803 = vmatmul.mubr.f32.vlgmr.msra.gmra.mxu0 %v5565_v12  ;;  %3748 = vmatprep.subr.mxu0 %v3894_v1  ;;  %v3378_v12 = vld [vmem:[%s6087_s12 + $0x1] ss:$0 sm:$0xff] }
 0xb85   :  { %3492 = vmatprep.mubr.msk.f32.mxu0 %vm704_vm6, %v5587_v37  ;;  %3749 = vmatpush3.msra.mxu0 %v5824_v14  ;;  %v3407_v37 = vld [vmem:[%s6089_s14 + $0x1] ss:$0 sm:$0xff] }
 0xb86   :  { %3750 = vmatprep.subr.mxu0 %v3894_v1 }
 0xb87   :  { %3751 = vmatpush3.msra.mxu0 %v5847_v24 }
 0xb88   :  { %2808 = vmatmul.mubr.f32.gmra.mxu0 %v5594_v34  ;;  %3752 = vmatprep.subr.mxu0 %v3894_v1 }
 0xb89   :  { %3493 = vmatprep.mubr.msk.f32.mxu0 %vm704_vm6, %v5609_v57  ;;  %3753 = vmatpush3.msra.mxu0 %v5858_v40 }
 0xb8a   :  { %3754 = vmatprep.subr.mxu0 %v3894_v1 }
 0xb8b   :  { %3755 = vmatpush3.msra.mxu0 %v5869_v31 }
 0xb8c   :  { %2813 = vmatmul.mubr.f32.gmra.mxu0 %v5621_v39  ;;  %3756 = vmatprep.subr.mxu0 %v3894_v1 }
 0xb8d   :  { %3757 = vmatpush3.msra.mxu0 %v5880_v22  ;;  %3764 = vmatprep.mubr.msk.f32.mxu0 %vm3895_vm0, %v3894_v1 }
 0xb8e   :  { %3758 = vmatprep.subr.mxu0 %v3894_v1 }
 0xb8f   :  { %3759 = vmatpush3.msra.mxu0 %v5891_v58  ;;  %v3507_v58 = vld [vmem:[%s6092_s17 + $0x78] sm:$0xff] }
 0xb90   :  { %3760 = vmatprep.subr.mxu0 %v3894_v1 }
 0xb91   :  { %3761 = vmatpush3.msra.mxu0 %v5902_v62  ;;  %v3505_v62 = vld [vmem:[%s6092_s17 + $0x68] sm:$0xff] }
 0xb92   :  { %3762 = vmatprep.subr.mxu0 %v3894_v1 }
 0xb93   :  { %3763 = vmatpush3.msra.mxu0 %v3871_v4  ;;  %v3503_v4 = vld [vmem:[%s6092_s17 + $0x58] sm:$0xff] }
 0xbdd   :  { %v2368_v34 = vpop.f32.mrf.mxu0  ;;  %v2481_v57 = vpop.f32.mrf.mxu1 }
 0xbde   :  { %v2369_v39 = vadd.f32 %v3378_v12, %v2368_v34  ;;  %v2482_v45 = vadd.f32 %v3407_v37, %v2481_v57 }
 0xbdf   :  { %v2370_v46 = vpop.f32.mrf.mxu0  ;;  %v2483_v11 = vpop.f32.mrf.mxu1 }
 0xbe0   :  { %v2818_v15 = vmul.f32 %v2482_v45, %v2369_v39 }
 0xbe2   :  { %3740 = vmatmul.mubr.msk.f32.vlgmr.msra.gmra.mxu1 %vm704_vm6, %v2818_v15 }
 0xbe3   :  { %v2373_v26 = vpop.f32.mrf.mxu0  ;;  %v2486_v16 = vpop.f32.mrf.mxu1  ;;  %3742 = vmatprep.mubr.msk.f32.mxu1 %vm3895_vm0, %v3894_v1  ;;  %3774 = vmatpush3.msra.mxu1 %v3507_v58 }
 0xbe4   :  { %v2374_v33 = vadd.f32 %v3378_v12, %v2373_v26  ;;  %v2487_v47 = vadd.f32 %v3407_v37, %v2486_v16  ;;  %3775 = vmatprep.subr.mxu1 %v3894_v1 }
 0xbe5   :  { %v2375_v48 = vpop.f32.mrf.mxu0  ;;  %v2488_v17 = vpop.f32.mrf.mxu1  ;;  %3776 = vmatpush3.msra.mxu1 %v3506_v59 }
 0xbe6   :  { %v2819_v29 = vmul.f32 %v2487_v47, %v2374_v33  ;;  %3777 = vmatprep.subr.mxu1 %v3894_v1 }
 0xbe7   :  { %3778 = vmatpush3.msra.mxu1 %v3505_v62 }
 0xbe8   :  { %3743 = vmatmul.mubr.msk.f32.gmra.mxu1 %vm704_vm6, %v2819_v29  ;;  %3779 = vmatprep.subr.mxu1 %v3894_v1 }
 0xbe9   :  { %v2378_v49 = vpop.f32.mrf.mxu0  ;;  %v2491_v50 = vpop.f32.mrf.mxu1  ;;  %3745 = vmatprep.mubr.msk.f32.mxu1 %vm3895_vm0, %v3894_v1  ;;  %3780 = vmatpush3.msra.mxu1 %v3504_v63 }
 0xbea   :  { %v2379_v51 = vadd.f32 %v3378_v12, %v2378_v49  ;;  %v2492_v52 = vadd.f32 %v3407_v37, %v2491_v50  ;;  %3781 = vmatprep.subr.mxu1 %v3894_v1 }
 0xbeb   :  { %v2380_v60 = vpop.f32.mrf.mxu0  ;;  %v2493_v8 = vpop.f32.mrf.mxu1  ;;  %3782 = vmatpush3.msra.mxu1 %v3503_v4 }
 0xbec   :  { %v2820_v61 = vmul.f32 %v2492_v52, %v2379_v51  ;;  %3783 = vmatprep.subr.mxu1 %v3894_v1 }
 0xbed   :  { %3784 = vmatpush3.msra.mxu1 %v3502_v6 }
 0xbee   :  { %3746 = vmatmul.mubr.msk.f32.gmra.mxu1 %vm704_vm6, %v2820_v61  ;;  %3785 = vmatprep.subr.mxu1 %v3894_v1 }
 0xbef   :  { %3789 = vmatprep.mubr.msk.f32.mxu1 %vm3895_vm0, %v3894_v1  ;;  %3786 = vmatpush3.msra.mxu1 %v3501_v23 }
 0xbf0   :  { %3787 = vmatprep.subr.mxu1 %v3894_v1 }
 0xbf1   :  { %3788 = vmatpush3.msra.mxu1 %v3500_v18 }
 0xc12   :  { %v2586_v3 = vpop.f32.mrf.mxu0  ;;  %v6000_v53 = vpop.f32.mrf.mxu1 }
 0xc13   :  { %v2587_v2 = vadd.f32 %v3407_v37, %v2586_v3 }
 0xc14   :  { %v2588_v9 = vpop.f32.mrf.mxu0  ;;  %v2701_v35 = vpop.f32.mrf.mxu1 }
 0xc15   :  { %v2913_v10 = vmul.f32 %v2587_v2, %v2369_v39 }
 0xc16   :  { %v6002_v21 = vpop.f32.mrf.mxu1 }
 0xc17   :  { %v2591_v38 = vpop.f32.mrf.mxu0  ;;  %3765 = vmatmul.mubr.msk.f32.vlgmr.msra.gmra.mxu0 %vm704_vm6, %v2913_v10 }
 0xc18   :  { %v2592_v55 = vadd.f32 %v3407_v37, %v2591_v38  ;;  %v2706_v56 = vpop.f32.mrf.mxu1  ;;  %3767 = vmatprep.mubr.msk.f32.mxu0 %vm3895_vm0, %v3894_v1 }
 0xc19   :  { %v2593_v7 = vpop.f32.mrf.mxu0 }
 0xc1a   :  { %v2914_v13 = vmul.f32 %v2592_v55, %v2374_v33  ;;  %v6007_v14 = vpop.f32.mrf.mxu1 }
 0xc1c   :  { %v2596_v19 = vpop.f32.mrf.mxu0  ;;  %3768 = vmatmul.mubr.msk.f32.gmra.mxu0 %vm704_vm6, %v2914_v13  ;;  %v2711_v20 = vpop.f32.mrf.mxu1 }
 0xc1d   :  { %v2597_v0 = vadd.f32 %v3407_v37, %v2596_v19  ;;  %3770 = vmatprep.mubr.msk.f32.mxu0 %vm3895_vm0, %v3894_v1  ;;  %v3463_v20 = vld [vmem:[%s6091_s16 + $0x1] ss:$0 sm:$0xff] }
 0xc1e   :  { %v2598_v24 = vpop.f32.mrf.mxu0  ;;  %v2705_v63 = vadd.f32 %v3463_v20, %v6002_v21 }
 0xc1f   :  { %v2915_v54 = vmul.f32 %v2597_v0, %v2379_v51  ;;  %v2700_v24 = vadd.f32 %v3463_v20, %v6000_v53 }
 0xc21   :  { %3771 = vmatmul.mubr.msk.f32.gmra.mxu0 %vm704_vm6, %v2915_v54 }
 0xc44   :  { %v6013_v40 = vpop.f32.mrf.mxu0 }
 0xc45   :  { %v2805_v54 = vadd.f32 %v3463_v20, %v6013_v40 }
 0xc46   :  { %v2806_v28 = vpop.f32.mrf.mxu0 }
 0xc48   :  { %v6015_v31 = vpop.f32.mrf.mxu0 }
 0xc49   :  { %v2810_v4 = vadd.f32 %v3463_v20, %v6015_v31 }
 0xc4a   :  { %v2811_v5 = vpop.f32.mrf.mxu0 }
 0xc4c   :  { %v6017_v22 = vpop.f32.mrf.mxu0 }
 0xc4e   :  { %v2816_v44 = vpop.f32.mrf.mxu0 }
 0xca2   :  { %v2896_v25 = vpop.f32.mrf.mxu1 }
 0xca3   :  { %v2910_v43 = vmul.f32 0.25, %v2896_v25 }
 0xca4   :  { %v3741_v27 = vpop.f32.mrf.mxu1 }
 0xca5   :  { %v2710_v27 = vadd.f32 %v3463_v20, %v6007_v14 }
 0xca8   :  { %v2901_v30 = vpop.f32.mrf.mxu1 }
 0xca9   :  { %v2911_v46 = vmul.f32 0.25, %v2901_v30  ;;  %v2815_v30 = vadd.f32 %v3463_v20, %v6017_v22 }
 0xcaa   :  { %v3744_v32 = vpop.f32.mrf.mxu1 }
 0xcae   :  { %v2906_v36 = vpop.f32.mrf.mxu1 }
 0xcaf   :  { %v2912_v29 = vmul.f32 0.25, %v2906_v36 }
 0xcb0   :  { %v3747_v41 = vpop.f32.mrf.mxu1 }
 0xcd7   :  { %v2991_v42 = vpop.f32.mrf.mxu0 }
 0xcd8   :  { %v3005_v12 = vmul.f32 0.25, %v2991_v42  ;;  %v3509_v42 = vld [vmem:[%s6093_s18 + $0x1] ss:$0 sm:$0xff] }
 0xcd9   :  { %v3766_v37 = vpop.f32.mrf.mxu0 }
 0xcda   :  { %v3008_v34 = vmax.f32 %v2910_v43, %v3005_v12 }
 0xcdc   :  { %v3011_v57 = vsub.f32 %v2910_v43, %v3008_v34  ;;  %v3020_v39 = vsub.f32 %v3005_v12, %v3008_v34  ;;  %v2996_v45 = vpop.f32.mrf.mxu0 }
 0xcdd   :  { %v3006_v11 = vmul.f32 0.25, %v2996_v45 }
 0xcde   :  { %v3014_v15 = vmul.f32 1.442695, %v3011_v57  ;;  %v3023_v26 = vmul.f32 1.442695, %v3020_v39  ;;  %v3769_v16 = vpop.f32.mrf.mxu0 }
 0xcdf   :  { %v3009_v33 = vmax.f32 %v2911_v46, %v3006_v11 }
 0xce0   :  { %3835 = vpow2.f32 %v3014_v15 }
 0xce1   :  { %3837 = vpow2.f32 %v3023_v26  ;;  %v3012_v47 = vsub.f32 %v2911_v46, %v3009_v33  ;;  %v3021_v48 = vsub.f32 %v3006_v11, %v3009_v33  ;;  %v3001_v17 = vpop.f32.mrf.mxu0 }
 0xce2   :  { %v3007_v49 = vmul.f32 0.25, %v3001_v17 }
 0xce3   :  { %v3016_v50 = vmul.f32 1.442695, %v3012_v47  ;;  %v3025_v51 = vmul.f32 1.442695, %v3021_v48  ;;  %v3772_v52 = vpop.f32.mrf.mxu0 }
 0xce4   :  { %v3010_v60 = vmax.f32 %v2912_v29, %v3007_v49 }
 0xce5   :  { %3839 = vpow2.f32 %v3016_v50 }
 0xce6   :  { %3841 = vpow2.f32 %v3025_v51  ;;  %v3013_v8 = vsub.f32 %v2912_v29, %v3010_v60  ;;  %v3022_v61 = vsub.f32 %v3007_v49, %v3010_v60 }
 0xce8   :  { %v3018_v3 = vmul.f32 1.442695, %v3013_v8  ;;  %v3027_v2 = vmul.f32 1.442695, %v3022_v61 }
 0xcea   :  { %3843 = vpow2.f32 %v3018_v3 }
 0xceb   :  { %3845 = vpow2.f32 %v3027_v2 }
 0xced   :  { %v3836_v9 = vpop.eup %3835 }
 0xcee   :  { %v3838_v35 = vpop.eup %3837 }
 0xcef   :  { %v3029_v10 = vadd.f32 %v3838_v35, %v3836_v9 }
 0xcf1   :  { %3847 = vrcp.f32 %v3029_v10 }
 0xcf2   :  { %v3840_v38 = vpop.eup %3839 }
 0xcf3   :  { %v3842_v55 = vpop.eup %3841 }
 0xcf4   :  { %v3030_v56 = vadd.f32 %v3842_v55, %v3840_v38 }
 0xcf6   :  { %3849 = vrcp.f32 %v3030_v56 }
 0xcf7   :  { %v3844_v7 = vpop.eup %3843 }
 0xcf8   :  { %v3846_v13 = vpop.eup %3845 }
 0xcf9   :  { %v3031_v19 = vadd.f32 %v3846_v13, %v3844_v7 }
 0xcfb   :  { %3851 = vrcp.f32 %v3031_v19 }
 0xcfe   :  { %v3848_v0 = vpop.eup %3847 }
 0xcff   :  { %v3038_v28 = vmul.f32 %v3848_v0, %v3836_v9  ;;  %v3044_v5 = vmul.f32 %v3848_v0, %v3838_v35 }
 0xd01   :  { %v3041_v44 = vmul.f32 %v3038_v28, %v2700_v24  ;;  %v3047_v58 = vmul.f32 %v3044_v5, %v2805_v54 }
 0xd03   :  { %v3850_v59 = vpop.eup %3849  ;;  %v3050_v62 = vadd.f32 %v3047_v58, %v3041_v44 }
 0xd04   :  { %v3039_v6 = vmul.f32 %v3850_v59, %v3840_v38  ;;  %v3045_v23 = vmul.f32 %v3850_v59, %v3842_v55 }
 0xd05   :  { %3790 = vmatmul.mubr.msk.f32.vlgmr.msra.gmra.mxu1 %vm704_vm6, %v3050_v62 }
 0xd06   :  { %3792 = vmatprep.mubr.msk.f32.mxu1 %vm3895_vm0, %v3894_v1  ;;  %v3042_v53 = vmul.f32 %v3039_v6, %v2705_v63  ;;  %v3048_v18 = vmul.f32 %v3045_v23, %v2810_v4 }
 0xd08   :  { %v3852_v40 = vpop.eup %3851  ;;  %v3051_v25 = vadd.f32 %v3048_v18, %v3042_v53 }
 0xd09   :  { %v3040_v32 = vmul.f32 %v3852_v40, %v3844_v7  ;;  %v3046_v36 = vmul.f32 %v3852_v40, %v3846_v13 }
 0xd0a   :  { %3793 = vmatmul.mubr.msk.f32.gmra.mxu1 %vm704_vm6, %v3051_v25 }
 0xd0b   :  { %3795 = vmatprep.mubr.msk.f32.mxu1 %vm3895_vm0, %v3894_v1  ;;  %v3043_v21 = vmul.f32 %v3040_v32, %v2710_v27  ;;  %v3049_v31 = vmul.f32 %v3046_v36, %v2815_v30 }
 0xd0d   :  { %v3052_v41 = vadd.f32 %v3049_v31, %v3043_v21 }
 0xd0f   :  { %3796 = vmatmul.mubr.msk.f32.gmra.mxu1 %vm704_vm6, %v3052_v41 }
 0xdc5   :  { %v3145_v43 = vpop.f32.mrf.mxu1 }
 0xdc6   :  { %v3146_v14 = vadd.f32 %v3509_v42, %v3145_v43 }
 0xdc7   :  { %v3791_v12 = vpop.f32.mrf.mxu1 }
 0xdc8   :  { %3159 = vst.msk [vmem:[#allocation2] sm:$0xff] %vm190_vm2, %v3146_v14 }
 0xdca   :  { %v3150_v22 = vpop.f32.mrf.mxu1 }
 0xdcb   :  { %v3151_v37 = vadd.f32 %v3509_v42, %v3150_v22 }
 0xdcc   :  { %v3794_v34 = vpop.f32.mrf.mxu1 }
 0xdcd   :  { %3160 = vst.msk [vmem:[#allocation2 + $0x8] sm:$0xff] %vm190_vm2, %v3151_v37 }
 0xdcf   :  { %v3155_v1 = vpop.f32.mrf.mxu1 }
 0xdd0   :  { %v3156_v57 = vadd.f32 %v3509_v42, %v3155_v1 }
 0xdd1   :  { %v3797_v39 = vpop.f32.mrf.mxu1 }
 0xdd2   :  { %3161 = vst.msk [vmem:[#allocation2 + $0x10] sm:$0x1] %vm197_vm3, %v3156_v57 }
 0xdd3   :  { %3883 = shalt.err (!%p3880_p4)
}
 0xdd4   :  { %s3897_s18 = smov 128   ;;  %s3898_s11 = smov 8  }
 0xdd5   :  { %3173 = dma.vmem_to_hbm [thread:$0]  %s3168_s4, 384, %s6094_s19, [#allocation3], %s3897_s18, %s3897_s18, %s3898_s11  }
 0xdd6   :  { %3892 = dma.done.wait [#allocation3], 384  }
 0xdd7   :  { %3893 = vsyncadd [#allocation3], 4294966912 }
 0xdd8   :  { %3177 = vsyncpa [#allocation3], 1 }

</bundles_post_ra>
